<compile_context>
chip_gen: v7x
topology: tpu7x:2x2x1
jax: 0.10.0
libtpu: 0.0.40
codegen_flags: <defaults>
</compile_context>

<pallas_src>
import functools

import jax
import jax.numpy as jnp
from jax.experimental import pallas as pl
from jax.experimental.pallas import tpu as pltpu


# ----------------------------------------------------------------------------
# Fused kernel: whole Net forward for a block of B samples.
#
# Layouts (all lane-padded to 128 / 256, padding lanes are exact zeros):
#   x_ref    : (B, 28, 28)  f32      input rows, W on lanes
#   acc1_scr : (B*24, 256)  f32      conv1 pre-pool; lanes [0:128)=even cols,
#                                    [128:256)=odd cols (10*j + c within each)
#   m1_scr   : (B, 24, 128) f32      W-pooled conv1
#   h1_scr   : (B, 12, 128) f32      relu(maxpool(conv1)+b1), lanes = 10*j + c1
#   acc2_scr : (B*8, 256)   f32      conv2 pre-pool (20*j + c2 per parity half)
#   m2_scr   : (B, 8, 128)  f32      W-pooled conv2
#   h2_scr   : (B, 4, 128)  f32      relu(maxpool(conv2)+b2), lanes = 20*j + c2
#   out_ref  : (B, 128)     f32      fc output padded to 128 lanes (cols 10.. 0)
# ----------------------------------------------------------------------------
def _net_fused_kernel(x_ref, w1_ref, b1_ref, w2_ref, b2_ref, wfc_ref, fcb_ref,
                      out_ref,
                      acc1_scr, m1_scr, h1_scr, acc2_scr, m2_scr, h2_scr,
                      *, B, mxu_dtype):
    f32 = jnp.float32

    # ---- Stage 1: conv1 (5x5, Cin=1); both W-pool parities in one dot per kh.
    def x_rows(kh):
        # (B,24,28) slice -> (B*24,28); 24 % 8 == 0 so the reshape is
        # tile-exact; only the kh sublane shift costs XLU work.
        return x_ref[:, kh:kh + 24, :].reshape(B * 24, 28).astype(mxu_dtype)

    acc1_scr[...] = jnp.dot(x_rows(0), w1_ref[0], preferred_element_type=f32)
    for kh in range(1, 5):
        acc1_scr[...] += jnp.dot(x_rows(kh), w1_ref[kh],
                                 preferred_element_type=f32)

    # W-direction 2x2 pool = max(even columns, odd columns): lane halves.
    m1_scr[...] = jnp.maximum(acc1_scr[:, :128],
                              acc1_scr[:, 128:]).reshape(B, 24, 128)

    # H-direction pool (stride-2 sublane reads) + bias (valid post-pool) + relu.
    h1 = jnp.maximum(m1_scr[:, pl.ds(0, 12, 2), :],
                     m1_scr[:, pl.ds(1, 12, 2), :])
    h1_scr[...] = jnp.maximum(h1 + b1_ref[...], 0.0)

    # ---- Stage 2: conv2 (5x5, Cin=10), contraction over h1's 128 lanes.
    def h1_rows(kh):
        return h1_scr[:, kh:kh + 8, :].reshape(B * 8, 128).astype(mxu_dtype)

    acc2_scr[...] = jnp.dot(h1_rows(0), w2_ref[0], preferred_element_type=f32)
    for kh in range(1, 5):
        acc2_scr[...] += jnp.dot(h1_rows(kh), w2_ref[kh],
                                 preferred_element_type=f32)

    m2_scr[...] = jnp.maximum(acc2_scr[:, :128],
                              acc2_scr[:, 128:]).reshape(B, 8, 128)

    h2 = jnp.maximum(m2_scr[:, pl.ds(0, 4, 2), :],
                     m2_scr[:, pl.ds(1, 4, 2), :])
    h2_scr[...] = jnp.maximum(h2 + b2_ref[...], 0.0)

    # ---- FC: NCHW flatten folded into wfc; output stays lane-dense (128).
    acc = jnp.dot(h2_scr[:, 0, :].astype(mxu_dtype), wfc_ref[0],
                  preferred_element_type=f32)
    for i in range(1, 4):
        acc = acc + jnp.dot(h2_scr[:, i, :].astype(mxu_dtype), wfc_ref[i],
                            preferred_element_type=f32)
    out_ref[...] = (acc + fcb_ref[...]).astype(out_ref.dtype)


# ----------------------------------------------------------------------------
# Host-side weight repacking (done once) from PyTorch layouts.
# ----------------------------------------------------------------------------
def pack_params(p, mxu_dtype=jnp.bfloat16):
    C1, C2 = 10, 20
    c1w = p["conv1_w"].astype(jnp.float32)   # (10, 1, 5, 5)  OIHW
    c1b = p["conv1_b"].astype(jnp.float32)   # (10,)
    c2w = p["conv2_w"].astype(jnp.float32)   # (20, 10, 5, 5) OIHW
    c2b = p["conv2_b"].astype(jnp.float32)   # (20,)
    fcw = p["fc_w"].astype(jnp.float32)      # (10, 320)
    fcb = p["fc_b"].astype(jnp.float32)      # (10,)

    # conv1 banded weights, even/odd parities merged into one 256-lane tensor:
    #   w1[kh, p, 10*j + c]       = conv1_w[c, 0, kh, p - 2j]      (even cols)
    #   w1[kh, p, 128 + 10*j + c] = conv1_w[c, 0, kh, p - (2j+1)]  (odd  cols)
    w1_k = jnp.transpose(c1w[:, 0, :, :], (1, 2, 0))          # (kh, kw, c1)
    w1 = jnp.zeros((5, 28, 256), jnp.float32)
    for j in range(12):
        w1 = w1.at[:, 2 * j:2 * j + 5, C1 * j:C1 * (j + 1)].set(w1_k)
        w1 = w1.at[:, 2 * j + 1:2 * j + 6,
                   128 + C1 * j:128 + C1 * (j + 1)].set(w1_k)

    # conv2 banded weights over h1's (10*jp + c1) lanes, parities merged:
    #   w2[kh, 10*jp + c1, 20*je + c2]       = conv2_w[c2, c1, kh, jp - 2*je]
    #   w2[kh, 10*jp + c1, 128 + 20*je + c2] = conv2_w[c2, c1, kh, jp - (2*je+1)]
    w2_k = jnp.transpose(c2w, (2, 3, 1, 0)).reshape(5, 5 * C1, C2)
    w2 = jnp.zeros((5, 128, 256), jnp.float32)
    for j in range(4):
        w2 = w2.at[:, C1 * 2 * j:C1 * (2 * j + 5), C2 * j:C2 * (j + 1)].set(w2_k)
        w2 = w2.at[:, C1 * (2 * j + 1):C1 * (2 * j + 6),
                   128 + C2 * j:128 + C2 * (j + 1)].set(w2_k)

    # fc: torch flatten index is c2*16 + i*4 + j; h2 lanes are 20*j + c2.
    wfc4 = jnp.transpose(fcw.reshape(10, C2, 4, 4), (2, 3, 1, 0))  # (i, j, c2, o)
    wfc4 = wfc4.reshape(4, 4 * C2, 10)                             # (i, 20*j+c2, o)
    wfc = jnp.zeros((4, 128, 128), jnp.float32).at[:, :4 * C2, :10].set(wfc4)

    b1_row = jnp.zeros((1, 128), jnp.float32).at[0, :12 * C1].set(jnp.tile(c1b, 12))
    b2_row = jnp.zeros((1, 128), jnp.float32).at[0, :4 * C2].set(jnp.tile(c2b, 4))
    fcb_row = jnp.zeros((1, 128), jnp.float32).at[0, :10].set(fcb)

    return {
        "w1": w1.astype(mxu_dtype), "b1": b1_row,
        "w2": w2.astype(mxu_dtype), "b2": b2_row,
        "wfc": wfc.astype(mxu_dtype), "fcb": fcb_row,
    }


def _auto_block_b(n, max_block=128):
    # Aim for >= 4 grid steps (2 per v7x TensorCore) while keeping the matmul
    # M dim as large as possible; always a multiple of 8, capped at max_block.
    if n >= 4 * max_block:
        return max_block
    bb = max(8, -(-n // 4))
    bb = ((bb + 7) // 8) * 8
    return min(bb, max_block)


# ----------------------------------------------------------------------------
# Public wrapper: accepts NCHW input exactly like the PyTorch module.
# ----------------------------------------------------------------------------
def net_forward(packed, x_nchw, *, block_b=None):
    n = x_nchw.shape[0]
    assert x_nchw.shape[1:] == (1, 28, 28), x_nchw.shape
    x = x_nchw.reshape(n, 28, 28).astype(jnp.float32)

    if block_b is None:
        block_b = _auto_block_b(n)
    B = block_b
    n_pad = ((n + B - 1) // B) * B
    if n_pad != n:
        x = jnp.pad(x, ((0, n_pad - n), (0, 0), (0, 0)))

    mxu_dtype = packed["w1"].dtype
    kernel = functools.partial(_net_fused_kernel, B=B, mxu_dtype=mxu_dtype)
    out = pl.pallas_call(
        kernel,
        out_shape=jax.ShapeDtypeStruct((n_pad, 128), jnp.float32),
        grid_spec=pltpu.PrefetchScalarGridSpec(
            num_scalar_prefetch=0,
            grid=(n_pad // B,),
            in_specs=[
                pl.BlockSpec((B, 28, 28), lambda i: (i, 0, 0)),     # x
                pl.BlockSpec((5, 28, 256), lambda i: (0, 0, 0)),    # w1 (merged)
                pl.BlockSpec((1, 128), lambda i: (0, 0)),           # b1
                pl.BlockSpec((5, 128, 256), lambda i: (0, 0, 0)),   # w2 (merged)
                pl.BlockSpec((1, 128), lambda i: (0, 0)),           # b2
                pl.BlockSpec((4, 128, 128), lambda i: (0, 0, 0)),   # wfc
                pl.BlockSpec((1, 128), lambda i: (0, 0)),           # fcb
            ],
            out_specs=pl.BlockSpec((B, 128), lambda i: (i, 0)),
            scratch_shapes=[
                pltpu.VMEM((B * 24, 256), jnp.float32),  # acc1 (conv1 pre-pool)
                pltpu.VMEM((B, 24, 128), jnp.float32),   # m1 (W-pooled conv1)
                pltpu.VMEM((B, 12, 128), jnp.float32),   # h1
                pltpu.VMEM((B * 8, 256), jnp.float32),   # acc2 (conv2 pre-pool)
                pltpu.VMEM((B, 8, 128), jnp.float32),    # m2 (W-pooled conv2)
                pltpu.VMEM((B, 4, 128), jnp.float32),    # h2
            ],
        ),
        compiler_params=pltpu.CompilerParams(
            dimension_semantics=("parallel",),
            vmem_limit_bytes=32 * 1024 * 1024,
        ),
    )(x, packed["w1"], packed["b1"], packed["w2"], packed["b2"],
      packed["wfc"], packed["fcb"])
    return out[:n, :10]


# ----------------------------------------------------------------------------
# Pure-JAX reference (mirrors the PyTorch module op-for-op, torch layouts).
# ----------------------------------------------------------------------------
def net_forward_ref(p, x_nchw):
    def block(y, w, b):
        y = jax.lax.conv_general_dilated(
            y, w, window_strides=(1, 1), padding="VALID",
            dimension_numbers=("NCHW", "OIHW", "NCHW"))
        y = y + b.reshape(1, -1, 1, 1)
        y = jax.lax.reduce_window(y, -jnp.inf, jax.lax.max,
                                  (1, 1, 2, 2), (1, 1, 2, 2), "VALID")
        return jnp.maximum(y, 0.0)

    y = block(x_nchw.astype(jnp.float32), p["conv1_w"], p["conv1_b"])
    y = block(y, p["conv2_w"], p["conv2_b"])
    flat = y.reshape(x_nchw.shape[0], -1)
    return flat @ p["fc_w"].T + p["fc_b"]


def init_params(key):
    ks = jax.random.split(key, 6)
    return {
        "conv1_w": jax.random.normal(ks[0], (10, 1, 5, 5), jnp.float32) * 0.20,
        "conv1_b": jax.random.normal(ks[1], (10,), jnp.float32) * 0.10,
        "conv2_w": jax.random.normal(ks[2], (20, 10, 5, 5), jnp.float32) * 0.08,
        "conv2_b": jax.random.normal(ks[3], (20,), jnp.float32) * 0.05,
        "fc_w": jax.random.normal(ks[4], (10, 320), jnp.float32) * 0.05,
        "fc_b": jax.random.normal(ks[5], (10,), jnp.float32) * 0.05,
    }


if __name__ == "__main__":
    key = jax.random.PRNGKey(0)
    pkey, xkey = jax.random.split(key)
    params = init_params(pkey)          # torch-layout params

    # MNIST-like input (1x28x28) — that is what fc(320, 10) implies.
    n = 64
    x = jax.random.normal(xkey, (n, 1, 28, 28), jnp.float32)
    ref = jax.block_until_ready(net_forward_ref(params, x))

    # Structural / packing check: f32 MXU operands, tight tolerance.
    packed_f32 = pack_params(params, mxu_dtype=jnp.float32)
    out_f32 = jax.block_until_ready(net_forward(packed_f32, x))
    assert out_f32.shape == (n, 10), out_f32.shape
    err32 = float(jnp.max(jnp.abs(out_f32 - ref)))
    assert jnp.allclose(out_f32, ref, atol=5e-3, rtol=5e-3), (
        "f32 mismatch vs JAX reference, max abs err = " + str(err32))

    # Default perf path: bf16 MXU operands (f32 accumulation + f32 elementwise).
    packed = pack_params(params)        # bf16 weights (one-time repack)
    out = jax.block_until_ready(net_forward(packed, x))
    err16 = float(jnp.max(jnp.abs(out - ref)))
    assert jnp.allclose(out, ref, atol=6e-2, rtol=6e-2), (
        "bf16 mismatch vs JAX reference, max abs err = " + str(err16))

    print("KERNEL_OK")
</pallas_src>

<mosaic_0001>
module attributes {stable_mosaic.version = 11 : i64} {
  func.func @_net_fused_kernel(%arg0: i32, %arg1: memref<16x28x28xf32, #tpu.memory_space<vmem>>, %arg2: memref<5x28x256xf32, #tpu.memory_space<vmem>>, %arg3: memref<1x128xf32, #tpu.memory_space<vmem>>, %arg4: memref<5x128x256xf32, #tpu.memory_space<vmem>>, %arg5: memref<1x128xf32, #tpu.memory_space<vmem>>, %arg6: memref<4x128x128xf32, #tpu.memory_space<vmem>>, %arg7: memref<1x128xf32, #tpu.memory_space<vmem>>, %arg8: memref<16x128xf32, #tpu.memory_space<vmem>>, %arg9: memref<384x256xf32, #tpu.memory_space<vmem>>, %arg10: memref<16x24x128xf32, #tpu.memory_space<vmem>>, %arg11: memref<16x12x128xf32, #tpu.memory_space<vmem>>, %arg12: memref<128x256xf32, #tpu.memory_space<vmem>>, %arg13: memref<16x8x128xf32, #tpu.memory_space<vmem>>, %arg14: memref<16x4x128xf32, #tpu.memory_space<vmem>>) attributes {dimension_semantics = [#tpu.dimension_semantics<parallel>], iteration_bounds = array<i64: 4>, scalar_prefetch = 0 : i64, scratch_operands = 6 : i64, tpu.core_type = #tpu.core_type<tc>, window_params = [{transform_indices = @transform_0, window_bounds = array<i64: 16, 28, 28>}, {pipeline_mode = #tpu.pipeline_mode<synchronous>, transform_indices = @transform_1, window_bounds = array<i64: 5, 28, 256>}, {pipeline_mode = #tpu.pipeline_mode<synchronous>, transform_indices = @transform_2, window_bounds = array<i64: 1, 128>}, {pipeline_mode = #tpu.pipeline_mode<synchronous>, transform_indices = @transform_3, window_bounds = array<i64: 5, 128, 256>}, {pipeline_mode = #tpu.pipeline_mode<synchronous>, transform_indices = @transform_4, window_bounds = array<i64: 1, 128>}, {pipeline_mode = #tpu.pipeline_mode<synchronous>, transform_indices = @transform_5, window_bounds = array<i64: 4, 128, 128>}, {pipeline_mode = #tpu.pipeline_mode<synchronous>, transform_indices = @transform_6, window_bounds = array<i64: 1, 128>}, {transform_indices = @transform_7, window_bounds = array<i64: 16, 128>}]} {
    %c0 = arith.constant 0 : index
    %c0_0 = arith.constant 0 : index
    %c0_1 = arith.constant 0 : index
    %0 = vector.load %arg1[%c0, %c0_0, %c0_1] : memref<16x28x28xf32, #tpu.memory_space<vmem>>, vector<16x24x28xf32>
    %1 = vector.shape_cast %0 : vector<16x24x28xf32> to vector<384x28xf32>
    %c0_2 = arith.constant 0 : index
    %c0_3 = arith.constant 0 : index
    %c0_4 = arith.constant 0 : index
    %2 = vector.load %arg2[%c0_2, %c0_3, %c0_4] : memref<5x28x256xf32, #tpu.memory_space<vmem>>, vector<1x28x256xf32>
    %3 = vector.shape_cast %2 : vector<1x28x256xf32> to vector<28x256xf32>
    %cst = arith.constant dense<0.000000e+00> : vector<384x256xf32>
    %4 = tpu.matmul %1, %3, %cst {dimension_numbers = #tpu.dot_dimension_numbers<[1], [0], [0], [1], [0, 0, 1, 1], [], []>} : vector<384x28xf32>, vector<28x256xf32>, vector<384x256xf32> -> vector<384x256xf32>
    %c0_5 = arith.constant 0 : index
    %c0_6 = arith.constant 0 : index
    %5 = vector.load %arg9[%c0_5, %c0_6] : memref<384x256xf32, #tpu.memory_space<vmem>>, vector<384x256xf32>
    tpu.vector_store %arg9[%c0_5, %c0_6], %4 {strides = array<i32>} : memref<384x256xf32, #tpu.memory_space<vmem>>, vector<384x256xf32>,
    %c0_7 = arith.constant 0 : index
    %c0_8 = arith.constant 0 : index
    %6 = vector.load %arg9[%c0_7, %c0_8] : memref<384x256xf32, #tpu.memory_space<vmem>>, vector<384x256xf32>
    %c0_9 = arith.constant 0 : index
    %c1 = arith.constant 1 : index
    %c0_10 = arith.constant 0 : index
    %7 = vector.load %arg1[%c0_9, %c1, %c0_10] : memref<16x28x28xf32, #tpu.memory_space<vmem>>, vector<16x24x28xf32>
    %8 = vector.shape_cast %7 : vector<16x24x28xf32> to vector<384x28xf32>
    %c1_11 = arith.constant 1 : index
    %c0_12 = arith.constant 0 : index
    %c0_13 = arith.constant 0 : index
    %9 = vector.load %arg2[%c1_11, %c0_12, %c0_13] : memref<5x28x256xf32, #tpu.memory_space<vmem>>, vector<1x28x256xf32>
    %10 = vector.shape_cast %9 : vector<1x28x256xf32> to vector<28x256xf32>
    %cst_14 = arith.constant dense<0.000000e+00> : vector<384x256xf32>
    %11 = tpu.matmul %8, %10, %cst_14 {dimension_numbers = #tpu.dot_dimension_numbers<[1], [0], [0], [1], [0, 0, 1, 1], [], []>} : vector<384x28xf32>, vector<28x256xf32>, vector<384x256xf32> -> vector<384x256xf32>
    %12 = arith.addf %6, %11 : vector<384x256xf32>
    %c0_15 = arith.constant 0 : index
    %c0_16 = arith.constant 0 : index
    %13 = vector.load %arg9[%c0_15, %c0_16] : memref<384x256xf32, #tpu.memory_space<vmem>>, vector<384x256xf32>
    tpu.vector_store %arg9[%c0_15, %c0_16], %12 {strides = array<i32>} : memref<384x256xf32, #tpu.memory_space<vmem>>, vector<384x256xf32>,
    %c0_17 = arith.constant 0 : index
    %c0_18 = arith.constant 0 : index
    %14 = vector.load %arg9[%c0_17, %c0_18] : memref<384x256xf32, #tpu.memory_space<vmem>>, vector<384x256xf32>
    %c0_19 = arith.constant 0 : index
    %c2 = arith.constant 2 : index
    %c0_20 = arith.constant 0 : index
    %15 = vector.load %arg1[%c0_19, %c2, %c0_20] : memref<16x28x28xf32, #tpu.memory_space<vmem>>, vector<16x24x28xf32>
    %16 = vector.shape_cast %15 : vector<16x24x28xf32> to vector<384x28xf32>
    %c2_21 = arith.constant 2 : index
    %c0_22 = arith.constant 0 : index
    %c0_23 = arith.constant 0 : index
    %17 = vector.load %arg2[%c2_21, %c0_22, %c0_23] : memref<5x28x256xf32, #tpu.memory_space<vmem>>, vector<1x28x256xf32>
    %18 = vector.shape_cast %17 : vector<1x28x256xf32> to vector<28x256xf32>
    %cst_24 = arith.constant dense<0.000000e+00> : vector<384x256xf32>
    %19 = tpu.matmul %16, %18, %cst_24 {dimension_numbers = #tpu.dot_dimension_numbers<[1], [0], [0], [1], [0, 0, 1, 1], [], []>} : vector<384x28xf32>, vector<28x256xf32>, vector<384x256xf32> -> vector<384x256xf32>
    %20 = arith.addf %14, %19 : vector<384x256xf32>
    %c0_25 = arith.constant 0 : index
    %c0_26 = arith.constant 0 : index
    %21 = vector.load %arg9[%c0_25, %c0_26] : memref<384x256xf32, #tpu.memory_space<vmem>>, vector<384x256xf32>
    tpu.vector_store %arg9[%c0_25, %c0_26], %20 {strides = array<i32>} : memref<384x256xf32, #tpu.memory_space<vmem>>, vector<384x256xf32>,
    %c0_27 = arith.constant 0 : index
    %c0_28 = arith.constant 0 : index
    %22 = vector.load %arg9[%c0_27, %c0_28] : memref<384x256xf32, #tpu.memory_space<vmem>>, vector<384x256xf32>
    %c0_29 = arith.constant 0 : index
    %c3 = arith.constant 3 : index
    %c0_30 = arith.constant 0 : index
    %23 = vector.load %arg1[%c0_29, %c3, %c0_30] : memref<16x28x28xf32, #tpu.memory_space<vmem>>, vector<16x24x28xf32>
    %24 = vector.shape_cast %23 : vector<16x24x28xf32> to vector<384x28xf32>
    %c3_31 = arith.constant 3 : index
    %c0_32 = arith.constant 0 : index
    %c0_33 = arith.constant 0 : index
    %25 = vector.load %arg2[%c3_31, %c0_32, %c0_33] : memref<5x28x256xf32, #tpu.memory_space<vmem>>, vector<1x28x256xf32>
    %26 = vector.shape_cast %25 : vector<1x28x256xf32> to vector<28x256xf32>
    %cst_34 = arith.constant dense<0.000000e+00> : vector<384x256xf32>
    %27 = tpu.matmul %24, %26, %cst_34 {dimension_numbers = #tpu.dot_dimension_numbers<[1], [0], [0], [1], [0, 0, 1, 1], [], []>} : vector<384x28xf32>, vector<28x256xf32>, vector<384x256xf32> -> vector<384x256xf32>
    %28 = arith.addf %22, %27 : vector<384x256xf32>
    %c0_35 = arith.constant 0 : index
    %c0_36 = arith.constant 0 : index
    %29 = vector.load %arg9[%c0_35, %c0_36] : memref<384x256xf32, #tpu.memory_space<vmem>>, vector<384x256xf32>
    tpu.vector_store %arg9[%c0_35, %c0_36], %28 {strides = array<i32>} : memref<384x256xf32, #tpu.memory_space<vmem>>, vector<384x256xf32>,
    %c0_37 = arith.constant 0 : index
    %c0_38 = arith.constant 0 : index
    %30 = vector.load %arg9[%c0_37, %c0_38] : memref<384x256xf32, #tpu.memory_space<vmem>>, vector<384x256xf32>
    %c0_39 = arith.constant 0 : index
    %c4 = arith.constant 4 : index
    %c0_40 = arith.constant 0 : index
    %31 = vector.load %arg1[%c0_39, %c4, %c0_40] : memref<16x28x28xf32, #tpu.memory_space<vmem>>, vector<16x24x28xf32>
    %32 = vector.shape_cast %31 : vector<16x24x28xf32> to vector<384x28xf32>
    %c4_41 = arith.constant 4 : index
    %c0_42 = arith.constant 0 : index
    %c0_43 = arith.constant 0 : index
    %33 = vector.load %arg2[%c4_41, %c0_42, %c0_43] : memref<5x28x256xf32, #tpu.memory_space<vmem>>, vector<1x28x256xf32>
    %34 = vector.shape_cast %33 : vector<1x28x256xf32> to vector<28x256xf32>
    %cst_44 = arith.constant dense<0.000000e+00> : vector<384x256xf32>
    %35 = tpu.matmul %32, %34, %cst_44 {dimension_numbers = #tpu.dot_dimension_numbers<[1], [0], [0], [1], [0, 0, 1, 1], [], []>} : vector<384x28xf32>, vector<28x256xf32>, vector<384x256xf32> -> vector<384x256xf32>
    %36 = arith.addf %30, %35 : vector<384x256xf32>
    %c0_45 = arith.constant 0 : index
    %c0_46 = arith.constant 0 : index
    %37 = vector.load %arg9[%c0_45, %c0_46] : memref<384x256xf32, #tpu.memory_space<vmem>>, vector<384x256xf32>
    tpu.vector_store %arg9[%c0_45, %c0_46], %36 {strides = array<i32>} : memref<384x256xf32, #tpu.memory_space<vmem>>, vector<384x256xf32>,
    %c0_47 = arith.constant 0 : index
    %c0_48 = arith.constant 0 : index
    %38 = vector.load %arg9[%c0_47, %c0_48] : memref<384x256xf32, #tpu.memory_space<vmem>>, vector<384x128xf32>
    %c0_49 = arith.constant 0 : index
    %c128 = arith.constant 128 : index
    %39 = vector.load %arg9[%c0_49, %c128] : memref<384x256xf32, #tpu.memory_space<vmem>>, vector<384x128xf32>
    %40 = arith.maximumf %38, %39 : vector<384x128xf32>
    %41 = vector.shape_cast %40 : vector<384x128xf32> to vector<16x24x128xf32>
    %c0_50 = arith.constant 0 : index
    %c0_51 = arith.constant 0 : index
    %c0_52 = arith.constant 0 : index
    %42 = vector.load %arg10[%c0_50, %c0_51, %c0_52] : memref<16x24x128xf32, #tpu.memory_space<vmem>>, vector<16x24x128xf32>
    tpu.vector_store %arg10[%c0_50, %c0_51, %c0_52], %41 {strides = array<i32>} : memref<16x24x128xf32, #tpu.memory_space<vmem>>, vector<16x24x128xf32>,
    %c0_53 = arith.constant 0 : index
    %c0_54 = arith.constant 0 : index
    %c0_55 = arith.constant 0 : index
    %43 = tpu.strided_load %arg10[%c0_53, %c0_54, %c0_55] {strides = array<i32: 1, 2, 1>} : memref<16x24x128xf32, #tpu.memory_space<vmem>>, vector<16x12x128xf32>
    %c0_56 = arith.constant 0 : index
    %c1_57 = arith.constant 1 : index
    %c0_58 = arith.constant 0 : index
    %44 = tpu.strided_load %arg10[%c0_56, %c1_57, %c0_58] {strides = array<i32: 1, 2, 1>} : memref<16x24x128xf32, #tpu.memory_space<vmem>>, vector<16x12x128xf32>
    %45 = arith.maximumf %43, %44 : vector<16x12x128xf32>
    %c0_59 = arith.constant 0 : index
    %c0_60 = arith.constant 0 : index
    %46 = vector.load %arg3[%c0_59, %c0_60] : memref<1x128xf32, #tpu.memory_space<vmem>>, vector<1x128xf32>
    %47 = vector.shape_cast %46 : vector<1x128xf32> to vector<1x1x128xf32>
    %48 = vector.broadcast %47 : vector<1x1x128xf32> to vector<16x12x128xf32>
    %49 = arith.addf %45, %48 : vector<16x12x128xf32>
    %cst_61 = arith.constant 0.000000e+00 : f32
    %50 = vector.broadcast %cst_61 : f32 to vector<16x12x128xf32>
    %51 = arith.maximumf %49, %50 : vector<16x12x128xf32>
    %c0_62 = arith.constant 0 : index
    %c0_63 = arith.constant 0 : index
    %c0_64 = arith.constant 0 : index
    %52 = vector.load %arg11[%c0_62, %c0_63, %c0_64] : memref<16x12x128xf32, #tpu.memory_space<vmem>>, vector<16x12x128xf32>
    tpu.vector_store %arg11[%c0_62, %c0_63, %c0_64], %51 {strides = array<i32>} : memref<16x12x128xf32, #tpu.memory_space<vmem>>, vector<16x12x128xf32>,
    %c0_65 = arith.constant 0 : index
    %c0_66 = arith.constant 0 : index
    %c0_67 = arith.constant 0 : index
    %53 = vector.load %arg11[%c0_65, %c0_66, %c0_67] : memref<16x12x128xf32, #tpu.memory_space<vmem>>, vector<16x8x128xf32>
    %54 = vector.shape_cast %53 : vector<16x8x128xf32> to vector<128x128xf32>
    %c0_68 = arith.constant 0 : index
    %c0_69 = arith.constant 0 : index
    %c0_70 = arith.constant 0 : index
    %55 = vector.load %arg4[%c0_68, %c0_69, %c0_70] : memref<5x128x256xf32, #tpu.memory_space<vmem>>, vector<1x128x256xf32>
    %56 = vector.shape_cast %55 : vector<1x128x256xf32> to vector<128x256xf32>
    %cst_71 = arith.constant dense<0.000000e+00> : vector<128x256xf32>
    %57 = tpu.matmul %54, %56, %cst_71 {dimension_numbers = #tpu.dot_dimension_numbers<[1], [0], [0], [1], [0, 0, 1, 1], [], []>} : vector<128x128xf32>, vector<128x256xf32>, vector<128x256xf32> -> vector<128x256xf32>
    %c0_72 = arith.constant 0 : index
    %c0_73 = arith.constant 0 : index
    %58 = vector.load %arg12[%c0_72, %c0_73] : memref<128x256xf32, #tpu.memory_space<vmem>>, vector<128x256xf32>
    tpu.vector_store %arg12[%c0_72, %c0_73], %57 {strides = array<i32>} : memref<128x256xf32, #tpu.memory_space<vmem>>, vector<128x256xf32>,
    %c0_74 = arith.constant 0 : index
    %c0_75 = arith.constant 0 : index
    %59 = vector.load %arg12[%c0_74, %c0_75] : memref<128x256xf32, #tpu.memory_space<vmem>>, vector<128x256xf32>
    %c0_76 = arith.constant 0 : index
    %c1_77 = arith.constant 1 : index
    %c0_78 = arith.constant 0 : index
    %60 = vector.load %arg11[%c0_76, %c1_77, %c0_78] : memref<16x12x128xf32, #tpu.memory_space<vmem>>, vector<16x8x128xf32>
    %61 = vector.shape_cast %60 : vector<16x8x128xf32> to vector<128x128xf32>
    %c1_79 = arith.constant 1 : index
    %c0_80 = arith.constant 0 : index
    %c0_81 = arith.constant 0 : index
    %62 = vector.load %arg4[%c1_79, %c0_80, %c0_81] : memref<5x128x256xf32, #tpu.memory_space<vmem>>, vector<1x128x256xf32>
    %63 = vector.shape_cast %62 : vector<1x128x256xf32> to vector<128x256xf32>
    %cst_82 = arith.constant dense<0.000000e+00> : vector<128x256xf32>
    %64 = tpu.matmul %61, %63, %cst_82 {dimension_numbers = #tpu.dot_dimension_numbers<[1], [0], [0], [1], [0, 0, 1, 1], [], []>} : vector<128x128xf32>, vector<128x256xf32>, vector<128x256xf32> -> vector<128x256xf32>
    %65 = arith.addf %59, %64 : vector<128x256xf32>
    %c0_83 = arith.constant 0 : index
    %c0_84 = arith.constant 0 : index
    %66 = vector.load %arg12[%c0_83, %c0_84] : memref<128x256xf32, #tpu.memory_space<vmem>>, vector<128x256xf32>
    tpu.vector_store %arg12[%c0_83, %c0_84], %65 {strides = array<i32>} : memref<128x256xf32, #tpu.memory_space<vmem>>, vector<128x256xf32>,
    %c0_85 = arith.constant 0 : index
    %c0_86 = arith.constant 0 : index
    %67 = vector.load %arg12[%c0_85, %c0_86] : memref<128x256xf32, #tpu.memory_space<vmem>>, vector<128x256xf32>
    %c0_87 = arith.constant 0 : index
    %c2_88 = arith.constant 2 : index
    %c0_89 = arith.constant 0 : index
    %68 = vector.load %arg11[%c0_87, %c2_88, %c0_89] : memref<16x12x128xf32, #tpu.memory_space<vmem>>, vector<16x8x128xf32>
    %69 = vector.shape_cast %68 : vector<16x8x128xf32> to vector<128x128xf32>
    %c2_90 = arith.constant 2 : index
    %c0_91 = arith.constant 0 : index
    %c0_92 = arith.constant 0 : index
    %70 = vector.load %arg4[%c2_90, %c0_91, %c0_92] : memref<5x128x256xf32, #tpu.memory_space<vmem>>, vector<1x128x256xf32>
    %71 = vector.shape_cast %70 : vector<1x128x256xf32> to vector<128x256xf32>
    %cst_93 = arith.constant dense<0.000000e+00> : vector<128x256xf32>
    %72 = tpu.matmul %69, %71, %cst_93 {dimension_numbers = #tpu.dot_dimension_numbers<[1], [0], [0], [1], [0, 0, 1, 1], [], []>} : vector<128x128xf32>, vector<128x256xf32>, vector<128x256xf32> -> vector<128x256xf32>
    %73 = arith.addf %67, %72 : vector<128x256xf32>
    %c0_94 = arith.constant 0 : index
    %c0_95 = arith.constant 0 : index
    %74 = vector.load %arg12[%c0_94, %c0_95] : memref<128x256xf32, #tpu.memory_space<vmem>>, vector<128x256xf32>
    tpu.vector_store %arg12[%c0_94, %c0_95], %73 {strides = array<i32>} : memref<128x256xf32, #tpu.memory_space<vmem>>, vector<128x256xf32>,
    %c0_96 = arith.constant 0 : index
    %c0_97 = arith.constant 0 : index
    %75 = vector.load %arg12[%c0_96, %c0_97] : memref<128x256xf32, #tpu.memory_space<vmem>>, vector<128x256xf32>
    %c0_98 = arith.constant 0 : index
    %c3_99 = arith.constant 3 : index
    %c0_100 = arith.constant 0 : index
    %76 = vector.load %arg11[%c0_98, %c3_99, %c0_100] : memref<16x12x128xf32, #tpu.memory_space<vmem>>, vector<16x8x128xf32>
    %77 = vector.shape_cast %76 : vector<16x8x128xf32> to vector<128x128xf32>
    %c3_101 = arith.constant 3 : index
    %c0_102 = arith.constant 0 : index
    %c0_103 = arith.constant 0 : index
    %78 = vector.load %arg4[%c3_101, %c0_102, %c0_103] : memref<5x128x256xf32, #tpu.memory_space<vmem>>, vector<1x128x256xf32>
    %79 = vector.shape_cast %78 : vector<1x128x256xf32> to vector<128x256xf32>
    %cst_104 = arith.constant dense<0.000000e+00> : vector<128x256xf32>
    %80 = tpu.matmul %77, %79, %cst_104 {dimension_numbers = #tpu.dot_dimension_numbers<[1], [0], [0], [1], [0, 0, 1, 1], [], []>} : vector<128x128xf32>, vector<128x256xf32>, vector<128x256xf32> -> vector<128x256xf32>
    %81 = arith.addf %75, %80 : vector<128x256xf32>
    %c0_105 = arith.constant 0 : index
    %c0_106 = arith.constant 0 : index
    %82 = vector.load %arg12[%c0_105, %c0_106] : memref<128x256xf32, #tpu.memory_space<vmem>>, vector<128x256xf32>
    tpu.vector_store %arg12[%c0_105, %c0_106], %81 {strides = array<i32>} : memref<128x256xf32, #tpu.memory_space<vmem>>, vector<128x256xf32>,
    %c0_107 = arith.constant 0 : index
    %c0_108 = arith.constant 0 : index
    %83 = vector.load %arg12[%c0_107, %c0_108] : memref<128x256xf32, #tpu.memory_space<vmem>>, vector<128x256xf32>
    %c0_109 = arith.constant 0 : index
    %c4_110 = arith.constant 4 : index
    %c0_111 = arith.constant 0 : index
    %84 = vector.load %arg11[%c0_109, %c4_110, %c0_111] : memref<16x12x128xf32, #tpu.memory_space<vmem>>, vector<16x8x128xf32>
    %85 = vector.shape_cast %84 : vector<16x8x128xf32> to vector<128x128xf32>
    %c4_112 = arith.constant 4 : index
    %c0_113 = arith.constant 0 : index
    %c0_114 = arith.constant 0 : index
    %86 = vector.load %arg4[%c4_112, %c0_113, %c0_114] : memref<5x128x256xf32, #tpu.memory_space<vmem>>, vector<1x128x256xf32>
    %87 = vector.shape_cast %86 : vector<1x128x256xf32> to vector<128x256xf32>
    %cst_115 = arith.constant dense<0.000000e+00> : vector<128x256xf32>
    %88 = tpu.matmul %85, %87, %cst_115 {dimension_numbers = #tpu.dot_dimension_numbers<[1], [0], [0], [1], [0, 0, 1, 1], [], []>} : vector<128x128xf32>, vector<128x256xf32>, vector<128x256xf32> -> vector<128x256xf32>
    %89 = arith.addf %83, %88 : vector<128x256xf32>
    %c0_116 = arith.constant 0 : index
    %c0_117 = arith.constant 0 : index
    %90 = vector.load %arg12[%c0_116, %c0_117] : memref<128x256xf32, #tpu.memory_space<vmem>>, vector<128x256xf32>
    tpu.vector_store %arg12[%c0_116, %c0_117], %89 {strides = array<i32>} : memref<128x256xf32, #tpu.memory_space<vmem>>, vector<128x256xf32>,
    %c0_118 = arith.constant 0 : index
    %c0_119 = arith.constant 0 : index
    %91 = vector.load %arg12[%c0_118, %c0_119] : memref<128x256xf32, #tpu.memory_space<vmem>>, vector<128x128xf32>
    %c0_120 = arith.constant 0 : index
    %c128_121 = arith.constant 128 : index
    %92 = vector.load %arg12[%c0_120, %c128_121] : memref<128x256xf32, #tpu.memory_space<vmem>>, vector<128x128xf32>
    %93 = arith.maximumf %91, %92 : vector<128x128xf32>
    %94 = vector.shape_cast %93 : vector<128x128xf32> to vector<16x8x128xf32>
    %c0_122 = arith.constant 0 : index
    %c0_123 = arith.constant 0 : index
    %c0_124 = arith.constant 0 : index
    %95 = vector.load %arg13[%c0_122, %c0_123, %c0_124] : memref<16x8x128xf32, #tpu.memory_space<vmem>>, vector<16x8x128xf32>
    tpu.vector_store %arg13[%c0_122, %c0_123, %c0_124], %94 {strides = array<i32>} : memref<16x8x128xf32, #tpu.memory_space<vmem>>, vector<16x8x128xf32>,
    %c0_125 = arith.constant 0 : index
    %c0_126 = arith.constant 0 : index
    %c0_127 = arith.constant 0 : index
    %96 = tpu.strided_load %arg13[%c0_125, %c0_126, %c0_127] {strides = array<i32: 1, 2, 1>} : memref<16x8x128xf32, #tpu.memory_space<vmem>>, vector<16x4x128xf32>
    %c0_128 = arith.constant 0 : index
    %c1_129 = arith.constant 1 : index
    %c0_130 = arith.constant 0 : index
    %97 = tpu.strided_load %arg13[%c0_128, %c1_129, %c0_130] {strides = array<i32: 1, 2, 1>} : memref<16x8x128xf32, #tpu.memory_space<vmem>>, vector<16x4x128xf32>
    %98 = arith.maximumf %96, %97 : vector<16x4x128xf32>
    %c0_131 = arith.constant 0 : index
    %c0_132 = arith.constant 0 : index
    %99 = vector.load %arg5[%c0_131, %c0_132] : memref<1x128xf32, #tpu.memory_space<vmem>>, vector<1x128xf32>
    %100 = vector.shape_cast %99 : vector<1x128xf32> to vector<1x1x128xf32>
    %101 = vector.broadcast %100 : vector<1x1x128xf32> to vector<16x4x128xf32>
    %102 = arith.addf %98, %101 : vector<16x4x128xf32>
    %cst_133 = arith.constant 0.000000e+00 : f32
    %103 = vector.broadcast %cst_133 : f32 to vector<16x4x128xf32>
    %104 = arith.maximumf %102, %103 : vector<16x4x128xf32>
    %c0_134 = arith.constant 0 : index
    %c0_135 = arith.constant 0 : index
    %c0_136 = arith.constant 0 : index
    %105 = vector.load %arg14[%c0_134, %c0_135, %c0_136] : memref<16x4x128xf32, #tpu.memory_space<vmem>>, vector<16x4x128xf32>
    tpu.vector_store %arg14[%c0_134, %c0_135, %c0_136], %104 {strides = array<i32>} : memref<16x4x128xf32, #tpu.memory_space<vmem>>, vector<16x4x128xf32>,
    %c0_137 = arith.constant 0 : index
    %c0_138 = arith.constant 0 : index
    %c0_139 = arith.constant 0 : index
    %106 = vector.load %arg14[%c0_137, %c0_138, %c0_139] : memref<16x4x128xf32, #tpu.memory_space<vmem>>, vector<16x1x128xf32>
    %107 = vector.shape_cast %106 : vector<16x1x128xf32> to vector<16x128xf32>
    %c0_140 = arith.constant 0 : index
    %c0_141 = arith.constant 0 : index
    %c0_142 = arith.constant 0 : index
    %108 = vector.load %arg6[%c0_140, %c0_141, %c0_142] : memref<4x128x128xf32, #tpu.memory_space<vmem>>, vector<1x128x128xf32>
    %109 = vector.shape_cast %108 : vector<1x128x128xf32> to vector<128x128xf32>
    %cst_143 = arith.constant dense<0.000000e+00> : vector<16x128xf32>
    %110 = tpu.matmul %107, %109, %cst_143 {dimension_numbers = #tpu.dot_dimension_numbers<[1], [0], [0], [1], [0, 0, 1, 1], [], []>} : vector<16x128xf32>, vector<128x128xf32>, vector<16x128xf32> -> vector<16x128xf32>
    %c0_144 = arith.constant 0 : index
    %c1_145 = arith.constant 1 : index
    %c0_146 = arith.constant 0 : index
    %111 = vector.load %arg14[%c0_144, %c1_145, %c0_146] : memref<16x4x128xf32, #tpu.memory_space<vmem>>, vector<16x1x128xf32>
    %112 = vector.shape_cast %111 : vector<16x1x128xf32> to vector<16x128xf32>
    %c1_147 = arith.constant 1 : index
    %c0_148 = arith.constant 0 : index
    %c0_149 = arith.constant 0 : index
    %113 = vector.load %arg6[%c1_147, %c0_148, %c0_149] : memref<4x128x128xf32, #tpu.memory_space<vmem>>, vector<1x128x128xf32>
    %114 = vector.shape_cast %113 : vector<1x128x128xf32> to vector<128x128xf32>
    %cst_150 = arith.constant dense<0.000000e+00> : vector<16x128xf32>
    %115 = tpu.matmul %112, %114, %cst_150 {dimension_numbers = #tpu.dot_dimension_numbers<[1], [0], [0], [1], [0, 0, 1, 1], [], []>} : vector<16x128xf32>, vector<128x128xf32>, vector<16x128xf32> -> vector<16x128xf32>
    %116 = arith.addf %110, %115 : vector<16x128xf32>
    %c0_151 = arith.constant 0 : index
    %c2_152 = arith.constant 2 : index
    %c0_153 = arith.constant 0 : index
    %117 = vector.load %arg14[%c0_151, %c2_152, %c0_153] : memref<16x4x128xf32, #tpu.memory_space<vmem>>, vector<16x1x128xf32>
    %118 = vector.shape_cast %117 : vector<16x1x128xf32> to vector<16x128xf32>
    %c2_154 = arith.constant 2 : index
    %c0_155 = arith.constant 0 : index
    %c0_156 = arith.constant 0 : index
    %119 = vector.load %arg6[%c2_154, %c0_155, %c0_156] : memref<4x128x128xf32, #tpu.memory_space<vmem>>, vector<1x128x128xf32>
    %120 = vector.shape_cast %119 : vector<1x128x128xf32> to vector<128x128xf32>
    %cst_157 = arith.constant dense<0.000000e+00> : vector<16x128xf32>
    %121 = tpu.matmul %118, %120, %cst_157 {dimension_numbers = #tpu.dot_dimension_numbers<[1], [0], [0], [1], [0, 0, 1, 1], [], []>} : vector<16x128xf32>, vector<128x128xf32>, vector<16x128xf32> -> vector<16x128xf32>
    %122 = arith.addf %116, %121 : vector<16x128xf32>
    %c0_158 = arith.constant 0 : index
    %c3_159 = arith.constant 3 : index
    %c0_160 = arith.constant 0 : index
    %123 = vector.load %arg14[%c0_158, %c3_159, %c0_160] : memref<16x4x128xf32, #tpu.memory_space<vmem>>, vector<16x1x128xf32>
    %124 = vector.shape_cast %123 : vector<16x1x128xf32> to vector<16x128xf32>
    %c3_161 = arith.constant 3 : index
    %c0_162 = arith.constant 0 : index
    %c0_163 = arith.constant 0 : index
    %125 = vector.load %arg6[%c3_161, %c0_162, %c0_163] : memref<4x128x128xf32, #tpu.memory_space<vmem>>, vector<1x128x128xf32>
    %126 = vector.shape_cast %125 : vector<1x128x128xf32> to vector<128x128xf32>
    %cst_164 = arith.constant dense<0.000000e+00> : vector<16x128xf32>
    %127 = tpu.matmul %124, %126, %cst_164 {dimension_numbers = #tpu.dot_dimension_numbers<[1], [0], [0], [1], [0, 0, 1, 1], [], []>} : vector<16x128xf32>, vector<128x128xf32>, vector<16x128xf32> -> vector<16x128xf32>
    %128 = arith.addf %122, %127 : vector<16x128xf32>
    %c0_165 = arith.constant 0 : index
    %c0_166 = arith.constant 0 : index
    %129 = vector.load %arg7[%c0_165, %c0_166] : memref<1x128xf32, #tpu.memory_space<vmem>>, vector<1x128xf32>
    %130 = vector.broadcast %129 : vector<1x128xf32> to vector<16x128xf32>
    %131 = arith.addf %128, %130 : vector<16x128xf32>
    %c0_167 = arith.constant 0 : index
    %c0_168 = arith.constant 0 : index
    %132 = vector.load %arg8[%c0_167, %c0_168] : memref<16x128xf32, #tpu.memory_space<vmem>>, vector<16x128xf32>
    tpu.vector_store %arg8[%c0_167, %c0_168], %131 {strides = array<i32>} : memref<16x128xf32, #tpu.memory_space<vmem>>, vector<16x128xf32>,
    return
  }
  func.func @transform_0(%arg0: i32) -> (i32, i32, i32) {
    %c0_i32 = arith.constant 0 : i32
    %c0_i32_0 = arith.constant 0 : i32
    %c0_i32_1 = arith.constant 0 : i32
    return %arg0, %c0_i32, %c0_i32_0 : i32, i32, i32
  }
  func.func @transform_1(%arg0: i32) -> (i32, i32, i32) {
    %c0_i32 = arith.constant 0 : i32
    %c0_i32_0 = arith.constant 0 : i32
    %c0_i32_1 = arith.constant 0 : i32
    %c0_i32_2 = arith.constant 0 : i32
    return %c0_i32, %c0_i32_0, %c0_i32_1 : i32, i32, i32
  }
  func.func @transform_2(%arg0: i32) -> (i32, i32) {
    %c0_i32 = arith.constant 0 : i32
    %c0_i32_0 = arith.constant 0 : i32
    %c0_i32_1 = arith.constant 0 : i32
    return %c0_i32, %c0_i32_0 : i32, i32
  }
  func.func @transform_3(%arg0: i32) -> (i32, i32, i32) {
    %c0_i32 = arith.constant 0 : i32
    %c0_i32_0 = arith.constant 0 : i32
    %c0_i32_1 = arith.constant 0 : i32
    %c0_i32_2 = arith.constant 0 : i32
    return %c0_i32, %c0_i32_0, %c0_i32_1 : i32, i32, i32
  }
  func.func @transform_4(%arg0: i32) -> (i32, i32) {
    %c0_i32 = arith.constant 0 : i32
    %c0_i32_0 = arith.constant 0 : i32
    %c0_i32_1 = arith.constant 0 : i32
    return %c0_i32, %c0_i32_0 : i32, i32
  }
  func.func @transform_5(%arg0: i32) -> (i32, i32, i32) {
    %c0_i32 = arith.constant 0 : i32
    %c0_i32_0 = arith.constant 0 : i32
    %c0_i32_1 = arith.constant 0 : i32
    %c0_i32_2 = arith.constant 0 : i32
    return %c0_i32, %c0_i32_0, %c0_i32_1 : i32, i32, i32
  }
  func.func @transform_6(%arg0: i32) -> (i32, i32) {
    %c0_i32 = arith.constant 0 : i32
    %c0_i32_0 = arith.constant 0 : i32
    %c0_i32_1 = arith.constant 0 : i32
    return %c0_i32, %c0_i32_0 : i32, i32
  }
  func.func @transform_7(%arg0: i32) -> (i32, i32) {
    %c0_i32 = arith.constant 0 : i32
    %c0_i32_0 = arith.constant 0 : i32
    return %arg0, %c0_i32 : i32, i32
  }
}

</mosaic_0001>

<bundles_post_ra>
// kernel: tpu_custom_call.1
= control target key start
LH: loop header
LB: loop body
LE: loop exit
PB: predicated region body
PF: predicated region fallthrough
CT: control target
= control target key end

     0   :  { %12 = vsyncpa [#allocation9], 0  ;;  %s11064_s0 = inlined_call_operand.vmem [shape: f32[64,28,28], index: 0, kind: input, shape index: {}]   ;;  %s11065_s1 = inlined_call_operand.vmem [shape: f32[5,28,256], index: 1, kind: input, shape index: {}]   ;;  %s11066_s2 = inlined_call_operand.vmem [shape: f32[1,128], index: 2, kind: input, shape index: {}]   ;;  %s11067_s3 = inlined_call_operand.vmem [shape: f32[5,128,256], index: 3, kind: input, shape index: {}]   ;;  %s11068_s4 = inlined_call_operand.vmem [shape: f32[1,128], index: 4, kind: input, shape index: {}]   ;;  %s11069_s5 = inlined_call_operand.vmem [shape: f32[4,128,128], index: 5, kind: input, shape index: {}]   ;;  %s11070_s6 = inlined_call_operand.vmem [shape: f32[1,128], index: 6, kind: input, shape index: {}]   ;;  %s11071_s7 = inlined_call_operand.hbm [shape: f32[64,128], index: 7, kind: output, shape index: {}]  }
   0x1   :  { %14 = vsyncpa [#allocation9 + $0x1], 0  ;;  %s8863_s24 = smov 0   ;;  %s8865_s25 = smov 0  }
   0x2   :  { %s8867_s26 = smov 0   ;;  %s8869_s27 = smov 0  }
   0x3 LB: > { %s8884_s28 = sadd.s32 4294967295, %s8816_s27   ;;  %s7162_s29 = sadd.s32 4294967294, %s8816_s27   ;;  %s8816_s27 = sphi %s8869_s27, %s11174_s27   ;;  %s8812_s26 = sphi %s8867_s26, %s11173_s26   ;;  %s8808_s25 = sphi %s8865_s25, %s11172_s25   ;;  %s8804_s24 = sphi %s8863_s24, %s11171_s24  }
   0x4   : > { %s8888_s30 = sadd.s32 1, %s8816_s27   ;;  %s179_s8 = sadd.s32 1, %s8812_s26 }
   0x5   : > { %s176_s9 = ssub.s32 %s8816_s27, %s8888_s30  ;;  %p189_p0 = scmp.ne.s32.totalorder %s8812_s26, %s8808_s25 }
   0x6   : > { %p177_p1 = scmp.eq.s32.totalorder %s176_s9, 0  ;;  %p190_p2 = scmp.eq.s32.totalorder %s8884_s28, 3 }
   0x7   : > { %p195_p3 = scmp.ne.s32.totalorder %s8808_s25, %s8804_s24  ;;  %p196_p4 = scmp.eq.s32.totalorder %s7162_s29, 3 }
   0x8   : > { %s8899_s10 = scalar_select %p177_p1, %s8812_s26, %s179_s8  }
   0x9   : > { %p8901_p5 = por %p190_p2, %p189_p0  ;;  %p8905_p6 = por %p196_p4, %p195_p3 }
   0xa   : > { %p7165_p7 = scmp.ge.s32.totalorder %s8816_s27, 1  ;;  %p242_p8 = scmp.lt.s32.totalorder %s8816_s27, 5 }
   0xc   : > { %p243_p9 = pnand %p7165_p7, %p242_p8 }
   0xe   : > { %246 = sbr.rel (%p243_p9) target bundleno = 1770 (0x6ea), region = 48 }
  0x15   : > { %v7221_v0 = vld [vmem:[%s11065_s1 + $0x48] sm:$0xff]  ;;  %v7223_v1 = vld [vmem:[%s11065_s1 + $0x58] sm:$0xff]  ;;  %v7220_v2 = vld [vmem:[%s11065_s1 + $0x40] sm:$0xff]  ;;  %vm484_vm0 = vcmask 1043456   ;;  %vm8818_vm1 = vmmov 1   ;;  %v11072_v7 = vmov 0.0  }
  0x16   : > { %v8920_v3 = vpack.c.bf16 %v7223_v1, %v7221_v0  ;;  %v7222_v4 = vld [vmem:[%s11065_s1 + $0x50] sm:$0xff]  ;;  %vm8925_vm2 = vmpackc.low %vm484_vm0, %vm8818_vm1  ;;  %v7225_v6 = vld [vmem:[%s11065_s1 + $0x68] sm:$0xff]  ;;  %1307 = vmatprep.mubr.f32.mxu0 %v11072_v7  ;;  %s7167_s23 = sshll.u32 %s8884_s28, 4  ;;  %555 = vmatprep.mubr.f32.mxu1 %v11072_v7  ;;  %vm339_vm3 = vcmask 228352   ;;  %vm6531_vm4 = vcmask 1041409   ;;  %vm6534_vm5 = vcmask 1042434  }
  0x17   : > { %v8935_v8 = vpack.c.bf16 %v7222_v4, %v7220_v2  ;;  %v7227_v9 = vld [vmem:[%s11065_s1 + $0x78] sm:$0xf]  ;;  %v7224_v10 = vld [vmem:[%s11065_s1 + $0x60] sm:$0xff]  ;;  %v7226_v11 = vld [vmem:[%s11065_s1 + $0x70] sm:$0xf]  ;;  %p276_p10 = scmp.lt.s32.totalorder %s7167_s23, 63 }
  0x18   : > { %7861 = vmatprep.subr.bf16.mxu0 %v8920_v3  ;;  %v8947_v12 = vpack.c.bf16 %v7227_v9, %v7225_v6  ;;  %v7279_v13 = vld [vmem:[%s11065_s1 + $0x88] sm:$0xff]  ;;  %v7281_v14 = vld [vmem:[%s11065_s1 + $0x98] sm:$0xff]  ;;  %v8956_v15 = vpack.c.bf16 %v7226_v11, %v7224_v10  ;;  %v7278_v17 = vld [vmem:[%s11065_s1 + $0x80] sm:$0xff]  ;;  %vm6537_vm6 = vcmask 1043459   ;;  %vm6540_vm7 = vcmask 1044484   ;;  %s272_s15 = sand.u32 1, %s8808_s25  }
  0x19   : > { %7863 = vmatpush1.bf16.msra.mxu0 %v8935_v8  ;;  %s11176_s23 = smov (!%p276_p10, %s7167_s23), 63  ;;  %v7870_v16 = vpack.c.bf16 %v7281_v14, %v7279_v13  ;;  %v7280_v18 = vld [vmem:[%s11065_s1 + $0x90] sm:$0xff]  ;;  %v7283_v19 = vld [vmem:[%s11065_s1 + $0xa8] sm:$0xff]  ;;  %v7285_v20 = vld [vmem:[%s11065_s1 + $0xb8] sm:$0xf]  ;;  %vm6543_vm8 = vcmask 1045509  }
  0x1a   : > { %7866 = vmatprep.subr.msk.bf16.mxu0 %vm8925_vm2, %v8947_v12  ;;  %s7636_s8 = sshll.u32 %s11176_s23, 5  ;;  %v7872_v22 = vpack.c.bf16 %v7280_v18, %v7278_v17  ;;  %v7874_v23 = vpack.c.bf16 %v7285_v20, %v7283_v19  ;;  %v7282_v24 = vld [vmem:[%s11065_s1 + $0xa0] sm:$0xff]  ;;  %v7284_v25 = vld [vmem:[%s11065_s1 + $0xb0] sm:$0xf]  ;;  %v7337_v26 = vld [vmem:[%s11065_s1 + $0xc8] sm:$0xff]  ;;  %vm6546_vm9 = vcmask 1046534  }
  0x1b   : > { %s8976_s18 = scalar_lea.vmem %s11064_s0, %s7636_s8  ;;  %v7339_v27 = vld [vmem:[%s11065_s1 + $0xd8] sm:$0xff]  ;;  %v7877_v29 = vpack.c.bf16 %v7284_v25, %v7282_v24  ;;  %v7336_v58 = vld [vmem:[%s11065_s1 + $0xc0] sm:$0xff]  ;;  %v7338_v59 = vld [vmem:[%s11065_s1 + $0xd0] sm:$0xff]  ;;  %vm6549_vm10 = vcmask 1047559   ;;  %s7166_s16 = sshll.u32 %s272_s15, 4 }
  0x1c   : > { %v1036_v21 = vld [vmem:[%s8976_s18 + $0x1] sm:$0xff]  ;;  %v1037_v28 = vld [vmem:[%s8976_s18 + $0x9] sm:$0xff]  ;;  %v7880_v30 = vpack.c.bf16 %v7339_v27, %v7337_v26  ;;  %v1038_v31 = vld [vmem:[%s8976_s18 + $0x11] sm:$0xff]  ;;  %v7882_v63 = vpack.c.bf16 %v7338_v59, %v7336_v58  ;;  %s274_s23 = scalar_lea.vmem [#allocation8], %s7166_s16  ;;  %s7637_s20 = sshll.u32 %s8884_s28, 8 }
  0x1d   : > { %7869 = vmatpush1.bf16.msk.msra.mxu0 %vm8925_vm2, %v8956_v15  ;;  %v1039_v32 = vld [vmem:[%s8976_s18 + $0x21] sm:$0xff]  ;;  %v1040_v33 = vld [vmem:[%s8976_s18 + $0x29] sm:$0xff]  ;;  %v1041_v34 = vld [vmem:[%s8976_s18 + $0x31] sm:$0xff]  ;;  %s7100_s19 = sshll.u32 %s274_s23, 4  ;;  %s11021_s29 = scalar_lea.hbm %s11071_s7, %s7637_s20  ;;  %s11016_s19 = int_to_ptr.vmem [resolvable:$true] %s7100_s19 }
  0x1e   : > { %7871 = vmatprep.subr.bf16.mxu0 %v7870_v16  ;;  %v1042_v35 = vld [vmem:[%s8976_s18 + $0x41] sm:$0xff]  ;;  %v1043_v36 = vld [vmem:[%s8976_s18 + $0x49] sm:$0xff]  ;;  %v1044_v37 = vld [vmem:[%s8976_s18 + $0x51] sm:$0xff]  ;;  %s11023_s8 = scalar_lea.sflag [#allocation9], %s272_s15  ;;  %s8754_s9 = scalar_lea.vmem %s11016_s19, 256 }
  0x1f   : > { %v1045_v38 = vld [vmem:[%s8976_s18 + $0x61] sm:$0xff]  ;;  %v1046_v39 = vld [vmem:[%s8976_s18 + $0x69] sm:$0xff]  ;;  %v1047_v40 = vld [vmem:[%s8976_s18 + $0x71] sm:$0xff]  ;;  %p8755_p11 = scmp.ne.s32.totalorder %s11016_s19, %s8754_s9  ;;  %s8820_s28 = smov [#allocation8]  }
  0x20   : > { %7230 = vmatmul.mubr.msk.f32.vlgmr.msra.gmra.mrb[0].mxu0 %vm339_vm3, %v1036_v21  ;;  %v1048_v41 = vld [vmem:[%s8976_s18 + $0x81] sm:$0xff]  ;;  %v1049_v42 = vld [vmem:[%s8976_s18 + $0x89] sm:$0xff]  ;;  %v1050_v43 = vld [vmem:[%s8976_s18 + $0x91] sm:$0xff]  ;;  %s8758_s13 = sshll.u32 %s8820_s28, 4  ;;  %s8759_s13 = int_to_ptr.vmem [resolvable:$false] %s8758_s13 }
  0x21   : > { %7873 = vmatpush1.bf16.msra.mxu0 %v7872_v22  ;;  %1313 = vmatprep.mubr.f32.mxu0 %v11072_v7  ;;  %v1051_v44 = vld [vmem:[%s8976_s18 + $0xa1] sm:$0xff]  ;;  %v1052_v45 = vld [vmem:[%s8976_s18 + $0xa9] sm:$0xff]  ;;  %v1053_v46 = vld [vmem:[%s8976_s18 + $0xb1] sm:$0xff]  ;;  %p8756_p12 = pnand %p8755_p11, %p8901_p5  ;;  %s8760_s14 = scalar_lea.vmem %s8759_s13, 512 }
  0x22   : > { %7876 = vmatprep.subr.msk.bf16.mxu0 %vm8925_vm2, %v7874_v23  ;;  %v1054_v47 = vld [vmem:[%s8976_s18 + $0xc1] sm:$0xff]  ;;  %v1055_v48 = vld [vmem:[%s8976_s18 + $0xc9] sm:$0xff]  ;;  %v1056_v49 = vld [vmem:[%s8976_s18 + $0xd1] sm:$0xff]  ;;  %p8761_p0 = scmp.lt.s32.totalorder %s11016_s19, %s8759_s13  ;;  %p8762_p1 = scmp.lt.s32.totalorder %s8760_s14, %s8754_s9 }
  0x23   : > { %v1057_v50 = vld [vmem:[%s8976_s18 + $0xe1] sm:$0xff]  ;;  %v1058_v51 = vld [vmem:[%s8976_s18 + $0xe9] sm:$0xff]  ;;  %v1059_v52 = vld [vmem:[%s8976_s18 + $0xf1] sm:$0xff]  ;;  %p8757_p13 = pneg %p8756_p12 }
  0x24   : > { %7231 = vmatmul.mubr.msk.f32.gmra.mrb[2].mxu0 %vm339_vm3, %v1037_v28  ;;  %v1060_v53 = vld [vmem:[%s8976_s18 + $0x101] sm:$0xff]  ;;  %v1061_v54 = vld [vmem:[%s8976_s18 + $0x109] sm:$0xff]  ;;  %v1062_v55 = vld [vmem:[%s8976_s18 + $0x111] sm:$0xff]  ;;  %p8763_p2 = por %p8762_p1, %p8761_p0 }
  0x25   : > { %1319 = vmatprep.mubr.f32.mxu0 %v11072_v7  ;;  %7879 = vmatpush1.bf16.msk.msra.mxu0 %vm8925_vm2, %v7877_v29  ;;  %v1063_v56 = vld [vmem:[%s8976_s18 + $0x121] sm:$0xff]  ;;  %v1064_v57 = vld [vmem:[%s8976_s18 + $0x129] sm:$0xff]  ;;  %v7343_v61 = vld [vmem:[%s11065_s1 + $0xf8] sm:$0xf] }
  0x26   : > { %7881 = vmatprep.subr.bf16.mxu0 %v7880_v30  ;;  %v7341_v60 = vld [vmem:[%s11065_s1 + $0xe8] sm:$0xff]  ;;  %v7340_v1 = vld [vmem:[%s11065_s1 + $0xe0] sm:$0xff]  ;;  %v7342_v2 = vld [vmem:[%s11065_s1 + $0xf0] sm:$0xf]  ;;  %p8764_p3 = pnand %p8763_p2, %p8757_p13 }
  0x27   : > { %v1884_v62 = vld [vmem:[%s8976_s18 + $0x2] sm:$0xff]  ;;  %v7884_v0 = vpack.c.bf16 %v7343_v61, %v7341_v60  ;;  %v1885_v4 = vld [vmem:[%s8976_s18 + $0xa] sm:$0xff]  ;;  %v7887_v6 = vpack.c.bf16 %v7342_v2, %v7340_v1  ;;  %v1886_v9 = vld [vmem:[%s8976_s18 + $0x12] sm:$0xff] }
  0x28   : > { %7232 = vmatmul.mubr.msk.f32.gmra.mrb[4].mxu0 %vm339_vm3, %v1038_v31  ;;  %v1887_v10 = vld [vmem:[%s8976_s18 + $0x22] sm:$0xff]  ;;  %v1888_v11 = vld [vmem:[%s8976_s18 + $0x2a] sm:$0xff]  ;;  %v1889_v13 = vld [vmem:[%s8976_s18 + $0x32] sm:$0xff] }
  0x29   : > { %1325 = vmatprep.mubr.f32.mxu0 %v11072_v7  ;;  %v1890_v14 = vld [vmem:[%s8976_s18 + $0x42] sm:$0xff]  ;;  %v1891_v16 = vld [vmem:[%s8976_s18 + $0x4a] sm:$0xff]  ;;  %v1892_v17 = vld [vmem:[%s8976_s18 + $0x52] sm:$0xff] }
  0x2a   : > { %v1893_v18 = vld [vmem:[%s8976_s18 + $0x62] sm:$0xff]  ;;  %v1894_v19 = vld [vmem:[%s8976_s18 + $0x6a] sm:$0xff]  ;;  %v1895_v20 = vld [vmem:[%s8976_s18 + $0x72] sm:$0xff] }
  0x2b   : > { %v1896_v21 = vld [vmem:[%s8976_s18 + $0x82] sm:$0xff]  ;;  %v1897_v22 = vld [vmem:[%s8976_s18 + $0x8a] sm:$0xff]  ;;  %v1898_v23 = vld [vmem:[%s8976_s18 + $0x92] sm:$0xff] }
  0x2c   : > { %7233 = vmatmul.mubr.msk.f32.gmra.mrb[6].mxu0 %vm339_vm3, %v1039_v32  ;;  %v1899_v24 = vld [vmem:[%s8976_s18 + $0xa2] sm:$0xff]  ;;  %v1900_v25 = vld [vmem:[%s8976_s18 + $0xaa] sm:$0xff]  ;;  %v7397_v27 = vld [vmem:[%s11065_s1 + $0x118] sm:$0xff] }
  0x2d   : > { %1331 = vmatprep.mubr.f32.mxu0 %v11072_v7  ;;  %v7395_v26 = vld [vmem:[%s11065_s1 + $0x108] sm:$0xff]  ;;  %v1901_v28 = vld [vmem:[%s8976_s18 + $0xb2] sm:$0xff]  ;;  %v289_v59 = vld [vmem:[%s8976_s18 + $0x40] sm:$0xff] }
  0x2e   : > { %v7890_v29 = vpack.c.bf16 %v7397_v27, %v7395_v26  ;;  %v1902_v30 = vld [vmem:[%s8976_s18 + $0xc2] sm:$0xff]  ;;  %v1903_v31 = vld [vmem:[%s8976_s18 + $0xca] sm:$0xff]  ;;  %v1904_v32 = vld [vmem:[%s8976_s18 + $0xd2] sm:$0xff] }
  0x2f   : > { %v1916_v58 = vld [vmem:[%s8976_s18 + $0x152] sm:$0xff]  ;;  %v1917_v60 = vld [vmem:[%s8976_s18 + $0x162] sm:$0xff] }
  0x30   : > { %7234 = vmatmul.mubr.msk.f32.gmra.mrb[8].mxu0 %vm339_vm3, %v1040_v33  ;;  %v1905_v33 = vld [vmem:[%s8976_s18 + $0xe2] sm:$0xff]  ;;  %v2736_v5 = vld [vmem:[%s8976_s18 + $0x2b] sm:$0xff] }
  0x31   : > { %1337 = vmatprep.mubr.f32.mxu0 %v11072_v7  ;;  %v290_v61 = vld [vmem:[%s8976_s18 + $0x48] sm:$0xff]  ;;  %v292_v1 = vld [vmem:[%s8976_s18 + $0x60] sm:$0xff] }
  0x32   : > { %v1920_v2 = vld [vmem:[%s8976_s18 + $0x182] sm:$0xff] }
  0x33   : > { %v1929_v26 = vld [vmem:[%s8976_s18 + $0x1e2] sm:$0xff] }
  0x34   : > { %7235 = vmatmul.mubr.msk.f32.gmra.mrb[10].mxu0 %vm339_vm3, %v1041_v34  ;;  %v1906_v34 = vld [vmem:[%s8976_s18 + $0xea] sm:$0xff] }
  0x35   : > { %1343 = vmatprep.mubr.f32.mxu0 %v11072_v7  ;;  %v302_v27 = vld [vmem:[%s8976_s18 + $0xc8] sm:$0xff] }
  0x38   : > { %7236 = vmatmul.mubr.msk.f32.gmra.mrb[12].mxu0 %vm339_vm3, %v1042_v35  ;;  %v1907_v35 = vld [vmem:[%s8976_s18 + $0xf2] sm:$0xff] }
  0x39   : > { %1349 = vmatprep.mubr.f32.mxu0 %v11072_v7 }
  0x3c   : > { %7237 = vmatmul.mubr.msk.f32.gmra.mrb[14].mxu0 %vm339_vm3, %v1043_v36  ;;  %v332_v36 = vld [vmem:[%s11065_s1 + $0x8] sm:$0xff] }
  0x3d   : > { %1355 = vmatprep.mubr.f32.mxu0 %v11072_v7 }
  0x40   : > { %7238 = vmatmul.mubr.msk.f32.gmra.mrb[16].mxu0 %vm339_vm3, %v1044_v37  ;;  %v334_v37 = vld [vmem:[%s11065_s1 + $0x18] sm:$0xff] }
  0x41   : > { %1361 = vmatprep.mubr.f32.mxu0 %v11072_v7 }
  0x44   : > { %7239 = vmatmul.mubr.msk.f32.gmra.mrb[18].mxu0 %vm339_vm3, %v1045_v38  ;;  %v1908_v38 = vld [vmem:[%s8976_s18 + $0x102] sm:$0xff] }
  0x45   : > { %1367 = vmatprep.mubr.f32.mxu0 %v11072_v7 }
  0x48   : > { %7240 = vmatmul.mubr.msk.f32.gmra.mrb[20].mxu0 %vm339_vm3, %v1046_v39  ;;  %v7850_v39 = vpack.c.bf16 %v334_v37, %v332_v36  ;;  %v2732_v36 = vld [vmem:[%s8976_s18 + $0x3] sm:$0xff] }
  0x49   : > { %1373 = vmatprep.mubr.f32.mxu0 %v11072_v7 }
  0x4a   : > { %7851 = vmatprep.subr.bf16.mxu1 %v7850_v39 }
  0x4c   : > { %7241 = vmatmul.mubr.msk.f32.gmra.mrb[22].mxu0 %vm339_vm3, %v1047_v40  ;;  %v331_v40 = vld [vmem:[%s11065_s1] sm:$0xff] }
  0x4d   : > { %1379 = vmatprep.mubr.f32.mxu0 %v11072_v7 }
  0x50   : > { %7242 = vmatmul.mubr.msk.f32.gmra.mrb[24].mxu0 %vm339_vm3, %v1048_v41  ;;  %v333_v41 = vld [vmem:[%s11065_s1 + $0x10] sm:$0xff] }
  0x51   : > { %1385 = vmatprep.mubr.f32.mxu0 %v11072_v7 }
  0x54   : > { %7243 = vmatmul.mubr.msk.f32.gmra.mrb[26].mxu0 %vm339_vm3, %v1049_v42  ;;  %v7852_v42 = vpack.c.bf16 %v333_v41, %v331_v40  ;;  %v7398_v40 = vld [vmem:[%s11065_s1 + $0x120] sm:$0xff]  ;;  %v7400_v41 = vld [vmem:[%s11065_s1 + $0x130] sm:$0xf] }
  0x55   : > { %1391 = vmatprep.mubr.f32.mxu0 %v11072_v7 }
  0x56   : > { %7853 = vmatpush1.bf16.msra.mxu1 %v7852_v42  ;;  %v2733_v42 = vld [vmem:[%s8976_s18 + $0xb] sm:$0xff] }
  0x58   : > { %7244 = vmatmul.mubr.msk.f32.gmra.mrb[28].mxu0 %vm339_vm3, %v1050_v43  ;;  %v336_v43 = vld [vmem:[%s11065_s1 + $0x28] sm:$0xff] }
  0x59   : > { %1397 = vmatprep.mubr.f32.mxu0 %v11072_v7 }
  0x5c   : > { %7245 = vmatmul.mubr.msk.f32.gmra.mrb[30].mxu0 %vm339_vm3, %v1051_v44  ;;  %v338_v44 = vld [vmem:[%s11065_s1 + $0x38] sm:$0xf] }
  0x5d   : > { %1403 = vmatprep.mubr.f32.mxu0 %v11072_v7 }
  0x60   : > { %7246 = vmatmul.mubr.msk.f32.gmra.mrb[32].mxu0 %vm339_vm3, %v1052_v45  ;;  %v1909_v45 = vld [vmem:[%s8976_s18 + $0x10a] sm:$0xff] }
  0x61   : > { %1409 = vmatprep.mubr.f32.mxu0 %v11072_v7 }
  0x64   : > { %7247 = vmatmul.mubr.msk.f32.gmra.mrb[34].mxu0 %vm339_vm3, %v1053_v46  ;;  %v7854_v46 = vpack.c.bf16 %v338_v44, %v336_v43  ;;  %v7897_v43 = vpack.c.bf16 %v7400_v41, %v7398_v40  ;;  %v306_v44 = vld [vmem:[%s8976_s18 + $0xf0] sm:$0xff] }
  0x65   : > { %1415 = vmatprep.mubr.f32.mxu0 %v11072_v7  ;;  %v2763_v40 = vld [vmem:[%s8976_s18 + $0x14b] sm:$0xff] }
  0x66   : > { %7856 = vmatprep.subr.msk.bf16.mxu1 %vm8925_vm2, %v7854_v46  ;;  %v307_v46 = vld [vmem:[%s8976_s18 + $0x100] sm:$0xff]  ;;  %v1070_v41 = vld [vmem:[%s8976_s18 + $0x169] sm:$0xff] }
  0x68   : > { %7248 = vmatmul.mubr.msk.f32.gmra.mrb[36].mxu0 %vm339_vm3, %v1054_v47  ;;  %v335_v47 = vld [vmem:[%s11065_s1 + $0x20] sm:$0xff] }
  0x69   : > { %1421 = vmatprep.mubr.f32.mxu0 %v11072_v7 }
  0x6c   : > { %7249 = vmatmul.mubr.msk.f32.gmra.mrb[38].mxu0 %vm339_vm3, %v1055_v48  ;;  %v337_v48 = vld [vmem:[%s11065_s1 + $0x30] sm:$0xf] }
  0x6d   : > { %1427 = vmatprep.mubr.f32.mxu0 %v11072_v7 }
  0x70   : > { %7250 = vmatmul.mubr.msk.f32.gmra.mrb[40].mxu0 %vm339_vm3, %v1056_v49  ;;  %v7857_v49 = vpack.c.bf16 %v337_v48, %v335_v47  ;;  %v2735_v47 = vld [vmem:[%s8976_s18 + $0x23] sm:$0xff] }
  0x71   : > { %1433 = vmatprep.mubr.f32.mxu0 %v11072_v7  ;;  %v308_v48 = vld [vmem:[%s8976_s18 + $0x108] sm:$0xff] }
  0x72   : > { %7859 = vmatpush1.bf16.msk.msra.mxu1 %vm8925_vm2, %v7857_v49  ;;  %v309_v49 = vld [vmem:[%s8976_s18 + $0x110] sm:$0xff] }
  0x73   : > { %8188 = vmatprep.subr.bf16.mxu1 %v8920_v3  ;;  %v1912_v3 = vld [vmem:[%s8976_s18 + $0x12a] sm:$0xff] }
  0x74   : > { %7251 = vmatmul.mubr.msk.f32.gmra.mrb[42].mxu0 %vm339_vm3, %v1057_v50  ;;  %v1910_v50 = vld [vmem:[%s8976_s18 + $0x112] sm:$0xff] }
  0x75   : > { %1439 = vmatprep.mubr.f32.mxu0 %v11072_v7 }
  0x78   : > { %7252 = vmatmul.mubr.msk.f32.gmra.mrb[44].mxu0 %vm339_vm3, %v1058_v51  ;;  %v283_v51 = vld [vmem:[%s8976_s18] sm:$0xff] }
  0x79   : > { %1445 = vmatprep.mubr.f32.mxu0 %v11072_v7  ;;  %7172 = vmatmul.mubr.msk.f32.vlgmr.msra.gmra.mrb[0].mxu1 %vm339_vm3, %v283_v51  ;;  %v310_v51 = vld [vmem:[%s8976_s18 + $0x120] sm:$0xff] }
  0x7a   : > { %561 = vmatprep.mubr.f32.mxu1 %v11072_v7  ;;  %8190 = vmatpush1.bf16.msra.mxu1 %v8935_v8  ;;  %v1913_v8 = vld [vmem:[%s8976_s18 + $0x132] sm:$0xff] }
  0x7b   : > { %8189 = vmatprep.subr.msk.bf16.mxu1 %vm8925_vm2, %v8947_v12  ;;  %v286_v12 = vld [vmem:[%s8976_s18 + $0x20] sm:$0xff] }
  0x7c   : > { %7253 = vmatmul.mubr.msk.f32.gmra.mrb[46].mxu0 %vm339_vm3, %v1059_v52  ;;  %v1911_v52 = vld [vmem:[%s8976_s18 + $0x122] sm:$0xff] }
  0x7d   : > { %1451 = vmatprep.mubr.f32.mxu0 %v11072_v7 }
  0x7e   : > { %8191 = vmatpush1.bf16.msk.msra.mxu1 %vm8925_vm2, %v8956_v15  ;;  %v1914_v15 = vld [vmem:[%s8976_s18 + $0x142] sm:$0xff] }
  0x80   : > { %7254 = vmatmul.mubr.msk.f32.gmra.mrb[48].mxu0 %vm339_vm3, %v1060_v53  ;;  %v284_v53 = vld [vmem:[%s8976_s18 + $0x8] sm:$0xff] }
  0x81   : > { %1457 = vmatprep.mubr.f32.mxu0 %v11072_v7  ;;  %7173 = vmatmul.mubr.msk.f32.gmra.mrb[2].mxu1 %vm339_vm3, %v284_v53  ;;  %v311_v53 = vld [vmem:[%s8976_s18 + $0x128] sm:$0xff] }
  0x82   : > { %567 = vmatprep.mubr.f32.mxu1 %v11072_v7 }
  0x84   : > { %7255 = vmatmul.mubr.msk.f32.gmra.mrb[50].mxu0 %vm339_vm3, %v1061_v54  ;;  %v285_v54 = vld [vmem:[%s8976_s18 + $0x10] sm:$0xff] }
  0x85   : > { %1463 = vmatprep.mubr.f32.mxu0 %v11072_v7  ;;  %7174 = vmatmul.mubr.msk.f32.gmra.mrb[4].mxu1 %vm339_vm3, %v285_v54  ;;  %v312_v54 = vld [vmem:[%s8976_s18 + $0x130] sm:$0xff] }
  0x86   : > { %573 = vmatprep.mubr.f32.mxu1 %v11072_v7 }
  0x88   : > { %7256 = vmatmul.mubr.msk.f32.gmra.mrb[52].mxu0 %vm339_vm3, %v1062_v55  ;;  %v287_v55 = vld [vmem:[%s8976_s18 + $0x28] sm:$0xff] }
  0x89   : > { %1469 = vmatprep.mubr.f32.mxu0 %v11072_v7  ;;  %7175 = vmatmul.mubr.msk.f32.gmra.mrb[6].mxu1 %vm339_vm3, %v286_v12  ;;  %v313_v12 = vld [vmem:[%s8976_s18 + $0x140] sm:$0xff] }
  0x8a   : > { %579 = vmatprep.mubr.f32.mxu1 %v11072_v7 }
  0x8c   : > { %7257 = vmatmul.mubr.msk.f32.gmra.mrb[54].mxu0 %vm339_vm3, %v1063_v56  ;;  %v1915_v56 = vld [vmem:[%s8976_s18 + $0x14a] sm:$0xff] }
  0x8d   : > { %1475 = vmatprep.mubr.f32.mxu0 %v11072_v7  ;;  %7176 = vmatmul.mubr.msk.f32.gmra.mrb[8].mxu1 %vm339_vm3, %v287_v55  ;;  %v314_v55 = vld [vmem:[%s8976_s18 + $0x148] sm:$0xff] }
  0x8e   : > { %585 = vmatprep.mubr.f32.mxu1 %v11072_v7 }
  0x90   : > { %7258 = vmatmul.mubr.msk.f32.gmra.mrb[56].mxu0 %vm339_vm3, %v1064_v57  ;;  %v288_v57 = vld [vmem:[%s8976_s18 + $0x30] sm:$0xff] }
  0x91   : > { %2155 = vmatprep.mubr.f32.mxu0 %v11072_v7  ;;  %7177 = vmatmul.mubr.msk.f32.gmra.mrb[10].mxu1 %vm339_vm3, %v288_v57  ;;  %v315_v57 = vld [vmem:[%s8976_s18 + $0x150] sm:$0xff] }
  0x92   : > { %591 = vmatprep.mubr.f32.mxu1 %v11072_v7 }
  0x94   : > { %7288 = vmatmul.mubr.msk.f32.vlgmr.msra.gmra.mrb[0].mxu0 %vm339_vm3, %v1884_v62  ;;  %v1918_v62 = vld [vmem:[%s8976_s18 + $0x16a] sm:$0xff] }
  0x95   : > { %7883 = vmatpush1.bf16.msra.mxu0 %v7882_v63  ;;  %2161 = vmatprep.mubr.f32.mxu0 %v11072_v7  ;;  %v291_v63 = vld [vmem:[%s8976_s18 + $0x50] sm:$0xff] }
  0x96   : > { %7886 = vmatprep.subr.msk.bf16.mxu0 %vm8925_vm2, %v7884_v0  ;;  %7178 = vmatmul.mubr.msk.f32.gmra.mrb[12].mxu1 %vm339_vm3, %v289_v59  ;;  %v1919_v0 = vld [vmem:[%s8976_s18 + $0x172] sm:$0xff]  ;;  %v316_v59 = vld [vmem:[%s8976_s18 + $0x160] sm:$0xff] }
  0x97   : > { %597 = vmatprep.mubr.f32.mxu1 %v11072_v7 }
  0x98   : > { %7289 = vmatmul.mubr.msk.f32.gmra.mrb[2].mxu0 %vm339_vm3, %v1885_v4  ;;  %v293_v4 = vld [vmem:[%s8976_s18 + $0x68] sm:$0xff] }
  0x99   : > { %2167 = vmatprep.mubr.f32.mxu0 %v11072_v7  ;;  %7889 = vmatpush1.bf16.msk.msra.mxu0 %vm8925_vm2, %v7887_v6  ;;  %v1921_v6 = vld [vmem:[%s8976_s18 + $0x18a] sm:$0xff] }
  0x9a   : > { %7891 = vmatprep.subr.bf16.mxu0 %v7890_v29  ;;  %7179 = vmatmul.mubr.msk.f32.gmra.mrb[14].mxu1 %vm339_vm3, %v290_v61  ;;  %v303_v29 = vld [vmem:[%s8976_s18 + $0xd0] sm:$0xff]  ;;  %v317_v61 = vld [vmem:[%s8976_s18 + $0x168] sm:$0xff] }
  0x9b   : > { %603 = vmatprep.mubr.f32.mxu1 %v11072_v7 }
  0x9c   : > { %7290 = vmatmul.mubr.msk.f32.gmra.mrb[4].mxu0 %vm339_vm3, %v1886_v9  ;;  %v294_v9 = vld [vmem:[%s8976_s18 + $0x70] sm:$0xff] }
  0x9d   : > { %2173 = vmatprep.mubr.f32.mxu0 %v11072_v7 }
  0x9e   : > { %7180 = vmatmul.mubr.msk.f32.gmra.mrb[16].mxu1 %vm339_vm3, %v291_v63  ;;  %v318_v63 = vld [vmem:[%s8976_s18 + $0x170] sm:$0xff] }
  0x9f   : > { %609 = vmatprep.mubr.f32.mxu1 %v11072_v7 }
  0xa0   : > { %7291 = vmatmul.mubr.msk.f32.gmra.mrb[6].mxu0 %vm339_vm3, %v1887_v10  ;;  %v1922_v10 = vld [vmem:[%s8976_s18 + $0x192] sm:$0xff] }
  0xa1   : > { %2179 = vmatprep.mubr.f32.mxu0 %v11072_v7 }
  0xa2   : > { %7181 = vmatmul.mubr.msk.f32.gmra.mrb[18].mxu1 %vm339_vm3, %v292_v1  ;;  %v319_v1 = vld [vmem:[%s8976_s18 + $0x180] sm:$0xff] }
  0xa3   : > { %615 = vmatprep.mubr.f32.mxu1 %v11072_v7 }
  0xa4   : > { %7292 = vmatmul.mubr.msk.f32.gmra.mrb[8].mxu0 %vm339_vm3, %v1888_v11  ;;  %v295_v11 = vld [vmem:[%s8976_s18 + $0x80] sm:$0xff] }
  0xa5   : > { %2185 = vmatprep.mubr.f32.mxu0 %v11072_v7 }
  0xa6   : > { %7182 = vmatmul.mubr.msk.f32.gmra.mrb[20].mxu1 %vm339_vm3, %v293_v4  ;;  %v320_v4 = vld [vmem:[%s8976_s18 + $0x188] sm:$0xff] }
  0xa7   : > { %621 = vmatprep.mubr.f32.mxu1 %v11072_v7 }
  0xa8   : > { %7293 = vmatmul.mubr.msk.f32.gmra.mrb[10].mxu0 %vm339_vm3, %v1889_v13  ;;  %v1923_v13 = vld [vmem:[%s8976_s18 + $0x1a2] sm:$0xff] }
  0xa9   : > { %2191 = vmatprep.mubr.f32.mxu0 %v11072_v7 }
  0xaa   : > { %7183 = vmatmul.mubr.msk.f32.gmra.mrb[22].mxu1 %vm339_vm3, %v294_v9  ;;  %v321_v9 = vld [vmem:[%s8976_s18 + $0x190] sm:$0xff] }
  0xab   : > { %627 = vmatprep.mubr.f32.mxu1 %v11072_v7 }
  0xac   : > { %7294 = vmatmul.mubr.msk.f32.gmra.mrb[12].mxu0 %vm339_vm3, %v1890_v14  ;;  %v296_v14 = vld [vmem:[%s8976_s18 + $0x88] sm:$0xff] }
  0xad   : > { %2197 = vmatprep.mubr.f32.mxu0 %v11072_v7 }
  0xae   : > { %7184 = vmatmul.mubr.msk.f32.gmra.mrb[24].mxu1 %vm339_vm3, %v295_v11  ;;  %v322_v11 = vld [vmem:[%s8976_s18 + $0x1a0] sm:$0xff] }
  0xaf   : > { %633 = vmatprep.mubr.f32.mxu1 %v11072_v7 }
  0xb0   : > { %7295 = vmatmul.mubr.msk.f32.gmra.mrb[14].mxu0 %vm339_vm3, %v1891_v16  ;;  %v1924_v16 = vld [vmem:[%s8976_s18 + $0x1aa] sm:$0xff] }
  0xb1   : > { %2203 = vmatprep.mubr.f32.mxu0 %v11072_v7 }
  0xb2   : > { %7185 = vmatmul.mubr.msk.f32.gmra.mrb[26].mxu1 %vm339_vm3, %v296_v14  ;;  %v323_v14 = vld [vmem:[%s8976_s18 + $0x1a8] sm:$0xff] }
  0xb3   : > { %639 = vmatprep.mubr.f32.mxu1 %v11072_v7 }
  0xb4   : > { %7296 = vmatmul.mubr.msk.f32.gmra.mrb[16].mxu0 %vm339_vm3, %v1892_v17  ;;  %v297_v17 = vld [vmem:[%s8976_s18 + $0x90] sm:$0xff] }
  0xb5   : > { %2209 = vmatprep.mubr.f32.mxu0 %v11072_v7 }
  0xb6   : > { %7186 = vmatmul.mubr.msk.f32.gmra.mrb[28].mxu1 %vm339_vm3, %v297_v17  ;;  %v324_v17 = vld [vmem:[%s8976_s18 + $0x1b0] sm:$0xff] }
  0xb7   : > { %645 = vmatprep.mubr.f32.mxu1 %v11072_v7 }
  0xb8   : > { %7297 = vmatmul.mubr.msk.f32.gmra.mrb[18].mxu0 %vm339_vm3, %v1893_v18  ;;  %v1925_v18 = vld [vmem:[%s8976_s18 + $0x1b2] sm:$0xff] }
  0xb9   : > { %2215 = vmatprep.mubr.f32.mxu0 %v11072_v7 }
  0xbc   : > { %7298 = vmatmul.mubr.msk.f32.gmra.mrb[20].mxu0 %vm339_vm3, %v1894_v19  ;;  %v298_v19 = vld [vmem:[%s8976_s18 + $0xa0] sm:$0xff] }
  0xbd   : > { %2221 = vmatprep.mubr.f32.mxu0 %v11072_v7  ;;  %7187 = vmatmul.mubr.msk.f32.gmra.mrb[30].mxu1 %vm339_vm3, %v298_v19  ;;  %v325_v19 = vld [vmem:[%s8976_s18 + $0x1c0] sm:$0xff] }
  0xbe   : > { %651 = vmatprep.mubr.f32.mxu1 %v11072_v7 }
  0xc0   : > { %7299 = vmatmul.mubr.msk.f32.gmra.mrb[22].mxu0 %vm339_vm3, %v1895_v20  ;;  %v1926_v20 = vld [vmem:[%s8976_s18 + $0x1c2] sm:$0xff] }
  0xc1   : > { %2227 = vmatprep.mubr.f32.mxu0 %v11072_v7 }
  0xc4   : > { %7300 = vmatmul.mubr.msk.f32.gmra.mrb[24].mxu0 %vm339_vm3, %v1896_v21  ;;  %v299_v21 = vld [vmem:[%s8976_s18 + $0xa8] sm:$0xff] }
  0xc5   : > { %2233 = vmatprep.mubr.f32.mxu0 %v11072_v7  ;;  %7188 = vmatmul.mubr.msk.f32.gmra.mrb[32].mxu1 %vm339_vm3, %v299_v21  ;;  %v326_v21 = vld [vmem:[%s8976_s18 + $0x1c8] sm:$0xff] }
  0xc6   : > { %657 = vmatprep.mubr.f32.mxu1 %v11072_v7 }
  0xc8   : > { %7301 = vmatmul.mubr.msk.f32.gmra.mrb[26].mxu0 %vm339_vm3, %v1897_v22  ;;  %v1927_v22 = vld [vmem:[%s8976_s18 + $0x1ca] sm:$0xff] }
  0xc9   : > { %2239 = vmatprep.mubr.f32.mxu0 %v11072_v7 }
  0xcc   : > { %7302 = vmatmul.mubr.msk.f32.gmra.mrb[28].mxu0 %vm339_vm3, %v1898_v23  ;;  %v300_v23 = vld [vmem:[%s8976_s18 + $0xb0] sm:$0xff] }
  0xcd   : > { %2245 = vmatprep.mubr.f32.mxu0 %v11072_v7  ;;  %7189 = vmatmul.mubr.msk.f32.gmra.mrb[34].mxu1 %vm339_vm3, %v300_v23  ;;  %v327_v23 = vld [vmem:[%s8976_s18 + $0x1d0] sm:$0xff] }
  0xce   : > { %663 = vmatprep.mubr.f32.mxu1 %v11072_v7 }
  0xd0   : > { %7303 = vmatmul.mubr.msk.f32.gmra.mrb[30].mxu0 %vm339_vm3, %v1899_v24  ;;  %v1928_v24 = vld [vmem:[%s8976_s18 + $0x1d2] sm:$0xff] }
  0xd1   : > { %2251 = vmatprep.mubr.f32.mxu0 %v11072_v7 }
  0xd4   : > { %7304 = vmatmul.mubr.msk.f32.gmra.mrb[32].mxu0 %vm339_vm3, %v1900_v25  ;;  %v301_v25 = vld [vmem:[%s8976_s18 + $0xc0] sm:$0xff] }
  0xd5   : > { %2257 = vmatprep.mubr.f32.mxu0 %v11072_v7  ;;  %7190 = vmatmul.mubr.msk.f32.gmra.mrb[36].mxu1 %vm339_vm3, %v301_v25  ;;  %v328_v25 = vld [vmem:[%s8976_s18 + $0x1e0] sm:$0xff] }
  0xd6   : > { %669 = vmatprep.mubr.f32.mxu1 %v11072_v7 }
  0xd8   : > { %7305 = vmatmul.mubr.msk.f32.gmra.mrb[34].mxu0 %vm339_vm3, %v1901_v28  ;;  %v1930_v28 = vld [vmem:[%s8976_s18 + $0x1ea] sm:$0xff] }
  0xd9   : > { %2263 = vmatprep.mubr.f32.mxu0 %v11072_v7  ;;  %7191 = vmatmul.mubr.msk.f32.gmra.mrb[38].mxu1 %vm339_vm3, %v302_v27  ;;  %v329_v27 = vld [vmem:[%s8976_s18 + $0x1e8] sm:$0xff] }
  0xda   : > { %675 = vmatprep.mubr.f32.mxu1 %v11072_v7 }
  0xdc   : > { %7306 = vmatmul.mubr.msk.f32.gmra.mrb[36].mxu0 %vm339_vm3, %v1902_v30  ;;  %v1931_v30 = vld [vmem:[%s8976_s18 + $0x1f2] sm:$0xff] }
  0xdd   : > { %2269 = vmatprep.mubr.f32.mxu0 %v11072_v7  ;;  %7192 = vmatmul.mubr.msk.f32.gmra.mrb[40].mxu1 %vm339_vm3, %v303_v29  ;;  %v330_v29 = vld [vmem:[%s8976_s18 + $0x1f0] sm:$0xff] }
  0xde   : > { %681 = vmatprep.mubr.f32.mxu1 %v11072_v7 }
  0xe0   : > { %7307 = vmatmul.mubr.msk.f32.gmra.mrb[38].mxu0 %vm339_vm3, %v1903_v31  ;;  %v304_v31 = vld [vmem:[%s8976_s18 + $0xe0] sm:$0xff] }
  0xe1   : > { %2275 = vmatprep.mubr.f32.mxu0 %v11072_v7  ;;  %7193 = vmatmul.mubr.msk.f32.gmra.mrb[42].mxu1 %vm339_vm3, %v304_v31  ;;  %v1065_v31 = vld [vmem:[%s8976_s18 + $0x131] sm:$0xff] }
  0xe2   : > { %687 = vmatprep.mubr.f32.mxu1 %v11072_v7 }
  0xe4   : > { %7308 = vmatmul.mubr.msk.f32.gmra.mrb[40].mxu0 %vm339_vm3, %v1904_v32  ;;  %v7394_v32 = vld [vmem:[%s11065_s1 + $0x100] sm:$0xff] }
  0xe5   : > { %2281 = vmatprep.mubr.f32.mxu0 %v11072_v7 }
  0xe8   : > { %7309 = vmatmul.mubr.msk.f32.gmra.mrb[42].mxu0 %vm339_vm3, %v1905_v33  ;;  %v7396_v33 = vld [vmem:[%s11065_s1 + $0x110] sm:$0xff] }
  0xe9   : > { %2287 = vmatprep.mubr.f32.mxu0 %v11072_v7  ;;  %v7892_v37 = vpack.c.bf16 %v7396_v33, %v7394_v32  ;;  %v2759_v32 = vld [vmem:[%s8976_s18 + $0x123] sm:$0xff] }
  0xea   : > { %v1066_v33 = vld [vmem:[%s8976_s18 + $0x141] sm:$0xff] }
  0xec   : > { %7310 = vmatmul.mubr.msk.f32.gmra.mrb[44].mxu0 %vm339_vm3, %v1906_v34  ;;  %v7399_v34 = vld [vmem:[%s11065_s1 + $0x128] sm:$0xff] }
  0xed   : > { %2293 = vmatprep.mubr.f32.mxu0 %v11072_v7 }
  0xf0   : > { %7311 = vmatmul.mubr.msk.f32.gmra.mrb[46].mxu0 %vm339_vm3, %v1907_v35  ;;  %v7401_v35 = vld [vmem:[%s11065_s1 + $0x138] sm:$0xf] }
  0xf1   : > { %2299 = vmatprep.mubr.f32.mxu0 %v11072_v7  ;;  %v7894_v39 = vpack.c.bf16 %v7401_v35, %v7399_v34  ;;  %v2760_v34 = vld [vmem:[%s8976_s18 + $0x12b] sm:$0xff] }
  0xf2   : > { %v1067_v35 = vld [vmem:[%s8976_s18 + $0x149] sm:$0xff] }
  0xf4   : > { %7312 = vmatmul.mubr.msk.f32.gmra.mrb[48].mxu0 %vm339_vm3, %v1908_v38  ;;  %v305_v38 = vld [vmem:[%s8976_s18 + $0xe8] sm:$0xff] }
  0xf5   : > { %2305 = vmatprep.mubr.f32.mxu0 %v11072_v7  ;;  %7194 = vmatmul.mubr.msk.f32.gmra.mrb[44].mxu1 %vm339_vm3, %v305_v38  ;;  %v2762_v38 = vld [vmem:[%s8976_s18 + $0x143] sm:$0xff] }
  0xf6   : > { %693 = vmatprep.mubr.f32.mxu1 %v11072_v7 }
  0xf8   : > { %7313 = vmatmul.mubr.msk.f32.gmra.mrb[50].mxu0 %vm339_vm3, %v1909_v45  ;;  %v2734_v45 = vld [vmem:[%s8976_s18 + $0x13] sm:$0xff] }
  0xf9   : > { %2311 = vmatprep.mubr.f32.mxu0 %v11072_v7  ;;  %7195 = vmatmul.mubr.msk.f32.gmra.mrb[46].mxu1 %vm339_vm3, %v306_v44  ;;  %v2765_v44 = vld [vmem:[%s8976_s18 + $0x163] sm:$0xff] }
  0xfa   : > { %699 = vmatprep.mubr.f32.mxu1 %v11072_v7 }
  0xfc   : > { %7314 = vmatmul.mubr.msk.f32.gmra.mrb[52].mxu0 %vm339_vm3, %v1910_v50  ;;  %v2737_v50 = vld [vmem:[%s8976_s18 + $0x33] sm:$0xff] }
  0xfd   : > { %2317 = vmatprep.mubr.f32.mxu0 %v11072_v7  ;;  %7196 = vmatmul.mubr.msk.f32.gmra.mrb[48].mxu1 %vm339_vm3, %v307_v46  ;;  %v2766_v46 = vld [vmem:[%s8976_s18 + $0x16b] sm:$0xff] }
  0xfe   : > { %705 = vmatprep.mubr.f32.mxu1 %v11072_v7 }
 0x100   : > { %7315 = vmatmul.mubr.msk.f32.gmra.mrb[54].mxu0 %vm339_vm3, %v1911_v52  ;;  %v2738_v52 = vld [vmem:[%s8976_s18 + $0x43] sm:$0xff] }
 0x101   : > { %2323 = vmatprep.mubr.f32.mxu0 %v11072_v7  ;;  %7197 = vmatmul.mubr.msk.f32.gmra.mrb[50].mxu1 %vm339_vm3, %v308_v48  ;;  %v2767_v48 = vld [vmem:[%s8976_s18 + $0x173] sm:$0xff] }
 0x102   : > { %711 = vmatprep.mubr.f32.mxu1 %v11072_v7 }
 0x104   : > { %7316 = vmatmul.mubr.msk.f32.gmra.mrb[56].mxu0 %vm339_vm3, %v1912_v3  ;;  %v2739_v3 = vld [vmem:[%s8976_s18 + $0x4b] sm:$0xff] }
 0x105   : > { %2329 = vmatprep.mubr.f32.mxu0 %v11072_v7  ;;  %7198 = vmatmul.mubr.msk.f32.gmra.mrb[52].mxu1 %vm339_vm3, %v309_v49  ;;  %v2768_v49 = vld [vmem:[%s8976_s18 + $0x183] sm:$0xff] }
 0x106   : > { %717 = vmatprep.mubr.f32.mxu1 %v11072_v7 }
 0x108   : > { %7317 = vmatmul.mubr.msk.f32.gmra.mrb[58].mxu0 %vm339_vm3, %v1913_v8  ;;  %v2740_v8 = vld [vmem:[%s8976_s18 + $0x53] sm:$0xff] }
 0x109   : > { %2335 = vmatprep.mubr.f32.mxu0 %v11072_v7  ;;  %7199 = vmatmul.mubr.msk.f32.gmra.mrb[54].mxu1 %vm339_vm3, %v310_v51  ;;  %v2769_v51 = vld [vmem:[%s8976_s18 + $0x18b] sm:$0xff] }
 0x10a   : > { %723 = vmatprep.mubr.f32.mxu1 %v11072_v7 }
 0x10c   : > { %7318 = vmatmul.mubr.msk.f32.gmra.mrb[60].mxu0 %vm339_vm3, %v1914_v15  ;;  %v2741_v15 = vld [vmem:[%s8976_s18 + $0x63] sm:$0xff] }
 0x10d   : > { %2341 = vmatprep.mubr.f32.mxu0 %v11072_v7  ;;  %7200 = vmatmul.mubr.msk.f32.gmra.mrb[56].mxu1 %vm339_vm3, %v311_v53  ;;  %v2770_v53 = vld [vmem:[%s8976_s18 + $0x193] sm:$0xff] }
 0x10e   : > { %729 = vmatprep.mubr.f32.mxu1 %v11072_v7 }
 0x110   : > { %7319 = vmatmul.mubr.msk.f32.gmra.mrb[62].mxu0 %vm339_vm3, %v1915_v56  ;;  %v2742_v56 = vld [vmem:[%s8976_s18 + $0x6b] sm:$0xff] }
 0x111   : > { %2347 = vmatprep.mubr.f32.mxu0 %v11072_v7  ;;  %7201 = vmatmul.mubr.msk.f32.gmra.mrb[58].mxu1 %vm339_vm3, %v312_v54  ;;  %v2771_v54 = vld [vmem:[%s8976_s18 + $0x1a3] sm:$0xff] }
 0x112   : > { %735 = vmatprep.mubr.f32.mxu1 %v11072_v7 }
 0x114   : > { %7320 = vmatmul.mubr.msk.f32.gmra.mrb[64].mxu0 %vm339_vm3, %v1916_v58  ;;  %v2743_v58 = vld [vmem:[%s8976_s18 + $0x73] sm:$0xff] }
 0x115   : > { %2353 = vmatprep.mubr.f32.mxu0 %v11072_v7  ;;  %7202 = vmatmul.mubr.msk.f32.gmra.mrb[60].mxu1 %vm339_vm3, %v313_v12  ;;  %v2772_v12 = vld [vmem:[%s8976_s18 + $0x1ab] sm:$0xff] }
 0x116   : > { %741 = vmatprep.mubr.f32.mxu1 %v11072_v7 }
 0x118   : > { %7321 = vmatmul.mubr.msk.f32.gmra.mrb[66].mxu0 %vm339_vm3, %v1917_v60  ;;  %v2744_v60 = vld [vmem:[%s8976_s18 + $0x83] sm:$0xff] }
 0x119   : > { %2359 = vmatprep.mubr.f32.mxu0 %v11072_v7  ;;  %7203 = vmatmul.mubr.msk.f32.gmra.mrb[62].mxu1 %vm339_vm3, %v314_v55  ;;  %v2773_v55 = vld [vmem:[%s8976_s18 + $0x1b3] sm:$0xff] }
 0x11a   : > { %747 = vmatprep.mubr.f32.mxu1 %v11072_v7 }
 0x11c   : > { %7322 = vmatmul.mubr.msk.f32.gmra.mrb[68].mxu0 %vm339_vm3, %v1918_v62  ;;  %v2745_v62 = vld [vmem:[%s8976_s18 + $0x8b] sm:$0xff] }
 0x11d   : > { %2365 = vmatprep.mubr.f32.mxu0 %v11072_v7  ;;  %7204 = vmatmul.mubr.msk.f32.gmra.mrb[64].mxu1 %vm339_vm3, %v315_v57  ;;  %v2774_v57 = vld [vmem:[%s8976_s18 + $0x1c3] sm:$0xff] }
 0x11e   : > { %753 = vmatprep.mubr.f32.mxu1 %v11072_v7 }
 0x120   : > { %7323 = vmatmul.mubr.msk.f32.gmra.mrb[70].mxu0 %vm339_vm3, %v1919_v0  ;;  %v2746_v0 = vld [vmem:[%s8976_s18 + $0x93] sm:$0xff] }
 0x121   : > { %2371 = vmatprep.mubr.f32.mxu0 %v11072_v7  ;;  %7205 = vmatmul.mubr.msk.f32.gmra.mrb[66].mxu1 %vm339_vm3, %v316_v59  ;;  %v2775_v59 = vld [vmem:[%s8976_s18 + $0x1cb] sm:$0xff] }
 0x122   : > { %759 = vmatprep.mubr.f32.mxu1 %v11072_v7 }
 0x124   : > { %7324 = vmatmul.mubr.msk.f32.gmra.mrb[72].mxu0 %vm339_vm3, %v1920_v2  ;;  %v2747_v2 = vld [vmem:[%s8976_s18 + $0xa3] sm:$0xff] }
 0x125   : > { %2377 = vmatprep.mubr.f32.mxu0 %v11072_v7  ;;  %7206 = vmatmul.mubr.msk.f32.gmra.mrb[68].mxu1 %vm339_vm3, %v317_v61  ;;  %v2776_v61 = vld [vmem:[%s8976_s18 + $0x1d3] sm:$0xff] }
 0x126   : > { %765 = vmatprep.mubr.f32.mxu1 %v11072_v7 }
 0x128   : > { %7325 = vmatmul.mubr.msk.f32.gmra.mrb[74].mxu0 %vm339_vm3, %v1921_v6  ;;  %v2748_v6 = vld [vmem:[%s8976_s18 + $0xab] sm:$0xff] }
 0x129   : > { %2383 = vmatprep.mubr.f32.mxu0 %v11072_v7  ;;  %7207 = vmatmul.mubr.msk.f32.gmra.mrb[70].mxu1 %vm339_vm3, %v318_v63  ;;  %v2777_v63 = vld [vmem:[%s8976_s18 + $0x1e3] sm:$0xff] }
 0x12a   : > { %771 = vmatprep.mubr.f32.mxu1 %v11072_v7 }
 0x12c   : > { %7326 = vmatmul.mubr.msk.f32.gmra.mrb[76].mxu0 %vm339_vm3, %v1922_v10  ;;  %v2749_v10 = vld [vmem:[%s8976_s18 + $0xb3] sm:$0xff] }
 0x12d   : > { %2389 = vmatprep.mubr.f32.mxu0 %v11072_v7  ;;  %7208 = vmatmul.mubr.msk.f32.gmra.mrb[72].mxu1 %vm339_vm3, %v319_v1  ;;  %v2779_v1 = vld [vmem:[%s8976_s18 + $0x1f3] sm:$0xff] }
 0x12e   : > { %777 = vmatprep.mubr.f32.mxu1 %v11072_v7 }
 0x130   : > { %7327 = vmatmul.mubr.msk.f32.gmra.mrb[78].mxu0 %vm339_vm3, %v1923_v13  ;;  %v2750_v13 = vld [vmem:[%s8976_s18 + $0xc3] sm:$0xff] }
 0x131   : > { %2395 = vmatprep.mubr.f32.mxu0 %v11072_v7  ;;  %7209 = vmatmul.mubr.msk.f32.gmra.mrb[74].mxu1 %vm339_vm3, %v320_v4  ;;  %v3581_v4 = vld [vmem:[%s8976_s18 + $0xc] sm:$0xff] }
 0x132   : > { %783 = vmatprep.mubr.f32.mxu1 %v11072_v7 }
 0x134   : > { %7328 = vmatmul.mubr.msk.f32.gmra.mrb[80].mxu0 %vm339_vm3, %v1924_v16  ;;  %v2751_v16 = vld [vmem:[%s8976_s18 + $0xcb] sm:$0xff] }
 0x135   : > { %2401 = vmatprep.mubr.f32.mxu0 %v11072_v7  ;;  %7210 = vmatmul.mubr.msk.f32.gmra.mrb[76].mxu1 %vm339_vm3, %v321_v9  ;;  %v3582_v9 = vld [vmem:[%s8976_s18 + $0x14] sm:$0xff] }
 0x136   : > { %789 = vmatprep.mubr.f32.mxu1 %v11072_v7 }
 0x138   : > { %7329 = vmatmul.mubr.msk.f32.gmra.mrb[82].mxu0 %vm339_vm3, %v1925_v18  ;;  %v2752_v18 = vld [vmem:[%s8976_s18 + $0xd3] sm:$0xff] }
 0x139   : > { %2407 = vmatprep.mubr.f32.mxu0 %v11072_v7  ;;  %7211 = vmatmul.mubr.msk.f32.gmra.mrb[78].mxu1 %vm339_vm3, %v322_v11 }
 0x13a   : > { %795 = vmatprep.mubr.f32.mxu1 %v11072_v7 }
 0x13c   : > { %7330 = vmatmul.mubr.msk.f32.gmra.mrb[84].mxu0 %vm339_vm3, %v1926_v20  ;;  %v2753_v20 = vld [vmem:[%s8976_s18 + $0xe3] sm:$0xff] }
 0x13d   : > { %2413 = vmatprep.mubr.f32.mxu0 %v11072_v7  ;;  %7212 = vmatmul.mubr.msk.f32.gmra.mrb[80].mxu1 %vm339_vm3, %v323_v14 }
 0x13e   : > { %801 = vmatprep.mubr.f32.mxu1 %v11072_v7 }
 0x140   : > { %7331 = vmatmul.mubr.msk.f32.gmra.mrb[86].mxu0 %vm339_vm3, %v1927_v22  ;;  %v2754_v22 = vld [vmem:[%s8976_s18 + $0xeb] sm:$0xff] }
 0x141   : > { %2419 = vmatprep.mubr.f32.mxu0 %v11072_v7  ;;  %7213 = vmatmul.mubr.msk.f32.gmra.mrb[82].mxu1 %vm339_vm3, %v324_v17  ;;  %v3584_v17 = vld [vmem:[%s8976_s18 + $0x2c] sm:$0xff] }
 0x142   : > { %807 = vmatprep.mubr.f32.mxu1 %v11072_v7 }
 0x144   : > { %7332 = vmatmul.mubr.msk.f32.gmra.mrb[88].mxu0 %vm339_vm3, %v1928_v24  ;;  %v2755_v24 = vld [vmem:[%s8976_s18 + $0xf3] sm:$0xff] }
 0x145   : > { %2425 = vmatprep.mubr.f32.mxu0 %v11072_v7  ;;  %7214 = vmatmul.mubr.msk.f32.gmra.mrb[84].mxu1 %vm339_vm3, %v325_v19 }
 0x146   : > { %813 = vmatprep.mubr.f32.mxu1 %v11072_v7 }
 0x148   : > { %7333 = vmatmul.mubr.msk.f32.gmra.mrb[90].mxu0 %vm339_vm3, %v1929_v26  ;;  %v2756_v26 = vld [vmem:[%s8976_s18 + $0x103] sm:$0xff] }
 0x149   : > { %2431 = vmatprep.mubr.f32.mxu0 %v11072_v7  ;;  %7215 = vmatmul.mubr.msk.f32.gmra.mrb[86].mxu1 %vm339_vm3, %v326_v21 }
 0x14a   : > { %819 = vmatprep.mubr.f32.mxu1 %v11072_v7 }
 0x14c   : > { %7334 = vmatmul.mubr.msk.f32.gmra.mrb[92].mxu0 %vm339_vm3, %v1930_v28  ;;  %v2757_v28 = vld [vmem:[%s8976_s18 + $0x10b] sm:$0xff] }
 0x14d   : > { %2437 = vmatprep.mubr.f32.mxu0 %v11072_v7  ;;  %7216 = vmatmul.mubr.msk.f32.gmra.mrb[88].mxu1 %vm339_vm3, %v327_v23  ;;  %v3586_v23 = vld [vmem:[%s8976_s18 + $0x44] sm:$0xff] }
 0x14e   : > { %825 = vmatprep.mubr.f32.mxu1 %v11072_v7 }
 0x150   : > { %7335 = vmatmul.mubr.msk.f32.gmra.mrb[94].mxu0 %vm339_vm3, %v1931_v30  ;;  %v2758_v30 = vld [vmem:[%s8976_s18 + $0x113] sm:$0xff] }
 0x151   : > { %3003 = vmatprep.mubr.f32.mxu0 %v11072_v7  ;;  %7217 = vmatmul.mubr.msk.f32.gmra.mrb[90].mxu1 %vm339_vm3, %v328_v25 }
 0x152   : > { %831 = vmatprep.mubr.f32.mxu1 %v11072_v7 }
 0x154   : > { %7346 = vmatmul.mubr.msk.f32.vlgmr.msra.gmra.mrb[0].mxu0 %vm339_vm3, %v2732_v36  ;;  %v2761_v36 = vld [vmem:[%s8976_s18 + $0x133] sm:$0xff] }
 0x155   : > { %7893 = vmatpush1.bf16.msra.mxu0 %v7892_v37  ;;  %3009 = vmatprep.mubr.f32.mxu0 %v11072_v7  ;;  %v1068_v37 = vld [vmem:[%s8976_s18 + $0x151] sm:$0xff] }
 0x156   : > { %7896 = vmatprep.subr.msk.bf16.mxu0 %vm8925_vm2, %v7894_v39  ;;  %7218 = vmatmul.mubr.msk.f32.gmra.mrb[92].mxu1 %vm339_vm3, %v329_v27  ;;  %v1069_v39 = vld [vmem:[%s8976_s18 + $0x161] sm:$0xff] }
 0x157   : > { %837 = vmatprep.mubr.f32.mxu1 %v11072_v7 }
 0x158   : > { %7347 = vmatmul.mubr.msk.f32.gmra.mrb[2].mxu0 %vm339_vm3, %v2733_v42  ;;  %v2764_v42 = vld [vmem:[%s8976_s18 + $0x153] sm:$0xff] }
 0x159   : > { %3015 = vmatprep.mubr.f32.mxu0 %v11072_v7  ;;  %7899 = vmatpush1.bf16.msk.msra.mxu0 %vm8925_vm2, %v7897_v43  ;;  %v1071_v43 = vld [vmem:[%s8976_s18 + $0x171] sm:$0xff] }
 0x15a   : > { %7219 = vmatmul.mubr.msk.f32.gmra.mrb[94].mxu1 %vm339_vm3, %v330_v29  ;;  %v3588_v29 = vld [vmem:[%s8976_s18 + $0x54] sm:$0xff] }
 0x15b   : > { %1481 = vmatprep.mubr.f32.mxu1 %v11072_v7 }
 0x15c   : > { %7348 = vmatmul.mubr.msk.f32.gmra.mrb[4].mxu0 %vm339_vm3, %v2734_v45  ;;  %v1072_v45 = vld [vmem:[%s8976_s18 + $0x181] sm:$0xff] }
 0x15d   : > { %3021 = vmatprep.mubr.f32.mxu0 %v11072_v7 }
 0x15e   : > { %7259 = vmatmul.mubr.msk.f32.vlgmr.msra.gmra.mrb[58].mxu1 %vm339_vm3, %v1065_v31 }
 0x15f   : > { %1487 = vmatprep.mubr.f32.mxu1 %v11072_v7 }
 0x160   : > { %7349 = vmatmul.mubr.msk.f32.gmra.mrb[6].mxu0 %vm339_vm3, %v2735_v47  ;;  %v1073_v47 = vld [vmem:[%s8976_s18 + $0x189] sm:$0xff] }
 0x161   : > { %3027 = vmatprep.mubr.f32.mxu0 %v11072_v7 }
 0x162   : > { %7260 = vmatmul.mubr.msk.f32.gmra.mrb[60].mxu1 %vm339_vm3, %v1066_v33 }
 0x163   : > { %1493 = vmatprep.mubr.f32.mxu1 %v11072_v7 }
 0x164   : > { %7350 = vmatmul.mubr.msk.f32.gmra.mrb[8].mxu0 %vm339_vm3, %v2736_v5  ;;  %v1074_v5 = vld [vmem:[%s8976_s18 + $0x191] sm:$0xff] }
 0x165   : > { %3033 = vmatprep.mubr.f32.mxu0 %v11072_v7 }
 0x166   : > { %7261 = vmatmul.mubr.msk.f32.gmra.mrb[62].mxu1 %vm339_vm3, %v1067_v35  ;;  %v3590_v35 = vld [vmem:[%s8976_s18 + $0x6c] sm:$0xff] }
 0x167   : > { %1499 = vmatprep.mubr.f32.mxu1 %v11072_v7 }
 0x168   : > { %7351 = vmatmul.mubr.msk.f32.gmra.mrb[10].mxu0 %vm339_vm3, %v2737_v50  ;;  %v1075_v50 = vld [vmem:[%s8976_s18 + $0x1a1] sm:$0xff] }
 0x169   : > { %3039 = vmatprep.mubr.f32.mxu0 %v11072_v7 }
 0x16a   : > { %7262 = vmatmul.mubr.msk.f32.gmra.mrb[64].mxu1 %vm339_vm3, %v1068_v37 }
 0x16b   : > { %1505 = vmatprep.mubr.f32.mxu1 %v11072_v7 }
 0x16c   : > { %7352 = vmatmul.mubr.msk.f32.gmra.mrb[12].mxu0 %vm339_vm3, %v2738_v52  ;;  %v1076_v52 = vld [vmem:[%s8976_s18 + $0x1a9] sm:$0xff] }
 0x16d   : > { %3045 = vmatprep.mubr.f32.mxu0 %v11072_v7 }
 0x16e   : > { %7263 = vmatmul.mubr.msk.f32.gmra.mrb[66].mxu1 %vm339_vm3, %v1069_v39 }
 0x16f   : > { %1511 = vmatprep.mubr.f32.mxu1 %v11072_v7 }
 0x170   : > { %7353 = vmatmul.mubr.msk.f32.gmra.mrb[14].mxu0 %vm339_vm3, %v2739_v3  ;;  %v1077_v3 = vld [vmem:[%s8976_s18 + $0x1b1] sm:$0xff] }
 0x171   : > { %3051 = vmatprep.mubr.f32.mxu0 %v11072_v7 }
 0x172   : > { %7264 = vmatmul.mubr.msk.f32.gmra.mrb[68].mxu1 %vm339_vm3, %v1070_v41  ;;  %v3592_v41 = vld [vmem:[%s8976_s18 + $0x84] sm:$0xff] }
 0x173   : > { %1517 = vmatprep.mubr.f32.mxu1 %v11072_v7 }
 0x174   : > { %7354 = vmatmul.mubr.msk.f32.gmra.mrb[16].mxu0 %vm339_vm3, %v2740_v8  ;;  %v1078_v8 = vld [vmem:[%s8976_s18 + $0x1c1] sm:$0xff] }
 0x175   : > { %3057 = vmatprep.mubr.f32.mxu0 %v11072_v7 }
 0x176   : > { %7265 = vmatmul.mubr.msk.f32.gmra.mrb[70].mxu1 %vm339_vm3, %v1071_v43 }
 0x177   : > { %1523 = vmatprep.mubr.f32.mxu1 %v11072_v7 }
 0x178   : > { %7355 = vmatmul.mubr.msk.f32.gmra.mrb[18].mxu0 %vm339_vm3, %v2741_v15  ;;  %v1079_v15 = vld [vmem:[%s8976_s18 + $0x1c9] sm:$0xff] }
 0x179   : > { %3063 = vmatprep.mubr.f32.mxu0 %v11072_v7 }
 0x17a   : > { %7266 = vmatmul.mubr.msk.f32.gmra.mrb[72].mxu1 %vm339_vm3, %v1072_v45 }
 0x17b   : > { %1529 = vmatprep.mubr.f32.mxu1 %v11072_v7 }
 0x17c   : > { %7356 = vmatmul.mubr.msk.f32.gmra.mrb[20].mxu0 %vm339_vm3, %v2742_v56  ;;  %v1080_v56 = vld [vmem:[%s8976_s18 + $0x1d1] sm:$0xff] }
 0x17d   : > { %3069 = vmatprep.mubr.f32.mxu0 %v11072_v7 }
 0x17e   : > { %7267 = vmatmul.mubr.msk.f32.gmra.mrb[74].mxu1 %vm339_vm3, %v1073_v47  ;;  %v3594_v47 = vld [vmem:[%s8976_s18 + $0x94] sm:$0xff] }
 0x17f   : > { %1535 = vmatprep.mubr.f32.mxu1 %v11072_v7 }
 0x180   : > { %7357 = vmatmul.mubr.msk.f32.gmra.mrb[22].mxu0 %vm339_vm3, %v2743_v58  ;;  %v1081_v58 = vld [vmem:[%s8976_s18 + $0x1e1] sm:$0xff] }
 0x181   : > { %3075 = vmatprep.mubr.f32.mxu0 %v11072_v7 }
 0x182   : > { %7268 = vmatmul.mubr.msk.f32.gmra.mrb[76].mxu1 %vm339_vm3, %v1074_v5 }
 0x183   : > { %1541 = vmatprep.mubr.f32.mxu1 %v11072_v7 }
 0x184   : > { %7358 = vmatmul.mubr.msk.f32.gmra.mrb[24].mxu0 %vm339_vm3, %v2744_v60  ;;  %v1082_v60 = vld [vmem:[%s8976_s18 + $0x1e9] sm:$0xff] }
 0x185   : > { %3081 = vmatprep.mubr.f32.mxu0 %v11072_v7 }
 0x186   : > { %7269 = vmatmul.mubr.msk.f32.gmra.mrb[78].mxu1 %vm339_vm3, %v1075_v50 }
 0x187   : > { %1547 = vmatprep.mubr.f32.mxu1 %v11072_v7 }
 0x188   : > { %7359 = vmatmul.mubr.msk.f32.gmra.mrb[26].mxu0 %vm339_vm3, %v2745_v62  ;;  %v1083_v62 = vld [vmem:[%s8976_s18 + $0x1f1] sm:$0xff] }
 0x189   : > { %3087 = vmatprep.mubr.f32.mxu0 %v11072_v7 }
 0x18a   : > { %7270 = vmatmul.mubr.msk.f32.gmra.mrb[80].mxu1 %vm339_vm3, %v1076_v52  ;;  %v3596_v52 = vld [vmem:[%s8976_s18 + $0xac] sm:$0xff] }
 0x18b   : > { %1553 = vmatprep.mubr.f32.mxu1 %v11072_v7 }
 0x18c   : > { %7360 = vmatmul.mubr.msk.f32.gmra.mrb[28].mxu0 %vm339_vm3, %v2746_v0  ;;  %v2778_v0 = vld [vmem:[%s8976_s18 + $0x1eb] sm:$0xff] }
 0x18d   : > { %3093 = vmatprep.mubr.f32.mxu0 %v11072_v7 }
 0x18e   : > { %7271 = vmatmul.mubr.msk.f32.gmra.mrb[82].mxu1 %vm339_vm3, %v1077_v3 }
 0x18f   : > { %1559 = vmatprep.mubr.f32.mxu1 %v11072_v7 }
 0x190   : > { %7361 = vmatmul.mubr.msk.f32.gmra.mrb[30].mxu0 %vm339_vm3, %v2747_v2  ;;  %v3580_v2 = vld [vmem:[%s8976_s18 + $0x4] sm:$0xff] }
 0x191   : > { %3099 = vmatprep.mubr.f32.mxu0 %v11072_v7 }
 0x192   : > { %7272 = vmatmul.mubr.msk.f32.gmra.mrb[84].mxu1 %vm339_vm3, %v1078_v8 }
 0x193   : > { %1565 = vmatprep.mubr.f32.mxu1 %v11072_v7 }
 0x194   : > { %7362 = vmatmul.mubr.msk.f32.gmra.mrb[32].mxu0 %vm339_vm3, %v2748_v6  ;;  %v9664_v6 = vpop.f32.mrb[0].mxu1 }
 0x195   : > { %3105 = vmatprep.mubr.f32.mxu0 %v11072_v7 }
 0x196   : > { %7273 = vmatmul.mubr.msk.f32.gmra.mrb[86].mxu1 %vm339_vm3, %v1079_v15 }
 0x197   : > { %1571 = vmatprep.mubr.f32.mxu1 %v11072_v7 }
 0x198   : > { %7363 = vmatmul.mubr.msk.f32.gmra.mrb[34].mxu0 %vm339_vm3, %v2749_v10  ;;  %v9668_v10 = vpop.f32.mrb[1].mxu1 }
 0x199   : > { %3111 = vmatprep.mubr.f32.mxu0 %v11072_v7  ;;  %v9671_v11 = vpop.f32.mrb[2].mxu1 }
 0x19a   : > { %7274 = vmatmul.mubr.msk.f32.gmra.mrb[88].mxu1 %vm339_vm3, %v1080_v56  ;;  %v9675_v14 = vpop.f32.mrb[3].mxu1 }
 0x19b   : > { %1577 = vmatprep.mubr.f32.mxu1 %v11072_v7 }
 0x19c   : > { %7364 = vmatmul.mubr.msk.f32.gmra.mrb[36].mxu0 %vm339_vm3, %v2750_v13  ;;  %v3583_v13 = vld [vmem:[%s8976_s18 + $0x24] sm:$0xff] }
 0x19d   : > { %3117 = vmatprep.mubr.f32.mxu0 %v11072_v7 }
 0x19e   : > { %7275 = vmatmul.mubr.msk.f32.gmra.mrb[90].mxu1 %vm339_vm3, %v1081_v58  ;;  %v3598_v58 = vld [vmem:[%s8976_s18 + $0xc4] sm:$0xff] }
 0x19f   : > { %1583 = vmatprep.mubr.f32.mxu1 %v11072_v7 }
 0x1a0   : > { %7365 = vmatmul.mubr.msk.f32.gmra.mrb[38].mxu0 %vm339_vm3, %v2751_v16  ;;  %v9678_v16 = vpop.f32.mrb[4].mxu1 }
 0x1a1   : > { %3123 = vmatprep.mubr.f32.mxu0 %v11072_v7 }
 0x1a2   : > { %7276 = vmatmul.mubr.msk.f32.gmra.mrb[92].mxu1 %vm339_vm3, %v1082_v60 }
 0x1a3   : > { %1589 = vmatprep.mubr.f32.mxu1 %v11072_v7 }
 0x1a4   : > { %7366 = vmatmul.mubr.msk.f32.gmra.mrb[40].mxu0 %vm339_vm3, %v2752_v18  ;;  %v9682_v18 = vpop.f32.mrb[5].mxu1 }
 0x1a5   : > { %3129 = vmatprep.mubr.f32.mxu0 %v11072_v7  ;;  %v9685_v19 = vpop.f32.mrb[6].mxu1 }
 0x1a6   : > { %7277 = vmatmul.mubr.msk.f32.gmra.mrb[94].mxu1 %vm339_vm3, %v1083_v62  ;;  %v9689_v21 = vpop.f32.mrb[7].mxu1  ;;  %v4805_v62 = vld [vmem:[%s11067_s3 + $0x18] sm:$0xff] }
 0x1a7   : > { %4898 = vmatprep.mubr.f32.mxu1 %v11072_v7 }
 0x1a8   : > { %7367 = vmatmul.mubr.msk.f32.gmra.mrb[42].mxu0 %vm339_vm3, %v2753_v20  ;;  %v3585_v20 = vld [vmem:[%s8976_s18 + $0x34] sm:$0xff] }
 0x1a9   : > { %3135 = vmatprep.mubr.f32.mxu0 %v11072_v7 }
 0x1ac   : > { %7368 = vmatmul.mubr.msk.f32.gmra.mrb[44].mxu0 %vm339_vm3, %v2754_v22  ;;  %v9692_v22 = vpop.f32.mrb[8].mxu1 }
 0x1ad   : > { %3141 = vmatprep.mubr.f32.mxu0 %v11072_v7 }
 0x1b0   : > { %7369 = vmatmul.mubr.msk.f32.gmra.mrb[46].mxu0 %vm339_vm3, %v2755_v24  ;;  %v9696_v24 = vpop.f32.mrb[9].mxu1 }
 0x1b1   : > { %3147 = vmatprep.mubr.f32.mxu0 %v11072_v7  ;;  %v9699_v25 = vpop.f32.mrb[10].mxu1 }
 0x1b2   : > { %v9703_v27 = vpop.f32.mrb[11].mxu1 }
 0x1b4   : > { %7370 = vmatmul.mubr.msk.f32.gmra.mrb[48].mxu0 %vm339_vm3, %v2756_v26  ;;  %v3587_v26 = vld [vmem:[%s8976_s18 + $0x4c] sm:$0xff] }
 0x1b5   : > { %3153 = vmatprep.mubr.f32.mxu0 %v11072_v7 }
 0x1b8   : > { %7371 = vmatmul.mubr.msk.f32.gmra.mrb[50].mxu0 %vm339_vm3, %v2757_v28  ;;  %v9706_v28 = vpop.f32.mrb[12].mxu1 }
 0x1b9   : > { %3159 = vmatprep.mubr.f32.mxu0 %v11072_v7 }
 0x1bc   : > { %7372 = vmatmul.mubr.msk.f32.gmra.mrb[52].mxu0 %vm339_vm3, %v2758_v30  ;;  %v9710_v30 = vpop.f32.mrb[13].mxu1 }
 0x1bd   : > { %3165 = vmatprep.mubr.f32.mxu0 %v11072_v7  ;;  %v9713_v31 = vpop.f32.mrb[14].mxu1 }
 0x1be   : > { %v9717_v33 = vpop.f32.mrb[15].mxu1 }
 0x1c0   : > { %7373 = vmatmul.mubr.msk.f32.gmra.mrb[54].mxu0 %vm339_vm3, %v2759_v32  ;;  %v3589_v32 = vld [vmem:[%s8976_s18 + $0x64] sm:$0xff] }
 0x1c1   : > { %3171 = vmatprep.mubr.f32.mxu0 %v11072_v7 }
 0x1c4   : > { %7374 = vmatmul.mubr.msk.f32.gmra.mrb[56].mxu0 %vm339_vm3, %v2760_v34  ;;  %v9720_v34 = vpop.f32.mrb[16].mxu1 }
 0x1c5   : > { %3177 = vmatprep.mubr.f32.mxu0 %v11072_v7 }
 0x1c8   : > { %7375 = vmatmul.mubr.msk.f32.gmra.mrb[58].mxu0 %vm339_vm3, %v2761_v36  ;;  %v9724_v36 = vpop.f32.mrb[17].mxu1 }
 0x1c9   : > { %3183 = vmatprep.mubr.f32.mxu0 %v11072_v7  ;;  %v9727_v37 = vpop.f32.mrb[18].mxu1 }
 0x1ca   : > { %v9731_v39 = vpop.f32.mrb[19].mxu1 }
 0x1cc   : > { %7376 = vmatmul.mubr.msk.f32.gmra.mrb[60].mxu0 %vm339_vm3, %v2762_v38  ;;  %v3591_v38 = vld [vmem:[%s8976_s18 + $0x74] sm:$0xff] }
 0x1cd   : > { %3189 = vmatprep.mubr.f32.mxu0 %v11072_v7 }
 0x1d0   : > { %7377 = vmatmul.mubr.msk.f32.gmra.mrb[62].mxu0 %vm339_vm3, %v2763_v40  ;;  %v9734_v40 = vpop.f32.mrb[20].mxu1 }
 0x1d1   : > { %3195 = vmatprep.mubr.f32.mxu0 %v11072_v7 }
 0x1d4   : > { %7378 = vmatmul.mubr.msk.f32.gmra.mrb[64].mxu0 %vm339_vm3, %v2764_v42  ;;  %v9738_v42 = vpop.f32.mrb[21].mxu1 }
 0x1d5   : > { %3201 = vmatprep.mubr.f32.mxu0 %v11072_v7  ;;  %v9741_v43 = vpop.f32.mrb[22].mxu1 }
 0x1d6   : > { %v9745_v45 = vpop.f32.mrb[23].mxu1 }
 0x1d8   : > { %7379 = vmatmul.mubr.msk.f32.gmra.mrb[66].mxu0 %vm339_vm3, %v2765_v44  ;;  %v3593_v44 = vld [vmem:[%s8976_s18 + $0x8c] sm:$0xff] }
 0x1d9   : > { %3207 = vmatprep.mubr.f32.mxu0 %v11072_v7 }
 0x1dc   : > { %7380 = vmatmul.mubr.msk.f32.gmra.mrb[68].mxu0 %vm339_vm3, %v2766_v46  ;;  %v9748_v46 = vpop.f32.mrb[24].mxu1 }
 0x1dd   : > { %3213 = vmatprep.mubr.f32.mxu0 %v11072_v7 }
 0x1e0   : > { %7381 = vmatmul.mubr.msk.f32.gmra.mrb[70].mxu0 %vm339_vm3, %v2767_v48  ;;  %v9752_v48 = vpop.f32.mrb[25].mxu1 }
 0x1e1   : > { %3219 = vmatprep.mubr.f32.mxu0 %v11072_v7  ;;  %v9755_v5 = vpop.f32.mrb[26].mxu1 }
 0x1e2   : > { %v9759_v50 = vpop.f32.mrb[27].mxu1 }
 0x1e4   : > { %7382 = vmatmul.mubr.msk.f32.gmra.mrb[72].mxu0 %vm339_vm3, %v2768_v49  ;;  %v3595_v49 = vld [vmem:[%s8976_s18 + $0xa4] sm:$0xff] }
 0x1e5   : > { %3225 = vmatprep.mubr.f32.mxu0 %v11072_v7 }
 0x1e8   : > { %7383 = vmatmul.mubr.msk.f32.gmra.mrb[74].mxu0 %vm339_vm3, %v2769_v51  ;;  %v9762_v51 = vpop.f32.mrb[28].mxu1 }
 0x1e9   : > { %3231 = vmatprep.mubr.f32.mxu0 %v11072_v7 }
 0x1ec   : > { %7384 = vmatmul.mubr.msk.f32.gmra.mrb[76].mxu0 %vm339_vm3, %v2770_v53  ;;  %v9766_v53 = vpop.f32.mrb[29].mxu1 }
 0x1ed   : > { %3237 = vmatprep.mubr.f32.mxu0 %v11072_v7  ;;  %v9768_v3 = vpop.f32.mrb[30].mxu1 }
 0x1f0   : > { %7385 = vmatmul.mubr.msk.f32.gmra.mrb[78].mxu0 %vm339_vm3, %v2771_v54  ;;  %v9770_v54 = vpop.f32.mrb[31].mxu1 }
 0x1f1   : > { %3243 = vmatprep.mubr.f32.mxu0 %v11072_v7  ;;  %v9773_v8 = vpop.f32.mrb[32].mxu1 }
 0x1f2   : > { %v9777_v15 = vpop.f32.mrb[33].mxu1 }
 0x1f4   : > { %7386 = vmatmul.mubr.msk.f32.gmra.mrb[80].mxu0 %vm339_vm3, %v2772_v12  ;;  %v3597_v12 = vld [vmem:[%s8976_s18 + $0xb4] sm:$0xff] }
 0x1f5   : > { %3249 = vmatprep.mubr.f32.mxu0 %v11072_v7 }
 0x1f8   : > { %7387 = vmatmul.mubr.msk.f32.gmra.mrb[82].mxu0 %vm339_vm3, %v2773_v55  ;;  %v9779_v55 = vpop.f32.mrb[34].mxu1 }
 0x1f9   : > { %3255 = vmatprep.mubr.f32.mxu0 %v11072_v7  ;;  %v9781_v56 = vpop.f32.mrb[35].mxu1 }
 0x1fc   : > { %7388 = vmatmul.mubr.msk.f32.gmra.mrb[84].mxu0 %vm339_vm3, %v2774_v57  ;;  %v9784_v57 = vpop.f32.mrb[36].mxu1 }
 0x1fd   : > { %3261 = vmatprep.mubr.f32.mxu0 %v11072_v7 }
 0x200   : > { %7389 = vmatmul.mubr.msk.f32.gmra.mrb[86].mxu0 %vm339_vm3, %v2775_v59  ;;  %v9788_v59 = vpop.f32.mrb[37].mxu1 }
 0x201   : > { %3267 = vmatprep.mubr.f32.mxu0 %v11072_v7  ;;  %v9790_v60 = vpop.f32.mrb[38].mxu1 }
 0x204   : > { %7390 = vmatmul.mubr.msk.f32.gmra.mrb[88].mxu0 %vm339_vm3, %v2776_v61  ;;  %v4803_v61 = vld [vmem:[%s11067_s3 + $0x8] sm:$0xff] }
 0x205   : > { %3273 = vmatprep.mubr.f32.mxu0 %v11072_v7 }
 0x208   : > { %7391 = vmatmul.mubr.msk.f32.gmra.mrb[90].mxu0 %vm339_vm3, %v2777_v63  ;;  %v3599_v63 = vld [vmem:[%s8976_s18 + $0xcc] sm:$0xff] }
 0x209   : > { %3279 = vmatprep.mubr.f32.mxu0 %v11072_v7 }
 0x20c   : > { %7392 = vmatmul.mubr.msk.f32.gmra.mrb[92].mxu0 %vm339_vm3, %v2778_v0  ;;  %v7900_v0 = vpack.c.bf16 %v4805_v62, %v4803_v61  ;;  %v3602_v61 = vld [vmem:[%s8976_s18 + $0xec] sm:$0xff] }
 0x20d   : > { %3285 = vmatprep.mubr.f32.mxu0 %v11072_v7 }
 0x20e   : > { %7901 = vmatprep.subr.bf16.mxu1 %v7900_v0  ;;  %v4816_v0 = vld [vmem:[%s11067_s3 + $0x70] sm:$0xff] }
 0x210   : > { %7393 = vmatmul.mubr.msk.f32.gmra.mrb[94].mxu0 %vm339_vm3, %v2779_v1  ;;  %v4802_v1 = vld [vmem:[%s11067_s3] sm:$0xff] }
 0x211   : > { %3851 = vmatprep.mubr.f32.mxu0 %v11072_v7 }
 0x214   : > { %7404 = vmatmul.mubr.msk.f32.vlgmr.msra.gmra.mrb[0].mxu0 %vm339_vm3, %v3580_v2  ;;  %v4804_v2 = vld [vmem:[%s11067_s3 + $0x10] sm:$0xff] }
 0x215   : > { %3857 = vmatprep.mubr.f32.mxu0 %v11072_v7 }
 0x218   : > { %7405 = vmatmul.mubr.msk.f32.gmra.mrb[2].mxu0 %vm339_vm3, %v3581_v4  ;;  %v7902_v4 = vpack.c.bf16 %v4804_v2, %v4802_v1 }
 0x219   : > { %3863 = vmatprep.mubr.f32.mxu0 %v11072_v7 }
 0x21a   : > { %7903 = vmatpush1.bf16.msra.mxu1 %v7902_v4 }
 0x21c   : > { %7406 = vmatmul.mubr.msk.f32.gmra.mrb[4].mxu0 %vm339_vm3, %v3582_v9  ;;  %v4807_v9 = vld [vmem:[%s11067_s3 + $0x28] sm:$0xff] }
 0x21d   : > { %3869 = vmatprep.mubr.f32.mxu0 %v11072_v7 }
 0x220   : > { %7407 = vmatmul.mubr.msk.f32.gmra.mrb[6].mxu0 %vm339_vm3, %v3583_v13  ;;  %v4809_v13 = vld [vmem:[%s11067_s3 + $0x38] sm:$0xff] }
 0x221   : > { %3875 = vmatprep.mubr.f32.mxu0 %v11072_v7 }
 0x224   : > { %7408 = vmatmul.mubr.msk.f32.gmra.mrb[8].mxu0 %vm339_vm3, %v3584_v17  ;;  %v3600_v17 = vld [vmem:[%s8976_s18 + $0xd4] sm:$0xff] }
 0x225   : > { %3881 = vmatprep.mubr.f32.mxu0 %v11072_v7 }
 0x228   : > { %7409 = vmatmul.mubr.msk.f32.gmra.mrb[10].mxu0 %vm339_vm3, %v3585_v20  ;;  %v7904_v20 = vpack.c.bf16 %v4809_v13, %v4807_v9  ;;  %v4819_v9 = vld [vmem:[%s11067_s3 + $0x88] sm:$0xff]  ;;  %v4821_v13 = vld [vmem:[%s11067_s3 + $0x98] sm:$0xff] }
 0x229   : > { %3887 = vmatprep.mubr.f32.mxu0 %v11072_v7 }
 0x22a   : > { %7905 = vmatprep.subr.bf16.mxu1 %v7904_v20  ;;  %v7916_v20 = vpack.c.bf16 %v4821_v13, %v4819_v9 }
 0x22c   : > { %7410 = vmatmul.mubr.msk.f32.gmra.mrb[12].mxu0 %vm339_vm3, %v3586_v23  ;;  %v4806_v23 = vld [vmem:[%s11067_s3 + $0x20] sm:$0xff] }
 0x22d   : > { %3893 = vmatprep.mubr.f32.mxu0 %v11072_v7 }
 0x230   : > { %7411 = vmatmul.mubr.msk.f32.gmra.mrb[14].mxu0 %vm339_vm3, %v3587_v26  ;;  %v4808_v26 = vld [vmem:[%s11067_s3 + $0x30] sm:$0xff] }
 0x231   : > { %3899 = vmatprep.mubr.f32.mxu0 %v11072_v7 }
 0x234   : > { %7412 = vmatmul.mubr.msk.f32.gmra.mrb[16].mxu0 %vm339_vm3, %v3588_v29  ;;  %v7906_v29 = vpack.c.bf16 %v4808_v26, %v4806_v23  ;;  %v4818_v23 = vld [vmem:[%s11067_s3 + $0x80] sm:$0xff]  ;;  %v4820_v26 = vld [vmem:[%s11067_s3 + $0x90] sm:$0xff] }
 0x235   : > { %3905 = vmatprep.mubr.f32.mxu0 %v11072_v7 }
 0x236   : > { %7907 = vmatpush1.bf16.msra.mxu1 %v7906_v29 }
 0x238   : > { %7413 = vmatmul.mubr.msk.f32.gmra.mrb[18].mxu0 %vm339_vm3, %v3589_v32  ;;  %v4811_v32 = vld [vmem:[%s11067_s3 + $0x48] sm:$0xff] }
 0x239   : > { %3911 = vmatprep.mubr.f32.mxu0 %v11072_v7 }
 0x23c   : > { %7414 = vmatmul.mubr.msk.f32.gmra.mrb[20].mxu0 %vm339_vm3, %v3590_v35  ;;  %v4813_v35 = vld [vmem:[%s11067_s3 + $0x58] sm:$0xff] }
 0x23d   : > { %3917 = vmatprep.mubr.f32.mxu0 %v11072_v7 }
 0x240   : > { %7415 = vmatmul.mubr.msk.f32.gmra.mrb[22].mxu0 %vm339_vm3, %v3591_v38  ;;  %v3601_v38 = vld [vmem:[%s8976_s18 + $0xe4] sm:$0xff] }
 0x241   : > { %3923 = vmatprep.mubr.f32.mxu0 %v11072_v7 }
 0x244   : > { %7416 = vmatmul.mubr.msk.f32.gmra.mrb[24].mxu0 %vm339_vm3, %v3592_v41  ;;  %v7908_v41 = vpack.c.bf16 %v4813_v35, %v4811_v32  ;;  %v7918_v32 = vpack.c.bf16 %v4820_v26, %v4818_v23 }
 0x245   : > { %3929 = vmatprep.mubr.f32.mxu0 %v11072_v7 }
 0x246   : > { %7909 = vmatprep.subr.bf16.mxu1 %v7908_v41  ;;  %v4825_v41 = vld [vmem:[%s11067_s3 + $0xb8] sm:$0xff] }
 0x248   : > { %7417 = vmatmul.mubr.msk.f32.gmra.mrb[26].mxu0 %vm339_vm3, %v3593_v44  ;;  %v4810_v44 = vld [vmem:[%s11067_s3 + $0x40] sm:$0xff] }
 0x249   : > { %3935 = vmatprep.mubr.f32.mxu0 %v11072_v7 }
 0x24c   : > { %7418 = vmatmul.mubr.msk.f32.gmra.mrb[28].mxu0 %vm339_vm3, %v3594_v47  ;;  %v4812_v47 = vld [vmem:[%s11067_s3 + $0x50] sm:$0xff] }
 0x24d   : > { %3941 = vmatprep.mubr.f32.mxu0 %v11072_v7 }
 0x250   : > { %7419 = vmatmul.mubr.msk.f32.gmra.mrb[30].mxu0 %vm339_vm3, %v3595_v49  ;;  %v7910_v49 = vpack.c.bf16 %v4812_v47, %v4810_v44  ;;  %v3604_v44 = vld [vmem:[%s8976_s18 + $0x104] sm:$0xff] }
 0x251   : > { %3947 = vmatprep.mubr.f32.mxu0 %v11072_v7 }
 0x252   : > { %7911 = vmatpush1.bf16.msra.mxu1 %v7910_v49 }
 0x254   : > { %7420 = vmatmul.mubr.msk.f32.gmra.mrb[32].mxu0 %vm339_vm3, %v3596_v52  ;;  %v9837_v52 = vpop.f32.mrb[39].mxu1 }
 0x255   : > { %3953 = vmatprep.mubr.f32.mxu0 %v11072_v7  ;;  %v9854_v1 = vpop.f32.mrb[40].mxu1 }
 0x256   : > { %v9856_v4 = vpop.f32.mrb[41].mxu1 }
 0x257   : > { %v9873_v29 = vpop.f32.mrb[42].mxu1 }
 0x258   : > { %7421 = vmatmul.mubr.msk.f32.gmra.mrb[34].mxu0 %vm339_vm3, %v3597_v12  ;;  %v4815_v12 = vld [vmem:[%s11067_s3 + $0x68] sm:$0xff]  ;;  %v9875_v35 = vpop.f32.mrb[43].mxu1 }
 0x259   : > { %3959 = vmatprep.mubr.f32.mxu0 %v11072_v7  ;;  %v9886_v49 = vpop.f32.mrb[44].mxu1 }
 0x25c   : > { %7422 = vmatmul.mubr.msk.f32.gmra.mrb[36].mxu0 %vm339_vm3, %v3598_v58  ;;  %v4817_v58 = vld [vmem:[%s11067_s3 + $0x78] sm:$0xff] }
 0x25d   : > { %3965 = vmatprep.mubr.f32.mxu0 %v11072_v7  ;;  %v7912_v62 = vpack.c.bf16 %v4817_v58, %v4815_v12  ;;  %v4822_v12 = vld [vmem:[%s11067_s3 + $0xa0] sm:$0xff]  ;;  %v4824_v58 = vld [vmem:[%s11067_s3 + $0xb0] sm:$0xff] }
 0x25f   : > { %7913 = vmatprep.subr.bf16.mxu1 %v7912_v62  ;;  %v7922_v62 = vpack.c.bf16 %v4824_v58, %v4822_v12  ;;  %v4830_v12 = vld [vmem:[%s11067_s3 + $0xe0] sm:$0xff]  ;;  %v4832_v58 = vld [vmem:[%s11067_s3 + $0xf0] sm:$0xff] }
 0x260   : > { %7423 = vmatmul.mubr.msk.f32.gmra.mrb[38].mxu0 %vm339_vm3, %v3599_v63  ;;  %v4814_v63 = vld [vmem:[%s11067_s3 + $0x60] sm:$0xff] }
 0x261   : > { %3971 = vmatprep.mubr.f32.mxu0 %v11072_v7  ;;  %v7914_v2 = vpack.c.bf16 %v4816_v0, %v4814_v63  ;;  %v3605_v63 = vld [vmem:[%s8976_s18 + $0x10c] sm:$0xff] }
 0x262   : > { %v4827_v0 = vld [vmem:[%s11067_s3 + $0xc8] sm:$0xff] }
 0x263   : > { %7915 = vmatpush1.bf16.msra.mxu1 %v7914_v2  ;;  %v4829_v2 = vld [vmem:[%s11067_s3 + $0xd8] sm:$0xff] }
 0x264   : > { %7424 = vmatmul.mubr.msk.f32.gmra.mrb[40].mxu0 %vm339_vm3, %v3600_v17  ;;  %v3603_v17 = vld [vmem:[%s8976_s18 + $0xf4] sm:$0xff]  ;;  %7917 = vmatprep.subr.bf16.mxu1 %v7916_v20  ;;  %v7924_v13 = vpack.c.bf16 %v4829_v2, %v4827_v0  ;;  %v3607_v0 = vld [vmem:[%s8976_s18 + $0x124] sm:$0xff] }
 0x265   : > { %3977 = vmatprep.mubr.f32.mxu0 %v11072_v7  ;;  %v4828_v20 = vld [vmem:[%s11067_s3 + $0xd0] sm:$0xff] }
 0x267   : > { %7919 = vmatpush1.bf16.msra.mxu1 %v7918_v32  ;;  %v3606_v32 = vld [vmem:[%s8976_s18 + $0x114] sm:$0xff] }
 0x268   : > { %7425 = vmatmul.mubr.msk.f32.gmra.mrb[42].mxu0 %vm339_vm3, %v3601_v38  ;;  %v4823_v38 = vld [vmem:[%s11067_s3 + $0xa8] sm:$0xff] }
 0x269   : > { %3983 = vmatprep.mubr.f32.mxu0 %v11072_v7  ;;  %v7920_v47 = vpack.c.bf16 %v4825_v41, %v4823_v38  ;;  %v4831_v38 = vld [vmem:[%s11067_s3 + $0xe8] sm:$0xff]  ;;  %v4833_v41 = vld [vmem:[%s11067_s3 + $0xf8] sm:$0xff] }
 0x26b   : > { %7921 = vmatprep.subr.bf16.mxu1 %v7920_v47  ;;  %v7928_v47 = vpack.c.bf16 %v4833_v41, %v4831_v38 }
 0x26c   : > { %7426 = vmatmul.mubr.msk.f32.gmra.mrb[44].mxu0 %vm339_vm3, %v3602_v61  ;;  %v9894_v61 = vpop.f32.mrb[45].mxu1  ;;  %7923 = vmatpush1.bf16.msra.mxu1 %v7922_v62 }
 0x26d   : > { %3989 = vmatprep.mubr.f32.mxu0 %v11072_v7  ;;  %v9905_v9 = vpop.f32.mrb[46].mxu1  ;;  %7925 = vmatprep.subr.bf16.mxu1 %v7924_v13 }
 0x26e   : > { %v9913_v23 = vpop.f32.mrb[47].mxu1 }
 0x270   : > { %7427 = vmatmul.mubr.msk.f32.gmra.mrb[46].mxu0 %vm339_vm3, %v3603_v17  ;;  %v4826_v17 = vld [vmem:[%s11067_s3 + $0xc0] sm:$0xff] }
 0x271   : > { %3995 = vmatprep.mubr.f32.mxu0 %v11072_v7  ;;  %v7926_v26 = vpack.c.bf16 %v4828_v20, %v4826_v17  ;;  %v3608_v17 = vld [vmem:[%s8976_s18 + $0x12c] sm:$0xff] }
 0x273   : > { %7927 = vmatpush1.bf16.msra.mxu1 %v7926_v26 }
 0x274   : > { %7428 = vmatmul.mubr.msk.f32.gmra.mrb[48].mxu0 %vm339_vm3, %v3604_v44  ;;  %v9924_v44 = vpop.f32.mrb[48].mxu1  ;;  %7929 = vmatprep.subr.bf16.mxu1 %v7928_v47  ;;  %v3610_v47 = vld [vmem:[%s8976_s18 + $0x144] sm:$0xff] }
 0x275   : > { %4001 = vmatprep.mubr.f32.mxu0 %v11072_v7  ;;  %v9932_v62 = vpop.f32.mrb[49].mxu1 }
 0x276   : > { %v9937_v2 = vpop.f32.mrb[50].mxu1 }
 0x277   : > { %11078 = vst [vmem:[#allocation11_spill] sm:$0xff] %v9937_v2  ;;  %v9940_v13 = vpop.f32.mrb[51].mxu1 }
 0x278   : > { %7429 = vmatmul.mubr.msk.f32.gmra.mrb[50].mxu0 %vm339_vm3, %v3605_v63  ;;  %v7930_v63 = vpack.c.bf16 %v4832_v58, %v4830_v12  ;;  %11079 = vst [vmem:[#allocation12_spill] sm:$0xff] %v9940_v13  ;;  %v9944_v20 = vpop.f32.mrb[52].mxu1 }
 0x279   : > { %4007 = vmatprep.mubr.f32.mxu0 %v11072_v7  ;;  %11080 = vst [vmem:[#allocation13_spill] sm:$0xff] %v9944_v20  ;;  %v9947_v26 = vpop.f32.mrb[53].mxu1 }
 0x27a   : > { %7931 = vmatpush1.bf16.msra.mxu1 %v7930_v63  ;;  %11081 = vst [vmem:[#allocation14_spill] sm:$0xff] %v9947_v26  ;;  %v9951_v38 = vpop.f32.mrb[54].mxu1  ;;  %v3611_v63 = vld [vmem:[%s8976_s18 + $0x14c] sm:$0xff] }
 0x27b   : > { %11082 = vst [vmem:[#allocation15_spill] sm:$0xff] %v9951_v38  ;;  %v9954_v41 = vpop.f32.mrb[55].mxu1 }
 0x27c   : > { %7430 = vmatmul.mubr.msk.f32.gmra.mrb[52].mxu0 %vm339_vm3, %v3606_v32  ;;  %v3609_v32 = vld [vmem:[%s8976_s18 + $0x134] sm:$0xff]  ;;  %11083 = vst [vmem:[#allocation16_spill] sm:$0xff] %v9954_v41  ;;  %v9958_v12 = vpop.f32.mrb[56].mxu1 }
 0x27d   : > { %4013 = vmatprep.mubr.f32.mxu0 %v11072_v7  ;;  %11084 = vst [vmem:[#allocation17_spill] sm:$0xff] %v9958_v12  ;;  %v9961_v58 = vpop.f32.mrb[57].mxu1 }
 0x27e   : > { %11085 = vst [vmem:[#allocation18_spill] sm:$0xff] %v9961_v58  ;;  %v3613_v58 = vld [vmem:[%s8976_s18 + $0x164] sm:$0xff] }
 0x280   : > { %7431 = vmatmul.mubr.msk.f32.gmra.mrb[54].mxu0 %vm339_vm3, %v3607_v0  ;;  %v9965_v0 = vpop.f32.mrb[58].mxu1 }
 0x281   : > { %4019 = vmatprep.mubr.f32.mxu0 %v11072_v7  ;;  %11086 = vst [vmem:[#allocation19_spill] sm:$0xff] %v9965_v0 }
 0x284   : > { %7432 = vmatmul.mubr.msk.f32.gmra.mrb[56].mxu0 %vm339_vm3, %v3608_v17  ;;  %v9968_v17 = vpop.f32.mrb[59].mxu1 }
 0x285   : > { %4025 = vmatprep.mubr.f32.mxu0 %v11072_v7  ;;  %11087 = vst [vmem:[#allocation20_spill] sm:$0xff] %v9968_v17  ;;  %v9972_v41 = vpop.f32.mrb[60].mxu1  ;;  %v3614_v17 = vld [vmem:[%s8976_s18 + $0x16c] sm:$0xff] }
 0x286   : > { %11088 = vst [vmem:[#allocation21_spill] sm:$0xff] %v9972_v41 }
 0x288   : > { %7433 = vmatmul.mubr.msk.f32.gmra.mrb[58].mxu0 %vm339_vm3, %v3609_v32  ;;  %v3612_v32 = vld [vmem:[%s8976_s18 + $0x154] sm:$0xff] }
 0x289   : > { %4031 = vmatprep.mubr.f32.mxu0 %v11072_v7 }
 0x28c   : > { %7434 = vmatmul.mubr.msk.f32.gmra.mrb[60].mxu0 %vm339_vm3, %v3610_v47  ;;  %v9975_v47 = vpop.f32.mrb[61].mxu1 }
 0x28d   : > { %4037 = vmatprep.mubr.f32.mxu0 %v11072_v7  ;;  %11089 = vst [vmem:[#allocation22_spill] sm:$0xff] %v9975_v47  ;;  %v9979_v12 = vpop.f32.mrb[62].mxu1  ;;  %v3615_v47 = vld [vmem:[%s8976_s18 + $0x174] sm:$0xff] }
 0x28e   : > { %11090 = vst [vmem:[#allocation23_spill] sm:$0xff] %v9979_v12 }
 0x290   : > { %7435 = vmatmul.mubr.msk.f32.gmra.mrb[62].mxu0 %vm339_vm3, %v3611_v63  ;;  %v9982_v63 = vpop.f32.mrb[63].mxu1 }
 0x291   : > { %4043 = vmatprep.mubr.f32.mxu0 %v11072_v7  ;;  %11091 = vst [vmem:[#allocation24_spill] sm:$0xff] %v9982_v63  ;;  %v9986_v0 = vpop.f32.mrb[64].mxu1  ;;  %v3616_v63 = vld [vmem:[%s8976_s18 + $0x184] sm:$0xff] }
 0x292   : > { %11092 = vst [vmem:[#allocation25_spill] sm:$0xff] %v9986_v0 }
 0x294   : > { %7436 = vmatmul.mubr.msk.f32.gmra.mrb[64].mxu0 %vm339_vm3, %v3612_v32  ;;  %v9989_v32 = vpop.f32.mrb[65].mxu1 }
 0x295   : > { %4049 = vmatprep.mubr.f32.mxu0 %v11072_v7  ;;  %11093 = vst [vmem:[#allocation26_spill] sm:$0xff] %v9989_v32  ;;  %v9993_v41 = vpop.f32.mrb[66].mxu1  ;;  %v3617_v32 = vld [vmem:[%s8976_s18 + $0x18c] sm:$0xff] }
 0x296   : > { %11094 = vst [vmem:[#allocation27_spill] sm:$0xff] %v9993_v41 }
 0x298   : > { %7437 = vmatmul.mubr.msk.f32.gmra.mrb[66].mxu0 %vm339_vm3, %v3613_v58  ;;  %v9996_v58 = vpop.f32.mrb[67].mxu1 }
 0x299   : > { %4055 = vmatprep.mubr.f32.mxu0 %v11072_v7  ;;  %11095 = vst [vmem:[#allocation28_spill] sm:$0xff] %v9996_v58  ;;  %v10000_v12 = vpop.f32.mrb[68].mxu1  ;;  %v3618_v58 = vld [vmem:[%s8976_s18 + $0x194] sm:$0xff] }
 0x29a   : > { %11096 = vst [vmem:[#allocation29_spill] sm:$0xff] %v10000_v12 }
 0x29c   : > { %7438 = vmatmul.mubr.msk.f32.gmra.mrb[68].mxu0 %vm339_vm3, %v3614_v17  ;;  %v10003_v17 = vpop.f32.mrb[69].mxu1 }
 0x29d   : > { %4061 = vmatprep.mubr.f32.mxu0 %v11072_v7  ;;  %11097 = vst [vmem:[#allocation30_spill] sm:$0xff] %v10003_v17  ;;  %v10007_v0 = vpop.f32.mrb[70].mxu1  ;;  %v3619_v17 = vld [vmem:[%s8976_s18 + $0x1a4] sm:$0xff] }
 0x29e   : > { %11098 = vst [vmem:[#allocation31_spill] sm:$0xff] %v10007_v0 }
 0x2a0   : > { %7439 = vmatmul.mubr.msk.f32.gmra.mrb[70].mxu0 %vm339_vm3, %v3615_v47  ;;  %v10010_v47 = vpop.f32.mrb[71].mxu1 }
 0x2a1   : > { %4067 = vmatprep.mubr.f32.mxu0 %v11072_v7  ;;  %11099 = vst [vmem:[#allocation32_spill] sm:$0xff] %v10010_v47  ;;  %v10014_v41 = vpop.f32.mrb[72].mxu1  ;;  %v3620_v47 = vld [vmem:[%s8976_s18 + $0x1ac] sm:$0xff] }
 0x2a2   : > { %11100 = vst [vmem:[#allocation33_spill] sm:$0xff] %v10014_v41 }
 0x2a4   : > { %7440 = vmatmul.mubr.msk.f32.gmra.mrb[72].mxu0 %vm339_vm3, %v3616_v63  ;;  %v10017_v63 = vpop.f32.mrb[73].mxu1 }
 0x2a5   : > { %4073 = vmatprep.mubr.f32.mxu0 %v11072_v7  ;;  %11101 = vst [vmem:[#allocation34_spill] sm:$0xff] %v10017_v63  ;;  %v10021_v12 = vpop.f32.mrb[74].mxu1  ;;  %v3621_v63 = vld [vmem:[%s8976_s18 + $0x1b4] sm:$0xff] }
 0x2a6   : > { %11102 = vst [vmem:[#allocation35_spill] sm:$0xff] %v10021_v12 }
 0x2a8   : > { %7441 = vmatmul.mubr.msk.f32.gmra.mrb[74].mxu0 %vm339_vm3, %v3617_v32  ;;  %v10024_v32 = vpop.f32.mrb[75].mxu1 }
 0x2a9   : > { %4079 = vmatprep.mubr.f32.mxu0 %v11072_v7  ;;  %11103 = vst [vmem:[#allocation36_spill] sm:$0xff] %v10024_v32  ;;  %v10028_v0 = vpop.f32.mrb[76].mxu1  ;;  %v3622_v32 = vld [vmem:[%s8976_s18 + $0x1c4] sm:$0xff] }
 0x2aa   : > { %11104 = vst [vmem:[#allocation37_spill] sm:$0xff] %v10028_v0 }
 0x2ac   : > { %7442 = vmatmul.mubr.msk.f32.gmra.mrb[76].mxu0 %vm339_vm3, %v3618_v58  ;;  %v10031_v58 = vpop.f32.mrb[77].mxu1 }
 0x2ad   : > { %4085 = vmatprep.mubr.f32.mxu0 %v11072_v7  ;;  %11105 = vst [vmem:[#allocation38_spill] sm:$0xff] %v10031_v58  ;;  %v10035_v41 = vpop.f32.mrb[78].mxu1  ;;  %v3623_v58 = vld [vmem:[%s8976_s18 + $0x1cc] sm:$0xff] }
 0x2ae   : > { %11106 = vst [vmem:[#allocation39_spill] sm:$0xff] %v10035_v41 }
 0x2b0   : > { %7443 = vmatmul.mubr.msk.f32.gmra.mrb[78].mxu0 %vm339_vm3, %v3619_v17  ;;  %v10038_v17 = vpop.f32.mrb[79].mxu1 }
 0x2b1   : > { %4091 = vmatprep.mubr.f32.mxu0 %v11072_v7  ;;  %11107 = vst [vmem:[#allocation40_spill] sm:$0xff] %v10038_v17  ;;  %v10042_v12 = vpop.f32.mrb[80].mxu1  ;;  %v3624_v17 = vld [vmem:[%s8976_s18 + $0x1d4] sm:$0xff] }
 0x2b2   : > { %11108 = vst [vmem:[#allocation41_spill] sm:$0xff] %v10042_v12 }
 0x2b4   : > { %7444 = vmatmul.mubr.msk.f32.gmra.mrb[80].mxu0 %vm339_vm3, %v3620_v47  ;;  %v10045_v47 = vpop.f32.mrb[81].mxu1 }
 0x2b5   : > { %4097 = vmatprep.mubr.f32.mxu0 %v11072_v7  ;;  %11109 = vst [vmem:[#allocation42_spill] sm:$0xff] %v10045_v47  ;;  %v10049_v0 = vpop.f32.mrb[82].mxu1  ;;  %v3625_v47 = vld [vmem:[%s8976_s18 + $0x1e4] sm:$0xff] }
 0x2b6   : > { %11110 = vst [vmem:[#allocation43_spill] sm:$0xff] %v10049_v0 }
 0x2b8   : > { %7445 = vmatmul.mubr.msk.f32.gmra.mrb[82].mxu0 %vm339_vm3, %v3621_v63  ;;  %v10052_v63 = vpop.f32.mrb[83].mxu1 }
 0x2b9   : > { %4103 = vmatprep.mubr.f32.mxu0 %v11072_v7  ;;  %11111 = vst [vmem:[#allocation44_spill] sm:$0xff] %v10052_v63  ;;  %v10056_v41 = vpop.f32.mrb[84].mxu1  ;;  %v3626_v63 = vld [vmem:[%s8976_s18 + $0x1ec] sm:$0xff] }
 0x2ba   : > { %11112 = vst [vmem:[#allocation45_spill] sm:$0xff] %v10056_v41 }
 0x2bc   : > { %7446 = vmatmul.mubr.msk.f32.gmra.mrb[84].mxu0 %vm339_vm3, %v3622_v32  ;;  %v10059_v32 = vpop.f32.mrb[85].mxu1 }
 0x2bd   : > { %4109 = vmatprep.mubr.f32.mxu0 %v11072_v7  ;;  %11113 = vst [vmem:[#allocation46_spill] sm:$0xff] %v10059_v32  ;;  %v10063_v12 = vpop.f32.mrb[86].mxu1 }
 0x2be   : > { %11114 = vst [vmem:[#allocation47_spill] sm:$0xff] %v10063_v12 }
 0x2c0   : > { %7447 = vmatmul.mubr.msk.f32.gmra.mrb[86].mxu0 %vm339_vm3, %v3623_v58  ;;  %v10066_v58 = vpop.f32.mrb[87].mxu1 }
 0x2c1   : > { %4115 = vmatprep.mubr.f32.mxu0 %v11072_v7  ;;  %11115 = vst [vmem:[#allocation48_spill] sm:$0xff] %v10066_v58  ;;  %v10070_v0 = vpop.f32.mrb[88].mxu1 }
 0x2c2   : > { %11116 = vst [vmem:[#allocation49_spill] sm:$0xff] %v10070_v0  ;;  %v10073_v41 = vpop.f32.mrb[89].mxu1 }
 0x2c3   : > { %11117 = vst [vmem:[#allocation50_spill] sm:$0xff] %v10073_v41  ;;  %v10077_v32 = vpop.f32.mrb[90].mxu1 }
 0x2c4   : > { %7448 = vmatmul.mubr.msk.f32.gmra.mrb[88].mxu0 %vm339_vm3, %v3624_v17  ;;  %v3627_v17 = vld [vmem:[%s8976_s18 + $0x1f4] sm:$0xff]  ;;  %11118 = vst [vmem:[#allocation51_spill] sm:$0xff] %v10077_v32  ;;  %v10080_v12 = vpop.f32.mrb[91].mxu1 }
 0x2c5   : > { %4121 = vmatprep.mubr.f32.mxu0 %v11072_v7  ;;  %11119 = vst [vmem:[#allocation52_spill] sm:$0xff] %v10080_v12 }
 0x2c8   : > { %7449 = vmatmul.mubr.msk.f32.gmra.mrb[90].mxu0 %vm339_vm3, %v3625_v47  ;;  %v10082_v47 = vpop.f32.mrb[92].mxu1 }
 0x2c9   : > { %4127 = vmatprep.mubr.f32.mxu0 %v11072_v7  ;;  %11120 = vst [vmem:[#allocation53_spill] sm:$0xff] %v10082_v47  ;;  %v10084_v58 = vpop.f32.mrb[93].mxu1 }
 0x2ca   : > { %11121 = vst [vmem:[#allocation54_spill] sm:$0xff] %v10084_v58  ;;  %v10086_v38 = vpop.f32.mrb[94].mxu1 }
 0x2cb   : > { %11122 = vst [vmem:[#allocation55_spill] sm:$0xff] %v10086_v38  ;;  %v10088_v0 = vpop.f32.mrb[95].mxu1 }
 0x2cc   : > { %7450 = vmatmul.mubr.msk.f32.gmra.mrb[92].mxu0 %vm339_vm3, %v3626_v63  ;;  %11123 = vst [vmem:[#allocation56_spill] sm:$0xff] %v10088_v0 }
 0x2cd   : > { %4133 = vmatprep.mubr.f32.mxu0 %v11072_v7 }
 0x2d0   : > { %7451 = vmatmul.mubr.msk.f32.gmra.mrb[94].mxu0 %vm339_vm3, %v3627_v17 }
 0x2e7   : > { %v3853_v63 = vpop.f32.mrb[0].mxu0 }
 0x2e8   : > { %v8192_v41 = vadd.f32 %v3853_v63, %v9664_v6  ;;  %v3855_v26 = vpop.f32.mrb[1].mxu0 }
 0x2e9   : > { %v8193_v7 = vadd.f32 %v3855_v26, %v9668_v10 }
 0x2eb   : > { %v4428_v20 = vmax.f32 %v8192_v41, %v8193_v7  ;;  %v3859_v32 = vpop.f32.mrb[2].mxu0 }
 0x2ec   : > { %v8194_v17 = vadd.f32 %v3859_v32, %v9671_v11  ;;  %v3861_v13 = vpop.f32.mrb[3].mxu0 }
 0x2ed   : > { %4476 = vst [vmem:[#allocation3] sm:$0xff] %v4428_v20  ;;  %v8195_v47 = vadd.f32 %v3861_v13, %v9675_v14  ;;  %v10101_v14 = vld [vmem:[%s11066_s2] ss:$0 sm:$0xff] }
 0x2ef   : > { %v4429_v12 = vmax.f32 %v8194_v17, %v8195_v47  ;;  %v3865_v58 = vpop.f32.mrb[4].mxu0 }
 0x2f0   : > { %v8196_v38 = vadd.f32 %v3865_v58, %v9678_v16  ;;  %v3867_v2 = vpop.f32.mrb[5].mxu0 }
 0x2f1   : > { %4477 = vst [vmem:[#allocation3 + $0x8] sm:$0xff] %v4429_v12  ;;  %v8197_v0 = vadd.f32 %v3867_v2, %v9682_v18 }
 0x2f3   : > { %v4430_v6 = vmax.f32 %v8196_v38, %v8197_v0  ;;  %v3871_v63 = vpop.f32.mrb[6].mxu0 }
 0x2f4   : > { %v8198_v10 = vadd.f32 %v3871_v63, %v9685_v19  ;;  %v3873_v7 = vpop.f32.mrb[7].mxu0 }
 0x2f5   : > { %4478 = vst [vmem:[#allocation3 + $0x10] sm:$0xff] %v4430_v6  ;;  %v8199_v11 = vadd.f32 %v3873_v7, %v9689_v21 }
 0x2f7   : > { %v4431_v13 = vmax.f32 %v8198_v10, %v8199_v11  ;;  %v3877_v20 = vpop.f32.mrb[8].mxu0 }
 0x2f8   : > { %v4524_v16 = vld [vmem:[#allocation3] ss:$2 sm:$0xff]  ;;  %v4588_v26 = vld [vmem:[#allocation3 + $0x1] ss:$2 sm:$0xff]  ;;  %v8200_v41 = vadd.f32 %v3877_v20, %v9692_v22  ;;  %v3879_v18 = vpop.f32.mrb[9].mxu0 }
 0x2f9   : > { %v4651_v2 = vmax.f32 %v4524_v16, %v4588_v26  ;;  %4479 = vst [vmem:[#allocation3 + $0x18] sm:$0xff] %v4431_v13  ;;  %v8201_v19 = vadd.f32 %v3879_v18, %v9696_v24  ;;  %v11124_v13 = vmov 0.0  }
 0x2fb   : > { %v4690_v38 = vadd.f32 %v10101_v14, %v4651_v2  ;;  %v4432_v12 = vmax.f32 %v8200_v41, %v8201_v19  ;;  %v3883_v21 = vpop.f32.mrb[10].mxu0 }
 0x2fc   : > { %v4526_v0 = vld [vmem:[#allocation3 + $0x10] ss:$2 sm:$0xf]  ;;  %v4590_v32 = vld [vmem:[#allocation3 + $0x11] ss:$2 sm:$0xf]  ;;  %v8202_v58 = vadd.f32 %v3883_v21, %v9699_v25 }
 0x2fd   : > { %v4652_v47 = vmax.f32 %v4526_v0, %v4590_v32  ;;  %4480 = vst [vmem:[#allocation3 + $0x20] sm:$0xff] %v4432_v12  ;;  %v3885_v17 = vpop.f32.mrb[11].mxu0  ;;  %v4722_v6 = vmax.f32 %v4690_v38, 0.0 }
 0x2fe   : > { %v8203_v63 = vadd.f32 %v3885_v17, %v9703_v27 }
 0x2ff   : > { %v4691_v22 = vadd.f32 %v10101_v14, %v4652_v47  ;;  %v3889_v10 = vpop.f32.mrb[12].mxu0  ;;  %4754 = vst [vmem:[#allocation4] sm:$0xff] %v4722_v6  ;;  %4899 = vmatmul.mubr.f32.vlgmr.msra.gmra.mrb[96].mxu1 %v4722_v6 }
 0x300   : > { %v4433_v24 = vmax.f32 %v8202_v58, %v8203_v63  ;;  %v8204_v7 = vadd.f32 %v3889_v10, %v9706_v28  ;;  %v3891_v11 = vpop.f32.mrb[13].mxu0  ;;  %4904 = vmatprep.mubr.f32.mxu1 %v11124_v13 }
 0x301   : > { %v8205_v20 = vadd.f32 %v3891_v11, %v9710_v30  ;;  %v4723_v25 = vmax.f32 %v4691_v22, 0.0  ;;  %v7453_v11 = vld [vmem:[%s11067_s3 + $0x100] sm:$0xff] }
 0x302   : > { %4481 = vst [vmem:[#allocation3 + $0x28] sm:$0xff] %v4433_v24 }
 0x303   : > { %v4434_v16 = vmax.f32 %v8204_v7, %v8205_v20  ;;  %v3895_v26 = vpop.f32.mrb[14].mxu0  ;;  %4755 = vst [vmem:[#allocation4 + $0x8] sm:$0xf] %v4723_v25  ;;  %v7455_v20 = vld [vmem:[%s11067_s3 + $0x110] sm:$0xff] }
 0x304   : > { %v4528_v41 = vld [vmem:[#allocation3 + $0x18] ss:$2 sm:$0xff]  ;;  %v4592_v27 = vld [vmem:[#allocation3 + $0x19] ss:$2 sm:$0xff]  ;;  %v8206_v18 = vadd.f32 %v3895_v26, %v9713_v31  ;;  %v3897_v2 = vpop.f32.mrb[15].mxu0  ;;  %v7454_v31 = vld [vmem:[%s11067_s3 + $0x108] sm:$0xff]  ;;  %v7934_v25 = vpack.c.bf16 %v7455_v20, %v7453_v11 }
 0x305   : > { %v4653_v19 = vmax.f32 %v4528_v41, %v4592_v27  ;;  %4482 = vst [vmem:[#allocation3 + $0x30] sm:$0xff] %v4434_v16  ;;  %v8207_v38 = vadd.f32 %v3897_v2, %v9717_v33  ;;  %v7456_v33 = vld [vmem:[%s11067_s3 + $0x118] sm:$0xff] }
 0x306   : > { %v7932_v10 = vpack.c.bf16 %v7456_v33, %v7454_v31  ;;  %v7457_v31 = vld [vmem:[%s11067_s3 + $0x120] sm:$0xff]  ;;  %v7464_v11 = vld [vmem:[%s11067_s3 + $0x158] sm:$0xff] }
 0x307   : > { %v4435_v28 = vmax.f32 %v8206_v18, %v8207_v38  ;;  %v3901_v12 = vpop.f32.mrb[16].mxu0  ;;  %v4692_v21 = vadd.f32 %v10101_v14, %v4653_v19 }
 0x308   : > { %v8208_v30 = vadd.f32 %v3901_v12, %v9720_v34  ;;  %v3903_v0 = vpop.f32.mrb[17].mxu0  ;;  %7933 = vmatprep.subr.bf16.mxu1 %v7932_v10 }
 0x309   : > { %v4530_v32 = vld [vmem:[#allocation3 + $0x28] ss:$2 sm:$0xf]  ;;  %v4594_v58 = vld [vmem:[#allocation3 + $0x29] ss:$2 sm:$0xf]  ;;  %v8209_v47 = vadd.f32 %v3903_v0, %v9724_v36  ;;  %7935 = vmatpush1.bf16.msra.mxu1 %v7934_v25 }
 0x30a   : > { %4483 = vst [vmem:[#allocation3 + $0x38] sm:$0xff] %v4435_v28  ;;  %v4654_v17 = vmax.f32 %v4530_v32, %v4594_v58  ;;  %v4724_v6 = vmax.f32 %v4692_v21, 0.0 }
 0x30b   : > { %v4436_v63 = vmax.f32 %v8208_v30, %v8209_v47  ;;  %v3907_v22 = vpop.f32.mrb[18].mxu0 }
 0x30c   : > { %v8210_v34 = vadd.f32 %v3907_v22, %v9727_v37  ;;  %v3909_v24 = vpop.f32.mrb[19].mxu0  ;;  %4756 = vst [vmem:[#allocation4 + $0x10] sm:$0xff] %v4724_v6  ;;  %4905 = vmatmul.mubr.f32.gmra.mrb[98].mxu1 %v4724_v6  ;;  %v4693_v36 = vadd.f32 %v10101_v14, %v4654_v17  ;;  %v7458_v37 = vld [vmem:[%s11067_s3 + $0x128] sm:$0xff] }
 0x30d   : > { %4484 = vst [vmem:[#allocation3 + $0x40] sm:$0xff] %v4436_v63  ;;  %v8211_v7 = vadd.f32 %v3909_v24, %v9731_v39  ;;  %4910 = vmatprep.mubr.f32.mxu1 %v11124_v13  ;;  %v7460_v39 = vld [vmem:[%s11067_s3 + $0x138] sm:$0xff] }
 0x30e   : > { %v4725_v16 = vmax.f32 %v4693_v36, 0.0  ;;  %v7936_v27 = vpack.c.bf16 %v7460_v39, %v7458_v37 }
 0x30f   : > { %v4437_v26 = vmax.f32 %v8210_v34, %v8211_v7  ;;  %v3913_v41 = vpop.f32.mrb[20].mxu0 }
 0x310   : > { %v8212_v19 = vadd.f32 %v3913_v41, %v9734_v40  ;;  %v3915_v38 = vpop.f32.mrb[21].mxu0  ;;  %4757 = vst [vmem:[#allocation4 + $0x18] sm:$0xf] %v4725_v16  ;;  %7937 = vmatprep.subr.bf16.mxu1 %v7936_v27 }
 0x311   : > { %v4532_v18 = vld [vmem:[#allocation3 + $0x30] ss:$2 sm:$0xff]  ;;  %v4596_v2 = vld [vmem:[#allocation3 + $0x31] ss:$2 sm:$0xff]  ;;  %4485 = vst [vmem:[#allocation3 + $0x48] sm:$0xff] %v4437_v26  ;;  %v8213_v12 = vadd.f32 %v3915_v38, %v9738_v42 }
 0x312   : > { %v4655_v28 = vmax.f32 %v4532_v18, %v4596_v2  ;;  %v7459_v42 = vld [vmem:[%s11067_s3 + $0x130] sm:$0xff] }
 0x313   : > { %v4438_v21 = vmax.f32 %v8212_v19, %v8213_v12  ;;  %v3919_v30 = vpop.f32.mrb[22].mxu0  ;;  %v7938_v63 = vpack.c.bf16 %v7459_v42, %v7457_v31 }
 0x314   : > { %v4694_v0 = vadd.f32 %v10101_v14, %v4655_v28  ;;  %v4534_v32 = vld [vmem:[#allocation3 + $0x40] ss:$2 sm:$0xf]  ;;  %v4598_v58 = vld [vmem:[#allocation3 + $0x41] ss:$2 sm:$0xf]  ;;  %v8214_v47 = vadd.f32 %v3919_v30, %v9741_v43 }
 0x315   : > { %v4656_v17 = vmax.f32 %v4534_v32, %v4598_v58  ;;  %4486 = vst [vmem:[#allocation3 + $0x50] sm:$0xff] %v4438_v21  ;;  %v3921_v6 = vpop.f32.mrb[23].mxu0  ;;  %7939 = vmatpush1.bf16.msra.mxu1 %v7938_v63 }
 0x316   : > { %v4726_v40 = vmax.f32 %v4694_v0, 0.0  ;;  %v8215_v33 = vadd.f32 %v3921_v6, %v9745_v45  ;;  %v7462_v45 = vld [vmem:[%s11067_s3 + $0x148] sm:$0xff] }
 0x317   : > { %v3925_v22 = vpop.f32.mrb[24].mxu0  ;;  %v4695_v43 = vadd.f32 %v10101_v14, %v4656_v17  ;;  %v7940_v25 = vpack.c.bf16 %v7464_v11, %v7462_v45 }
 0x318   : > { %4758 = vst [vmem:[#allocation4 + $0x20] sm:$0xff] %v4726_v40  ;;  %4911 = vmatmul.mubr.f32.gmra.mrb[100].mxu1 %v4726_v40  ;;  %v4439_v10 = vmax.f32 %v8214_v47, %v8215_v33  ;;  %v8216_v34 = vadd.f32 %v3925_v22, %v9748_v46  ;;  %v3927_v24 = vpop.f32.mrb[25].mxu0  ;;  %v7461_v46 = vld [vmem:[%s11067_s3 + $0x140] sm:$0xff]  ;;  %v7468_v47 = vld [vmem:[%s11067_s3 + $0x178] sm:$0xff] }
 0x319   : > { %4916 = vmatprep.mubr.f32.mxu1 %v11124_v13  ;;  %v8217_v36 = vadd.f32 %v3927_v24, %v9752_v48  ;;  %v4727_v7 = vmax.f32 %v4695_v43, 0.0  ;;  %v7463_v48 = vld [vmem:[%s11067_s3 + $0x150] sm:$0xff]  ;;  %7941 = vmatprep.subr.bf16.mxu1 %v7940_v25  ;;  %v7470_v43 = vld [vmem:[%s11067_s3 + $0x188] sm:$0xff] }
 0x31a   : > { %4487 = vst [vmem:[#allocation3 + $0x58] sm:$0xff] %v4439_v10  ;;  %v7942_v27 = vpack.c.bf16 %v7463_v48, %v7461_v46 }
 0x31b   : > { %v4440_v20 = vmax.f32 %v8216_v34, %v8217_v36  ;;  %v3931_v37 = vpop.f32.mrb[26].mxu0  ;;  %4759 = vst [vmem:[#allocation4 + $0x28] sm:$0xf] %v4727_v7  ;;  %v7469_v34 = vld [vmem:[%s11067_s3 + $0x180] sm:$0xff] }
 0x31c   : > { %v4536_v39 = vld [vmem:[#allocation3 + $0x48] ss:$2 sm:$0xff]  ;;  %v4600_v16 = vld [vmem:[#allocation3 + $0x49] ss:$2 sm:$0xff]  ;;  %v8218_v26 = vadd.f32 %v3931_v37, %v9755_v5  ;;  %v3933_v41 = vpop.f32.mrb[27].mxu0  ;;  %7943 = vmatpush1.bf16.msra.mxu1 %v7942_v27 }
 0x31d   : > { %v4657_v18 = vmax.f32 %v4536_v39, %v4600_v16  ;;  %4488 = vst [vmem:[#allocation3 + $0x60] sm:$0xff] %v4440_v20  ;;  %v8219_v2 = vadd.f32 %v3933_v41, %v9759_v50  ;;  %v7466_v50 = vld [vmem:[%s11067_s3 + $0x168] sm:$0xff]  ;;  %v7476_v16 = vld [vmem:[%s11067_s3 + $0x1b8] sm:$0xff]  ;;  %v7475_v41 = vld [vmem:[%s11067_s3 + $0x1b0] sm:$0xff] }
 0x31e   : > { %v7944_v40 = vpack.c.bf16 %v7468_v47, %v7466_v50  ;;  %v7474_v39 = vld [vmem:[%s11067_s3 + $0x1a8] sm:$0xff]  ;;  %v7479_v50 = vld [vmem:[%s11067_s3 + $0x1d0] sm:$0xff] }
 0x31f   : > { %v4441_v19 = vmax.f32 %v8218_v26, %v8219_v2  ;;  %v3937_v38 = vpop.f32.mrb[28].mxu0  ;;  %v4696_v28 = vadd.f32 %v10101_v14, %v4657_v18  ;;  %v7952_v26 = vpack.c.bf16 %v7476_v16, %v7474_v39 }
 0x320   : > { %v8220_v12 = vadd.f32 %v3937_v38, %v9762_v51  ;;  %v3939_v21 = vpop.f32.mrb[29].mxu0  ;;  %v7465_v51 = vld [vmem:[%s11067_s3 + $0x160] sm:$0xff]  ;;  %7945 = vmatprep.subr.bf16.mxu1 %v7944_v40 }
 0x321   : > { %v4538_v30 = vld [vmem:[#allocation3 + $0x58] ss:$2 sm:$0xf]  ;;  %v4602_v0 = vld [vmem:[#allocation3 + $0x59] ss:$2 sm:$0xf]  ;;  %v8221_v5 = vadd.f32 %v3939_v21, %v9766_v53 }
 0x322   : > { %4489 = vst [vmem:[#allocation3 + $0x68] sm:$0xff] %v4441_v19  ;;  %v4658_v32 = vmax.f32 %v4538_v30, %v4602_v0  ;;  %v4728_v58 = vmax.f32 %v4696_v28, 0.0  ;;  %v7467_v53 = vld [vmem:[%s11067_s3 + $0x170] sm:$0xff]  ;;  %v7478_v0 = vld [vmem:[%s11067_s3 + $0x1c8] sm:$0xff] }
 0x323   : > { %v4442_v17 = vmax.f32 %v8220_v12, %v8221_v5  ;;  %v3943_v6 = vpop.f32.mrb[30].mxu0  ;;  %v7946_v33 = vpack.c.bf16 %v7467_v53, %v7465_v51  ;;  %v7480_v5 = vld [vmem:[%s11067_s3 + $0x1d8] sm:$0xff] }
 0x324   : > { %v8222_v31 = vadd.f32 %v3943_v6, %v9768_v3  ;;  %v3945_v42 = vpop.f32.mrb[31].mxu0  ;;  %4760 = vst [vmem:[#allocation4 + $0x30] sm:$0xff] %v4728_v58  ;;  %4917 = vmatmul.mubr.f32.gmra.mrb[102].mxu1 %v4728_v58  ;;  %v4697_v63 = vadd.f32 %v10101_v14, %v4658_v32  ;;  %v7472_v3 = vld [vmem:[%s11067_s3 + $0x198] sm:$0xff]  ;;  %v7956_v58 = vpack.c.bf16 %v7480_v5, %v7478_v0 }
 0x325   : > { %4490 = vst [vmem:[#allocation3 + $0x70] sm:$0xff] %v4442_v17  ;;  %v8223_v22 = vadd.f32 %v3945_v42, %v9770_v54  ;;  %4922 = vmatprep.mubr.f32.mxu1 %v11124_v13  ;;  %7947 = vmatpush1.bf16.msra.mxu1 %v7946_v33  ;;  %v7948_v10 = vpack.c.bf16 %v7472_v3, %v7470_v43  ;;  %v7471_v54 = vld [vmem:[%s11067_s3 + $0x190] sm:$0xff]  ;;  %v7484_v42 = vld [vmem:[%s11067_s3 + $0x1f8] sm:$0xff] }
 0x326   : > { %v4729_v24 = vmax.f32 %v4697_v63, 0.0  ;;  %v7950_v45 = vpack.c.bf16 %v7471_v54, %v7469_v34 }
 0x327   : > { %v4443_v36 = vmax.f32 %v8222_v31, %v8223_v22  ;;  %v3949_v7 = vpop.f32.mrb[32].mxu0  ;;  %7949 = vmatprep.subr.bf16.mxu1 %v7948_v10  ;;  %v7482_v31 = vld [vmem:[%s11067_s3 + $0x1e8] sm:$0xff] }
 0x328   : > { %v8224_v20 = vadd.f32 %v3949_v7, %v9773_v8  ;;  %v3951_v37 = vpop.f32.mrb[33].mxu0  ;;  %4761 = vst [vmem:[#allocation4 + $0x38] sm:$0xf] %v4729_v24  ;;  %v7473_v8 = vld [vmem:[%s11067_s3 + $0x1a0] sm:$0xff]  ;;  %v7960_v63 = vpack.c.bf16 %v7484_v42, %v7482_v31 }
 0x329   : > { %v4540_v11 = vld [vmem:[#allocation3 + $0x60] ss:$2 sm:$0xff]  ;;  %v4604_v46 = vld [vmem:[#allocation3 + $0x61] ss:$2 sm:$0xff]  ;;  %4491 = vst [vmem:[#allocation3 + $0x78] sm:$0xff] %v4443_v36  ;;  %v8225_v48 = vadd.f32 %v3951_v37, %v9777_v15  ;;  %7951 = vmatpush1.bf16.msra.mxu1 %v7950_v45  ;;  %v7954_v2 = vpack.c.bf16 %v7475_v41, %v7473_v8 }
 0x32a   : > { %v4659_v25 = vmax.f32 %v4540_v11, %v4604_v46  ;;  %7953 = vmatprep.subr.bf16.mxu1 %v7952_v26 }
 0x32b   : > { %v4444_v27 = vmax.f32 %v8224_v20, %v8225_v48  ;;  %v3955_v15 = vpop.f32.mrb[34].mxu0 }
 0x32c   : > { %v4698_v18 = vadd.f32 %v10101_v14, %v4659_v25  ;;  %v4542_v19 = vld [vmem:[#allocation3 + $0x70] ss:$2 sm:$0xf]  ;;  %v4606_v38 = vld [vmem:[#allocation3 + $0x71] ss:$2 sm:$0xf]  ;;  %v8226_v28 = vadd.f32 %v3955_v15, %v9779_v55 }
 0x32d   : > { %v4660_v12 = vmax.f32 %v4542_v19, %v4606_v38  ;;  %4492 = vst [vmem:[#allocation3 + $0x80] sm:$0xff] %v4444_v27  ;;  %v3957_v21 = vpop.f32.mrb[35].mxu0  ;;  %7955 = vmatpush1.bf16.msra.mxu1 %v7954_v2  ;;  %v7477_v55 = vld [vmem:[%s11067_s3 + $0x1c0] sm:$0xff]  ;;  %v7486_v25 = vld [vmem:[%s11067_s3 + $0x208] sm:$0xff] }
 0x32e   : > { %v4730_v30 = vmax.f32 %v4698_v18, 0.0  ;;  %v8227_v32 = vadd.f32 %v3957_v21, %v9781_v56  ;;  %v7958_v51 = vpack.c.bf16 %v7479_v50, %v7477_v55  ;;  %7957 = vmatprep.subr.bf16.mxu1 %v7956_v58 }
 0x32f   : > { %v3961_v47 = vpop.f32.mrb[36].mxu0  ;;  %v4699_v17 = vadd.f32 %v10101_v14, %v4660_v12 }
 0x330   : > { %4762 = vst [vmem:[#allocation4 + $0x40] sm:$0xff] %v4730_v30  ;;  %4923 = vmatmul.mubr.f32.gmra.mrb[104].mxu1 %v4730_v30  ;;  %v4445_v6 = vmax.f32 %v8226_v28, %v8227_v32  ;;  %v8228_v40 = vadd.f32 %v3961_v47, %v9784_v57  ;;  %v3963_v56 = vpop.f32.mrb[37].mxu0  ;;  %v7481_v57 = vld [vmem:[%s11067_s3 + $0x1e0] sm:$0xff] }
 0x331   : > { %4928 = vmatprep.mubr.f32.mxu1 %v11124_v13  ;;  %v8229_v53 = vadd.f32 %v3963_v56, %v9788_v59  ;;  %v4731_v33 = vmax.f32 %v4699_v17, 0.0  ;;  %7959 = vmatpush1.bf16.msra.mxu1 %v7958_v51  ;;  %v7483_v59 = vld [vmem:[%s11067_s3 + $0x1f0] sm:$0xff] }
 0x332   : > { %4493 = vst [vmem:[#allocation3 + $0x88] sm:$0xff] %v4445_v6  ;;  %v7962_v3 = vpack.c.bf16 %v7483_v59, %v7481_v57  ;;  %7961 = vmatprep.subr.bf16.mxu1 %v7960_v63  ;;  %v11125_v57 = vld [vmem:[#allocation11_spill] sm:$0xff] }
 0x333   : > { %v4446_v22 = vmax.f32 %v8228_v40, %v8229_v53  ;;  %v3967_v43 = vpop.f32.mrb[38].mxu0  ;;  %4763 = vst [vmem:[#allocation4 + $0x48] sm:$0xf] %v4731_v33 }
 0x334   : > { %v4544_v10 = vld [vmem:[#allocation3 + $0x78] ss:$2 sm:$0xff]  ;;  %v4608_v34 = vld [vmem:[#allocation3 + $0x79] ss:$2 sm:$0xff]  ;;  %v8230_v54 = vadd.f32 %v3967_v43, %v9790_v60  ;;  %v3969_v24 = vpop.f32.mrb[39].mxu0 }
 0x335   : > { %v4661_v36 = vmax.f32 %v4544_v10, %v4608_v34  ;;  %4494 = vst [vmem:[#allocation3 + $0x90] sm:$0xff] %v4446_v22  ;;  %v8231_v7 = vadd.f32 %v3969_v24, %v9837_v52  ;;  %7963 = vmatpush1.bf16.msra.mxu1 %v7962_v3  ;;  %v7488_v60 = vld [vmem:[%s11067_s3 + $0x218] sm:$0xff]  ;;  %v11126_v3 = vld [vmem:[#allocation12_spill] sm:$0xff]  ;;  %v11127_v24 = vld [vmem:[#allocation13_spill] sm:$0xff] }
 0x336   : > { %v7964_v16 = vpack.c.bf16 %v7488_v60, %v7486_v25 }
 0x337   : > { %v4447_v45 = vmax.f32 %v8230_v54, %v8231_v7  ;;  %v3973_v11 = vpop.f32.mrb[40].mxu0  ;;  %v4700_v46 = vadd.f32 %v10101_v14, %v4661_v36 }
 0x338   : > { %v8232_v20 = vadd.f32 %v3973_v11, %v9854_v1  ;;  %v3975_v37 = vpop.f32.mrb[41].mxu0  ;;  %7965 = vmatprep.subr.bf16.mxu1 %v7964_v16  ;;  %v11128_v11 = vld [vmem:[#allocation14_spill] sm:$0xff] }
 0x339   : > { %v4546_v48 = vld [vmem:[#allocation3 + $0x88] ss:$2 sm:$0xf]  ;;  %v4610_v39 = vld [vmem:[#allocation3 + $0x89] ss:$2 sm:$0xf]  ;;  %v8233_v52 = vadd.f32 %v3975_v37, %v9856_v4 }
 0x33a   : > { %4495 = vst [vmem:[#allocation3 + $0x98] sm:$0xff] %v4447_v45  ;;  %v4662_v26 = vmax.f32 %v4546_v48, %v4610_v39  ;;  %v4732_v8 = vmax.f32 %v4700_v46, 0.0  ;;  %v11129_v48 = vld [vmem:[#allocation15_spill] sm:$0xff] }
 0x33b   : > { %v4448_v41 = vmax.f32 %v8232_v20, %v8233_v52  ;;  %v3979_v27 = vpop.f32.mrb[42].mxu0 }
 0x33c   : > { %v8234_v1 = vadd.f32 %v3979_v27, %v9873_v29  ;;  %v3981_v15 = vpop.f32.mrb[43].mxu0  ;;  %4764 = vst [vmem:[#allocation4 + $0x50] sm:$0xff] %v4732_v8  ;;  %4929 = vmatmul.mubr.f32.gmra.mrb[106].mxu1 %v4732_v8  ;;  %v4701_v18 = vadd.f32 %v10101_v14, %v4662_v26  ;;  %v11130_v26 = vld [vmem:[#allocation16_spill] sm:$0xff] }
 0x33d   : > { %4496 = vst [vmem:[#allocation3 + $0xa0] sm:$0xff] %v4448_v41  ;;  %v8235_v2 = vadd.f32 %v3981_v15, %v9875_v35  ;;  %4934 = vmatprep.mubr.f32.mxu1 %v11124_v13 }
 0x33e   : > { %v4733_v19 = vmax.f32 %v4701_v18, 0.0 }
 0x33f   : > { %v4449_v4 = vmax.f32 %v8234_v1, %v8235_v2  ;;  %v3985_v38 = vpop.f32.mrb[44].mxu0  ;;  %v11131_v2 = vld [vmem:[#allocation17_spill] sm:$0xff] }
 0x340   : > { %v8236_v21 = vadd.f32 %v3985_v38, %v9886_v49  ;;  %v3987_v30 = vpop.f32.mrb[45].mxu0  ;;  %4765 = vst [vmem:[#allocation4 + $0x58] sm:$0xf] %v4733_v19 }
 0x341   : > { %v4548_v28 = vld [vmem:[#allocation3 + $0x90] ss:$2 sm:$0xff]  ;;  %v4612_v12 = vld [vmem:[#allocation3 + $0x91] ss:$2 sm:$0xff]  ;;  %4497 = vst [vmem:[#allocation3 + $0xa8] sm:$0xff] %v4449_v4  ;;  %v8237_v0 = vadd.f32 %v3987_v30, %v9894_v61 }
 0x342   : > { %v4663_v29 = vmax.f32 %v4548_v28, %v4612_v12  ;;  %v11132_v28 = vld [vmem:[#allocation18_spill] sm:$0xff] }
 0x343   : > { %v4450_v5 = vmax.f32 %v8236_v21, %v8237_v0  ;;  %v3991_v32 = vpop.f32.mrb[46].mxu0 }
 0x344   : > { %v4702_v58 = vadd.f32 %v10101_v14, %v4663_v29  ;;  %v4550_v35 = vld [vmem:[#allocation3 + $0xa0] ss:$2 sm:$0xf]  ;;  %v4614_v55 = vld [vmem:[#allocation3 + $0xa1] ss:$2 sm:$0xf]  ;;  %v8238_v50 = vadd.f32 %v3991_v32, %v9905_v9 }
 0x345   : > { %v4664_v47 = vmax.f32 %v4550_v35, %v4614_v55  ;;  %4498 = vst [vmem:[#allocation3 + $0xb0] sm:$0xff] %v4450_v5  ;;  %v3993_v51 = vpop.f32.mrb[47].mxu0  ;;  %v11133_v32 = vld [vmem:[#allocation19_spill] sm:$0xff] }
 0x346   : > { %v4734_v17 = vmax.f32 %v4702_v58, 0.0  ;;  %v8239_v49 = vadd.f32 %v3993_v51, %v9913_v23 }
 0x347   : > { %v3997_v6 = vpop.f32.mrb[48].mxu0  ;;  %v4703_v40 = vadd.f32 %v10101_v14, %v4664_v47  ;;  %v11134_v47 = vld [vmem:[#allocation20_spill] sm:$0xff] }
 0x348   : > { %4766 = vst [vmem:[#allocation4 + $0x60] sm:$0xff] %v4734_v17  ;;  %4935 = vmatmul.mubr.f32.gmra.mrb[108].mxu1 %v4734_v17  ;;  %v4451_v61 = vmax.f32 %v8238_v50, %v8239_v49  ;;  %v8240_v56 = vadd.f32 %v3997_v6, %v9924_v44  ;;  %v3999_v53 = vpop.f32.mrb[49].mxu0 }
 0x349   : > { %4940 = vmatprep.mubr.f32.mxu1 %v11124_v13  ;;  %v8241_v31 = vadd.f32 %v3999_v53, %v9932_v62  ;;  %v4735_v9 = vmax.f32 %v4703_v40, 0.0  ;;  %v11135_v40 = vld [vmem:[#allocation21_spill] sm:$0xff]  ;;  %v11136_v53 = vld [vmem:[#allocation22_spill] sm:$0xff] }
 0x34a   : > { %4499 = vst [vmem:[#allocation3 + $0xb8] sm:$0xff] %v4451_v61 }
 0x34b   : > { %v4452_v42 = vmax.f32 %v8240_v56, %v8241_v31  ;;  %v4003_v33 = vpop.f32.mrb[50].mxu0  ;;  %4767 = vst [vmem:[#allocation4 + $0x68] sm:$0xf] %v4735_v9 }
 0x34c   : > { %v4552_v63 = vld [vmem:[#allocation3 + $0xa8] ss:$2 sm:$0xff]  ;;  %v4616_v23 = vld [vmem:[#allocation3 + $0xa9] ss:$2 sm:$0xff]  ;;  %v8242_v59 = vadd.f32 %v4003_v33, %v11125_v57  ;;  %v4005_v22 = vpop.f32.mrb[51].mxu0  ;;  %v11137_v57 = vld [vmem:[#allocation23_spill] sm:$0xff] }
 0x34d   : > { %v4665_v43 = vmax.f32 %v4552_v63, %v4616_v23  ;;  %4500 = vst [vmem:[#allocation3 + $0xc0] sm:$0xff] %v4452_v42  ;;  %v8243_v10 = vadd.f32 %v4005_v22, %v11126_v3  ;;  %v11138_v3 = vld [vmem:[#allocation24_spill] sm:$0xff] }
 0x34f   : > { %v4453_v44 = vmax.f32 %v8242_v59, %v8243_v10  ;;  %v4009_v34 = vpop.f32.mrb[52].mxu0  ;;  %v4704_v54 = vadd.f32 %v10101_v14, %v4665_v43 }
 0x350   : > { %v8244_v62 = vadd.f32 %v4009_v34, %v11127_v24  ;;  %v4011_v36 = vpop.f32.mrb[53].mxu0  ;;  %v11139_v24 = vld [vmem:[#allocation25_spill] sm:$0xff] }
 0x351   : > { %v4554_v7 = vld [vmem:[#allocation3 + $0xb8] ss:$2 sm:$0xf]  ;;  %v4618_v45 = vld [vmem:[#allocation3 + $0xb9] ss:$2 sm:$0xf]  ;;  %v8245_v46 = vadd.f32 %v4011_v36, %v11128_v11 }
 0x352   : > { %4501 = vst [vmem:[#allocation3 + $0xc8] sm:$0xff] %v4453_v44  ;;  %v4666_v20 = vmax.f32 %v4554_v7, %v4618_v45  ;;  %v4736_v37 = vmax.f32 %v4704_v54, 0.0  ;;  %v11140_v11 = vld [vmem:[#allocation26_spill] sm:$0xff] }
 0x353   : > { %v4454_v25 = vmax.f32 %v8244_v62, %v8245_v46  ;;  %v4015_v60 = vpop.f32.mrb[54].mxu0 }
 0x354   : > { %v8246_v39 = vadd.f32 %v4015_v60, %v11129_v48  ;;  %v4017_v52 = vpop.f32.mrb[55].mxu0  ;;  %4768 = vst [vmem:[#allocation4 + $0x70] sm:$0xff] %v4736_v37  ;;  %4941 = vmatmul.mubr.f32.gmra.mrb[110].mxu1 %v4736_v37  ;;  %v4705_v16 = vadd.f32 %v10101_v14, %v4666_v20  ;;  %v11141_v48 = vld [vmem:[#allocation27_spill] sm:$0xff] }
 0x355   : > { %4502 = vst [vmem:[#allocation3 + $0xd0] sm:$0xff] %v4454_v25  ;;  %v8247_v8 = vadd.f32 %v4017_v52, %v11130_v26  ;;  %4946 = vmatprep.mubr.f32.mxu1 %v11124_v13  ;;  %v11142_v26 = vld [vmem:[#allocation28_spill] sm:$0xff] }
 0x356   : > { %v4737_v41 = vmax.f32 %v4705_v16, 0.0 }
 0x357   : > { %v4455_v27 = vmax.f32 %v8246_v39, %v8247_v8  ;;  %v4021_v1 = vpop.f32.mrb[56].mxu0 }
 0x358   : > { %v8248_v19 = vadd.f32 %v4021_v1, %v11131_v2  ;;  %v4023_v4 = vpop.f32.mrb[57].mxu0  ;;  %4769 = vst [vmem:[#allocation4 + $0x78] sm:$0xf] %v4737_v41  ;;  %v11143_v2 = vld [vmem:[#allocation29_spill] sm:$0xff] }
 0x359   : > { %v4556_v15 = vld [vmem:[#allocation3 + $0xc0] ss:$2 sm:$0xff]  ;;  %v4620_v18 = vld [vmem:[#allocation3 + $0xc1] ss:$2 sm:$0xff]  ;;  %4503 = vst [vmem:[#allocation3 + $0xd8] sm:$0xff] %v4455_v27  ;;  %v8249_v12 = vadd.f32 %v4023_v4, %v11132_v28  ;;  %v11144_v28 = vld [vmem:[#allocation30_spill] sm:$0xff] }
 0x35a   : > { %v4667_v38 = vmax.f32 %v4556_v15, %v4620_v18 }
 0x35b   : > { %v4456_v21 = vmax.f32 %v8248_v19, %v8249_v12  ;;  %v4027_v30 = vpop.f32.mrb[58].mxu0 }
 0x35c   : > { %v4706_v29 = vadd.f32 %v10101_v14, %v4667_v38  ;;  %v4558_v0 = vld [vmem:[#allocation3 + $0xd0] ss:$2 sm:$0xf]  ;;  %v4622_v5 = vld [vmem:[#allocation3 + $0xd1] ss:$2 sm:$0xf]  ;;  %v8250_v58 = vadd.f32 %v4027_v30, %v11133_v32 }
 0x35d   : > { %v4668_v35 = vmax.f32 %v4558_v0, %v4622_v5  ;;  %4504 = vst [vmem:[#allocation3 + $0xe0] sm:$0xff] %v4456_v21  ;;  %v4029_v55 = vpop.f32.mrb[59].mxu0  ;;  %v11145_v32 = vld [vmem:[#allocation31_spill] sm:$0xff] }
 0x35e   : > { %v4738_v50 = vmax.f32 %v4706_v29, 0.0  ;;  %v8251_v51 = vadd.f32 %v4029_v55, %v11134_v47  ;;  %v11146_v47 = vld [vmem:[#allocation32_spill] sm:$0xff] }
 0x35f   : > { %v4033_v17 = vpop.f32.mrb[60].mxu0  ;;  %v4707_v49 = vadd.f32 %v10101_v14, %v4668_v35 }
 0x360   : > { %4770 = vst [vmem:[#allocation4 + $0x80] sm:$0xff] %v4738_v50  ;;  %4947 = vmatmul.mubr.f32.gmra.mrb[112].mxu1 %v4738_v50  ;;  %v4457_v6 = vmax.f32 %v8250_v58, %v8251_v51  ;;  %v8252_v61 = vadd.f32 %v4033_v17, %v11135_v40  ;;  %v4035_v56 = vpop.f32.mrb[61].mxu0  ;;  %v11147_v40 = vld [vmem:[#allocation33_spill] sm:$0xff] }
 0x361   : > { %4952 = vmatprep.mubr.f32.mxu1 %v11124_v13  ;;  %v8253_v31 = vadd.f32 %v4035_v56, %v11136_v53  ;;  %v4739_v9 = vmax.f32 %v4707_v49, 0.0  ;;  %v11148_v53 = vld [vmem:[#allocation34_spill] sm:$0xff] }
 0x362   : > { %4505 = vst [vmem:[#allocation3 + $0xe8] sm:$0xff] %v4457_v6 }
 0x363   : > { %v4458_v42 = vmax.f32 %v8252_v61, %v8253_v31  ;;  %v4039_v33 = vpop.f32.mrb[62].mxu0  ;;  %4771 = vst [vmem:[#allocation4 + $0x88] sm:$0xf] %v4739_v9 }
 0x364   : > { %v4560_v63 = vld [vmem:[#allocation3 + $0xd8] ss:$2 sm:$0xff]  ;;  %v4624_v23 = vld [vmem:[#allocation3 + $0xd9] ss:$2 sm:$0xff]  ;;  %v8254_v59 = vadd.f32 %v4039_v33, %v11137_v57  ;;  %v4041_v22 = vpop.f32.mrb[63].mxu0 }
 0x365   : > { %v4669_v43 = vmax.f32 %v4560_v63, %v4624_v23  ;;  %4506 = vst [vmem:[#allocation3 + $0xf0] sm:$0xff] %v4458_v42  ;;  %v8255_v10 = vadd.f32 %v4041_v22, %v11138_v3  ;;  %v11149_v57 = vld [vmem:[#allocation35_spill] sm:$0xff]  ;;  %v11150_v3 = vld [vmem:[#allocation36_spill] sm:$0xff] }
 0x367   : > { %v4459_v44 = vmax.f32 %v8254_v59, %v8255_v10  ;;  %v4045_v34 = vpop.f32.mrb[64].mxu0  ;;  %v4708_v54 = vadd.f32 %v10101_v14, %v4669_v43 }
 0x368   : > { %v8256_v62 = vadd.f32 %v4045_v34, %v11139_v24  ;;  %v4047_v36 = vpop.f32.mrb[65].mxu0  ;;  %v11151_v24 = vld [vmem:[#allocation37_spill] sm:$0xff] }
 0x369   : > { %v4562_v7 = vld [vmem:[#allocation3 + $0xe8] ss:$2 sm:$0xf]  ;;  %v4626_v45 = vld [vmem:[#allocation3 + $0xe9] ss:$2 sm:$0xf]  ;;  %v8257_v46 = vadd.f32 %v4047_v36, %v11140_v11 }
 0x36a   : > { %4507 = vst [vmem:[#allocation3 + $0xf8] sm:$0xff] %v4459_v44  ;;  %v4670_v20 = vmax.f32 %v4562_v7, %v4626_v45  ;;  %v4740_v37 = vmax.f32 %v4708_v54, 0.0  ;;  %v11152_v11 = vld [vmem:[#allocation38_spill] sm:$0xff] }
 0x36b   : > { %v4460_v25 = vmax.f32 %v8256_v62, %v8257_v46  ;;  %v4051_v60 = vpop.f32.mrb[66].mxu0 }
 0x36c   : > { %v8258_v39 = vadd.f32 %v4051_v60, %v11141_v48  ;;  %v4053_v52 = vpop.f32.mrb[67].mxu0  ;;  %4772 = vst [vmem:[#allocation4 + $0x90] sm:$0xff] %v4740_v37  ;;  %4953 = vmatmul.mubr.f32.gmra.mrb[114].mxu1 %v4740_v37  ;;  %v4709_v16 = vadd.f32 %v10101_v14, %v4670_v20  ;;  %v11153_v48 = vld [vmem:[#allocation39_spill] sm:$0xff] }
 0x36d   : > { %4508 = vst [vmem:[#allocation3 + $0x100] sm:$0xff] %v4460_v25  ;;  %v8259_v8 = vadd.f32 %v4053_v52, %v11142_v26  ;;  %4958 = vmatprep.mubr.f32.mxu1 %v11124_v13  ;;  %v11154_v26 = vld [vmem:[#allocation40_spill] sm:$0xff] }
 0x36e   : > { %v4741_v41 = vmax.f32 %v4709_v16, 0.0 }
 0x36f   : > { %v4461_v27 = vmax.f32 %v8258_v39, %v8259_v8  ;;  %v4057_v1 = vpop.f32.mrb[68].mxu0 }
 0x370   : > { %v8260_v19 = vadd.f32 %v4057_v1, %v11143_v2  ;;  %v4059_v4 = vpop.f32.mrb[69].mxu0  ;;  %4773 = vst [vmem:[#allocation4 + $0x98] sm:$0xf] %v4741_v41  ;;  %v11155_v2 = vld [vmem:[#allocation41_spill] sm:$0xff] }
 0x371   : > { %v4564_v15 = vld [vmem:[#allocation3 + $0xf0] ss:$2 sm:$0xff]  ;;  %v4628_v18 = vld [vmem:[#allocation3 + $0xf1] ss:$2 sm:$0xff]  ;;  %4509 = vst [vmem:[#allocation3 + $0x108] sm:$0xff] %v4461_v27  ;;  %v8261_v12 = vadd.f32 %v4059_v4, %v11144_v28 }
 0x372   : > { %v4671_v38 = vmax.f32 %v4564_v15, %v4628_v18  ;;  %v11156_v28 = vld [vmem:[#allocation42_spill] sm:$0xff] }
 0x373   : > { %v4462_v21 = vmax.f32 %v8260_v19, %v8261_v12  ;;  %v4063_v30 = vpop.f32.mrb[70].mxu0 }
 0x374   : > { %v4710_v29 = vadd.f32 %v10101_v14, %v4671_v38  ;;  %v4566_v0 = vld [vmem:[#allocation3 + $0x100] ss:$2 sm:$0xf]  ;;  %v4630_v5 = vld [vmem:[#allocation3 + $0x101] ss:$2 sm:$0xf]  ;;  %v8262_v58 = vadd.f32 %v4063_v30, %v11145_v32 }
 0x375   : > { %v4672_v35 = vmax.f32 %v4566_v0, %v4630_v5  ;;  %4510 = vst [vmem:[#allocation3 + $0x110] sm:$0xff] %v4462_v21  ;;  %v4065_v55 = vpop.f32.mrb[71].mxu0  ;;  %v11157_v32 = vld [vmem:[#allocation43_spill] sm:$0xff] }
 0x376   : > { %v4742_v50 = vmax.f32 %v4710_v29, 0.0  ;;  %v8263_v51 = vadd.f32 %v4065_v55, %v11146_v47  ;;  %v11158_v47 = vld [vmem:[#allocation44_spill] sm:$0xff] }
 0x377   : > { %v4069_v17 = vpop.f32.mrb[72].mxu0  ;;  %v4711_v49 = vadd.f32 %v10101_v14, %v4672_v35 }
 0x378   : > { %4774 = vst [vmem:[#allocation4 + $0xa0] sm:$0xff] %v4742_v50  ;;  %4959 = vmatmul.mubr.f32.gmra.mrb[116].mxu1 %v4742_v50  ;;  %v4463_v6 = vmax.f32 %v8262_v58, %v8263_v51  ;;  %v8264_v61 = vadd.f32 %v4069_v17, %v11147_v40  ;;  %v4071_v56 = vpop.f32.mrb[73].mxu0  ;;  %v11159_v40 = vld [vmem:[#allocation45_spill] sm:$0xff] }
 0x379   : > { %4964 = vmatprep.mubr.f32.mxu1 %v11124_v13  ;;  %v8265_v31 = vadd.f32 %v4071_v56, %v11148_v53  ;;  %v4743_v9 = vmax.f32 %v4711_v49, 0.0  ;;  %v11160_v53 = vld [vmem:[#allocation46_spill] sm:$0xff] }
 0x37a   : > { %4511 = vst [vmem:[#allocation3 + $0x118] sm:$0xff] %v4463_v6 }
 0x37b   : > { %v4464_v42 = vmax.f32 %v8264_v61, %v8265_v31  ;;  %v4075_v33 = vpop.f32.mrb[74].mxu0  ;;  %4775 = vst [vmem:[#allocation4 + $0xa8] sm:$0xf] %v4743_v9 }
 0x37c   : > { %v4568_v63 = vld [vmem:[#allocation3 + $0x108] ss:$2 sm:$0xff]  ;;  %v4632_v23 = vld [vmem:[#allocation3 + $0x109] ss:$2 sm:$0xff]  ;;  %v8266_v59 = vadd.f32 %v4075_v33, %v11149_v57  ;;  %v4077_v22 = vpop.f32.mrb[75].mxu0  ;;  %v11161_v57 = vld [vmem:[#allocation47_spill] sm:$0xff] }
 0x37d   : > { %v4673_v43 = vmax.f32 %v4568_v63, %v4632_v23  ;;  %4512 = vst [vmem:[#allocation3 + $0x120] sm:$0xff] %v4464_v42  ;;  %v8267_v10 = vadd.f32 %v4077_v22, %v11150_v3  ;;  %v11162_v3 = vld [vmem:[#allocation48_spill] sm:$0xff] }
 0x37f   : > { %v4465_v44 = vmax.f32 %v8266_v59, %v8267_v10  ;;  %v4081_v34 = vpop.f32.mrb[76].mxu0  ;;  %v4712_v54 = vadd.f32 %v10101_v14, %v4673_v43 }
 0x380   : > { %v8268_v62 = vadd.f32 %v4081_v34, %v11151_v24  ;;  %v4083_v36 = vpop.f32.mrb[77].mxu0  ;;  %v11163_v24 = vld [vmem:[#allocation49_spill] sm:$0xff] }
 0x381   : > { %v4570_v7 = vld [vmem:[#allocation3 + $0x118] ss:$2 sm:$0xf]  ;;  %v4634_v45 = vld [vmem:[#allocation3 + $0x119] ss:$2 sm:$0xf]  ;;  %v8269_v46 = vadd.f32 %v4083_v36, %v11152_v11 }
 0x382   : > { %4513 = vst [vmem:[#allocation3 + $0x128] sm:$0xff] %v4465_v44  ;;  %v4674_v20 = vmax.f32 %v4570_v7, %v4634_v45  ;;  %v4744_v37 = vmax.f32 %v4712_v54, 0.0  ;;  %v11164_v11 = vld [vmem:[#allocation50_spill] sm:$0xff] }
 0x383   : > { %v4466_v25 = vmax.f32 %v8268_v62, %v8269_v46  ;;  %v4087_v60 = vpop.f32.mrb[78].mxu0 }
 0x384   : > { %v8270_v39 = vadd.f32 %v4087_v60, %v11153_v48  ;;  %v4089_v52 = vpop.f32.mrb[79].mxu0  ;;  %4776 = vst [vmem:[#allocation4 + $0xb0] sm:$0xff] %v4744_v37  ;;  %4965 = vmatmul.mubr.f32.gmra.mrb[118].mxu1 %v4744_v37  ;;  %v4713_v16 = vadd.f32 %v10101_v14, %v4674_v20  ;;  %v11165_v48 = vld [vmem:[#allocation51_spill] sm:$0xff] }
 0x385   : > { %4514 = vst [vmem:[#allocation3 + $0x130] sm:$0xff] %v4466_v25  ;;  %v8271_v8 = vadd.f32 %v4089_v52, %v11154_v26  ;;  %4970 = vmatprep.mubr.f32.mxu1 %v11124_v13  ;;  %v11166_v26 = vld [vmem:[#allocation52_spill] sm:$0xff] }
 0x386   : > { %v4745_v41 = vmax.f32 %v4713_v16, 0.0 }
 0x387   : > { %v4467_v27 = vmax.f32 %v8270_v39, %v8271_v8  ;;  %v4093_v1 = vpop.f32.mrb[80].mxu0 }
 0x388   : > { %v8272_v19 = vadd.f32 %v4093_v1, %v11155_v2  ;;  %v4095_v4 = vpop.f32.mrb[81].mxu0  ;;  %4777 = vst [vmem:[#allocation4 + $0xb8] sm:$0xf] %v4745_v41  ;;  %v11167_v2 = vld [vmem:[#allocation53_spill] sm:$0xff] }
 0x389   : > { %v4572_v15 = vld [vmem:[#allocation3 + $0x120] ss:$2 sm:$0xff]  ;;  %v4636_v18 = vld [vmem:[#allocation3 + $0x121] ss:$2 sm:$0xff]  ;;  %4515 = vst [vmem:[#allocation3 + $0x138] sm:$0xff] %v4467_v27  ;;  %v8273_v12 = vadd.f32 %v4095_v4, %v11156_v28  ;;  %v11168_v28 = vld [vmem:[#allocation54_spill] sm:$0xff] }
 0x38a   : > { %v4675_v38 = vmax.f32 %v4572_v15, %v4636_v18 }
 0x38b   : > { %v4468_v21 = vmax.f32 %v8272_v19, %v8273_v12  ;;  %v4099_v30 = vpop.f32.mrb[82].mxu0 }
 0x38c   : > { %v4714_v29 = vadd.f32 %v10101_v14, %v4675_v38  ;;  %v4574_v0 = vld [vmem:[#allocation3 + $0x130] ss:$2 sm:$0xf]  ;;  %v4638_v5 = vld [vmem:[#allocation3 + $0x131] ss:$2 sm:$0xf]  ;;  %v8274_v58 = vadd.f32 %v4099_v30, %v11157_v32 }
 0x38d   : > { %v4676_v35 = vmax.f32 %v4574_v0, %v4638_v5  ;;  %4516 = vst [vmem:[#allocation3 + $0x140] sm:$0xff] %v4468_v21  ;;  %v4101_v55 = vpop.f32.mrb[83].mxu0  ;;  %v8753_v30 = vld [vmem:[%s11066_s2] ss:$0 sm:$0xff] }
 0x38e   : > { %v4746_v50 = vmax.f32 %v4714_v29, 0.0  ;;  %v8275_v51 = vadd.f32 %v4101_v55, %v11158_v47  ;;  %v11169_v32 = vld [vmem:[#allocation55_spill] sm:$0xff]  ;;  %v11170_v47 = vld [vmem:[#allocation56_spill] sm:$0xff] }
 0x38f   : > { %v4105_v17 = vpop.f32.mrb[84].mxu0  ;;  %v4715_v49 = vadd.f32 %v10101_v14, %v4676_v35 }
 0x390   : > { %4778 = vst [vmem:[#allocation4 + $0xc0] sm:$0xff] %v4746_v50  ;;  %4971 = vmatmul.mubr.f32.gmra.mrb[120].mxu1 %v4746_v50  ;;  %v4469_v6 = vmax.f32 %v8274_v58, %v8275_v51  ;;  %v8276_v61 = vadd.f32 %v4105_v17, %v11159_v40  ;;  %v4107_v56 = vpop.f32.mrb[85].mxu0 }
 0x391   : > { %4976 = vmatprep.mubr.f32.mxu1 %v11124_v13  ;;  %v8277_v31 = vadd.f32 %v4107_v56, %v11160_v53  ;;  %v4747_v9 = vmax.f32 %v4715_v49, 0.0 }
 0x392   : > { %4517 = vst [vmem:[#allocation3 + $0x148] sm:$0xff] %v4469_v6 }
 0x393   : > { %v4470_v42 = vmax.f32 %v8276_v61, %v8277_v31  ;;  %v4111_v33 = vpop.f32.mrb[86].mxu0  ;;  %4779 = vst [vmem:[#allocation4 + $0xc8] sm:$0xf] %v4747_v9 }
 0x394   : > { %v4576_v63 = vld [vmem:[#allocation3 + $0x138] ss:$2 sm:$0xff]  ;;  %v4640_v23 = vld [vmem:[#allocation3 + $0x139] ss:$2 sm:$0xff]  ;;  %v8278_v59 = vadd.f32 %v4111_v33, %v11161_v57  ;;  %v4113_v22 = vpop.f32.mrb[87].mxu0  ;;  %v7490_v57 = vld [vmem:[%s11067_s3 + $0x228] sm:$0xff] }
 0x395   : > { %v4677_v43 = vmax.f32 %v4576_v63, %v4640_v23  ;;  %4518 = vst [vmem:[#allocation3 + $0x150] sm:$0xff] %v4470_v42  ;;  %v8279_v10 = vadd.f32 %v4113_v22, %v11162_v3  ;;  %v7485_v63 = vld [vmem:[%s11067_s3 + $0x200] sm:$0xff]  ;;  %v7487_v23 = vld [vmem:[%s11067_s3 + $0x210] sm:$0xff] }
 0x397   : > { %v4471_v44 = vmax.f32 %v8278_v59, %v8279_v10  ;;  %v4117_v34 = vpop.f32.mrb[88].mxu0  ;;  %v4716_v54 = vadd.f32 %v10101_v14, %v4677_v43  ;;  %v7492_v59 = vld [vmem:[%s11067_s3 + $0x238] sm:$0xff]  ;;  %v7966_v43 = vpack.c.bf16 %v7487_v23, %v7485_v63  ;;  %v7489_v10 = vld [vmem:[%s11067_s3 + $0x220] sm:$0xff] }
 0x398   : > { %v8280_v62 = vadd.f32 %v4117_v34, %v11163_v24  ;;  %v4119_v36 = vpop.f32.mrb[89].mxu0  ;;  %v7968_v3 = vpack.c.bf16 %v7492_v59, %v7490_v57  ;;  %v7494_v24 = vld [vmem:[%s11067_s3 + $0x248] sm:$0xff]  ;;  %v7517_v57 = vld [vmem:[%s11067_s3 + $0x300] sm:$0xff]  ;;  %v7519_v59 = vld [vmem:[%s11067_s3 + $0x310] sm:$0xff] }
 0x399   : > { %v4578_v7 = vld [vmem:[#allocation3 + $0x148] ss:$2 sm:$0xf]  ;;  %v4642_v45 = vld [vmem:[#allocation3 + $0x149] ss:$2 sm:$0xf]  ;;  %v8281_v46 = vadd.f32 %v4119_v36, %v11164_v11 }
 0x39a   : > { %4519 = vst [vmem:[#allocation3 + $0x158] sm:$0xff] %v4471_v44  ;;  %v4678_v20 = vmax.f32 %v4578_v7, %v4642_v45  ;;  %v4748_v37 = vmax.f32 %v4716_v54, 0.0  ;;  %v7491_v44 = vld [vmem:[%s11067_s3 + $0x230] sm:$0xff]  ;;  %v5059_v54 = vld [vmem:[#allocation4 + $0x1] sm:$0xff] }
 0x39b   : > { %v4472_v25 = vmax.f32 %v8280_v62, %v8281_v46  ;;  %v4123_v60 = vpop.f32.mrb[90].mxu0  ;;  %v7496_v62 = vld [vmem:[%s11067_s3 + $0x258] sm:$0xff]  ;;  %v7970_v36 = vpack.c.bf16 %v7491_v44, %v7489_v10  ;;  %v7493_v45 = vld [vmem:[%s11067_s3 + $0x240] sm:$0xff]  ;;  %v7495_v11 = vld [vmem:[%s11067_s3 + $0x250] sm:$0xff]  ;;  %v7998_v10 = vpack.c.bf16 %v7519_v59, %v7517_v57 }
 0x39c   : > { %v8282_v39 = vadd.f32 %v4123_v60, %v11165_v48  ;;  %v4125_v52 = vpop.f32.mrb[91].mxu0  ;;  %4780 = vst [vmem:[#allocation4 + $0xd0] sm:$0xff] %v4748_v37  ;;  %4977 = vmatmul.mubr.f32.gmra.mrb[122].mxu1 %v4748_v37  ;;  %v4717_v16 = vadd.f32 %v10101_v14, %v4678_v20  ;;  %v7972_v7 = vpack.c.bf16 %v7496_v62, %v7494_v24  ;;  %v5060_v46 = vld [vmem:[#allocation4 + $0x11] sm:$0xff]  ;;  %v7498_v20 = vld [vmem:[%s11067_s3 + $0x268] sm:$0xff]  ;;  %v7497_v48 = vld [vmem:[%s11067_s3 + $0x260] sm:$0xff] }
 0x39d   : > { %4520 = vst [vmem:[#allocation3 + $0x160] sm:$0xff] %v4472_v25  ;;  %v8283_v8 = vadd.f32 %v4125_v52, %v11166_v26  ;;  %4982 = vmatprep.mubr.f32.mxu1 %v11124_v13  ;;  %v7500_v37 = vld [vmem:[%s11067_s3 + $0x278] sm:$0xff]  ;;  %v7974_v25 = vpack.c.bf16 %v7495_v11, %v7493_v45  ;;  %v5061_v52 = vld [vmem:[#allocation4 + $0x21] sm:$0xff] }
 0x39e   : > { %v4749_v41 = vmax.f32 %v4717_v16, 0.0  ;;  %v7976_v60 = vpack.c.bf16 %v7500_v37, %v7498_v20  ;;  %v7502_v16 = vld [vmem:[%s11067_s3 + $0x288] sm:$0xff]  ;;  %v7504_v26 = vld [vmem:[%s11067_s3 + $0x298] sm:$0xff]  ;;  %v7525_v11 = vld [vmem:[%s11067_s3 + $0x340] sm:$0xff] }
 0x39f   : > { %v4473_v27 = vmax.f32 %v8282_v39, %v8283_v8  ;;  %v4129_v1 = vpop.f32.mrb[92].mxu0  ;;  %v7499_v39 = vld [vmem:[%s11067_s3 + $0x270] sm:$0xff]  ;;  %v5365_v24 = vld [vmem:[#allocation4 + $0x2] sm:$0xff] }
 0x3a0   : > { %v8284_v19 = vadd.f32 %v4129_v1, %v11167_v2  ;;  %v4131_v4 = vpop.f32.mrb[93].mxu0  ;;  %4781 = vst [vmem:[#allocation4 + $0xd8] sm:$0xf] %v4749_v41  ;;  %v7978_v8 = vpack.c.bf16 %v7499_v39, %v7497_v48  ;;  %v7980_v41 = vpack.c.bf16 %v7504_v26, %v7502_v16  ;;  %v7503_v1 = vld [vmem:[%s11067_s3 + $0x290] sm:$0xff]  ;;  %v7508_v2 = vld [vmem:[%s11067_s3 + $0x2b8] sm:$0xff]  ;;  %v7526_v62 = vld [vmem:[%s11067_s3 + $0x348] sm:$0xff] }
 0x3a1   : > { %v4580_v15 = vld [vmem:[#allocation3 + $0x150] ss:$2 sm:$0xff]  ;;  %v4644_v18 = vld [vmem:[#allocation3 + $0x151] ss:$2 sm:$0xff]  ;;  %4521 = vst [vmem:[#allocation3 + $0x168] sm:$0xff] %v4473_v27  ;;  %v8285_v12 = vadd.f32 %v4131_v4, %v11168_v28  ;;  %v7501_v27 = vld [vmem:[%s11067_s3 + $0x280] sm:$0xff] }
 0x3a2   : > { %v4679_v38 = vmax.f32 %v4580_v15, %v4644_v18  ;;  %v5062_v15 = vld [vmem:[#allocation4 + $0x31] sm:$0xff]  ;;  %v7506_v18 = vld [vmem:[%s11067_s3 + $0x2a8] sm:$0xff]  ;;  %v7529_v39 = vld [vmem:[%s11067_s3 + $0x360] sm:$0xff] }
 0x3a3   : > { %v4474_v21 = vmax.f32 %v8284_v19, %v8285_v12  ;;  %v4135_v14 = vpop.f32.mrb[94].mxu0  ;;  %v7982_v19 = vpack.c.bf16 %v7503_v1, %v7501_v27  ;;  %v7984_v4 = vpack.c.bf16 %v7508_v2, %v7506_v18  ;;  %v7507_v28 = vld [vmem:[%s11067_s3 + $0x2b0] sm:$0xff]  ;;  %v5063_v12 = vld [vmem:[#allocation4 + $0x41] sm:$0xff] }
 0x3a4   : > { %v4718_v29 = vadd.f32 %v8753_v30, %v4679_v38  ;;  %v4582_v0 = vld [vmem:[#allocation3 + $0x160] ss:$2 sm:$0xf]  ;;  %v4646_v5 = vld [vmem:[#allocation3 + $0x161] ss:$2 sm:$0xf]  ;;  %v8286_v58 = vadd.f32 %v4135_v14, %v11169_v32 }
 0x3a5   : > { %v4680_v35 = vmax.f32 %v4582_v0, %v4646_v5  ;;  %4522 = vst [vmem:[#allocation3 + $0x170] sm:$0xff] %v4474_v21  ;;  %v4137_v55 = vpop.f32.mrb[95].mxu0  ;;  %v7505_v38 = vld [vmem:[%s11067_s3 + $0x2a0] sm:$0xff]  ;;  %v7510_v21 = vld [vmem:[%s11067_s3 + $0x2c8] sm:$0xff]  ;;  %v7512_v14 = vld [vmem:[%s11067_s3 + $0x2d8] sm:$0xff] }
 0x3a6   : > { %v4750_v50 = vmax.f32 %v4718_v29, 0.0  ;;  %v8287_v51 = vadd.f32 %v4137_v55, %v11170_v47  ;;  %v7988_v29 = vpack.c.bf16 %v7512_v14, %v7510_v21  ;;  %v7509_v0 = vld [vmem:[%s11067_s3 + $0x2c0] sm:$0xff]  ;;  %v7511_v5 = vld [vmem:[%s11067_s3 + $0x2d0] sm:$0xff]  ;;  %v7530_v37 = vld [vmem:[%s11067_s3 + $0x368] sm:$0xff] }
 0x3a7   : > { %v4719_v17 = vadd.f32 %v8753_v30, %v4680_v35  ;;  %v5064_v32 = vld [vmem:[#allocation4 + $0x51] sm:$0xff]  ;;  %v7990_v55 = vpack.c.bf16 %v7511_v5, %v7509_v0  ;;  %v7513_v47 = vld [vmem:[%s11067_s3 + $0x2e0] sm:$0xff]  ;;  %v7534_v26 = vld [vmem:[%s11067_s3 + $0x388] sm:$0xff] }
 0x3a8   : > { %4782 = vst [vmem:[#allocation4 + $0xe0] sm:$0xff] %v4750_v50  ;;  %4983 = vmatmul.mubr.f32.gmra.mrb[124].mxu1 %v4750_v50  ;;  %v4475_v49 = vmax.f32 %v8286_v58, %v8287_v51  ;;  %v7514_v58 = vld [vmem:[%s11067_s3 + $0x2e8] sm:$0xff]  ;;  %v7516_v35 = vld [vmem:[%s11067_s3 + $0x2f8] sm:$0xff]  ;;  %v7515_v51 = vld [vmem:[%s11067_s3 + $0x2f0] sm:$0xff] }
 0x3a9   : > { %4988 = vmatprep.mubr.f32.mxu1 %v11124_v13  ;;  %v4751_v6 = vmax.f32 %v4719_v17, 0.0  ;;  %v7992_v50 = vpack.c.bf16 %v7516_v35, %v7514_v58  ;;  %v5065_v17 = vld [vmem:[#allocation4 + $0x61] sm:$0xff]  ;;  %v5072_v63 = vld [vmem:[#allocation4 + $0xd1] sm:$0xff] }
 0x3aa   : > { %4523 = vst [vmem:[#allocation3 + $0x178] sm:$0xff] %v4475_v49  ;;  %v7518_v49 = vld [vmem:[%s11067_s3 + $0x308] sm:$0xff]  ;;  %v5366_v20 = vld [vmem:[#allocation4 + $0x12] sm:$0xff]  ;;  %v7533_v1 = vld [vmem:[%s11067_s3 + $0x380] sm:$0xff] }
 0x3ab   : > { %4783 = vst [vmem:[#allocation4 + $0xe8] sm:$0xf] %v4751_v6  ;;  %v7520_v6 = vld [vmem:[%s11067_s3 + $0x318] sm:$0xff]  ;;  %v5367_v16 = vld [vmem:[#allocation4 + $0x22] sm:$0xff] }
 0x3ac   : > { %v4584_v40 = vld [vmem:[#allocation3 + $0x168] ss:$2 sm:$0xff]  ;;  %v4648_v61 = vld [vmem:[#allocation3 + $0x169] ss:$2 sm:$0xff]  ;;  %v7541_v5 = vld [vmem:[%s11067_s3 + $0x3c0] sm:$0xff] }
 0x3ad   : > { %v4681_v56 = vmax.f32 %v4584_v40, %v4648_v61  ;;  %v7994_v40 = vpack.c.bf16 %v7515_v51, %v7513_v47  ;;  %v7996_v61 = vpack.c.bf16 %v7520_v6, %v7518_v49  ;;  %v5368_v18 = vld [vmem:[#allocation4 + $0x32] sm:$0xff]  ;;  %v7538_v2 = vld [vmem:[%s11067_s3 + $0x3a8] sm:$0xff]  ;;  %v7545_v51 = vld [vmem:[%s11067_s3 + $0x3e0] sm:$0xff] }
 0x3ae   : > { %v5369_v21 = vld [vmem:[#allocation4 + $0x42] sm:$0xff]  ;;  %v5370_v58 = vld [vmem:[#allocation4 + $0x52] sm:$0xff] }
 0x3af   : > { %v4720_v53 = vadd.f32 %v8753_v30, %v4681_v56  ;;  %v5066_v56 = vld [vmem:[#allocation4 + $0x71] sm:$0xff]  ;;  %v7542_v14 = vld [vmem:[%s11067_s3 + $0x3c8] sm:$0xff]  ;;  %v7549_v59 = vld [vmem:[%s11067_s3 + $0x400] sm:$0xff] }
 0x3b0   : > { %v7546_v35 = vld [vmem:[%s11067_s3 + $0x3e8] sm:$0xff] }
 0x3b1   : > { %v4586_v31 = vld [vmem:[#allocation3 + $0x178] ss:$2 sm:$0xf]  ;;  %v4650_v9 = vld [vmem:[#allocation3 + $0x179] ss:$2 sm:$0xf] }
 0x3b2   : > { %v4682_v42 = vmax.f32 %v4586_v31, %v4650_v9  ;;  %v4752_v33 = vmax.f32 %v4720_v53, 0.0  ;;  %v5067_v53 = vld [vmem:[#allocation4 + $0x81] sm:$0xff]  ;;  %v5068_v31 = vld [vmem:[#allocation4 + $0x91] sm:$0xff] }
 0x3b3   : > { %v5069_v9 = vld [vmem:[#allocation4 + $0xa1] sm:$0xff] }
 0x3b4   : > { %4784 = vst [vmem:[#allocation4 + $0xf0] sm:$0xff] %v4752_v33  ;;  %4989 = vmatmul.mubr.f32.gmra.mrb[126].mxu1 %v4752_v33  ;;  %v4721_v22 = vadd.f32 %v8753_v30, %v4682_v42  ;;  %v7986_v30 = vpack.c.bf16 %v7507_v28, %v7505_v38  ;;  %v5070_v42 = vld [vmem:[#allocation4 + $0xb1] sm:$0xff]  ;;  %v5071_v33 = vld [vmem:[#allocation4 + $0xc1] sm:$0xff] }
 0x3b5   : > { %5172 = vmatprep.mubr.f32.mxu1 %v11124_v13  ;;  %v5073_v23 = vld [vmem:[#allocation4 + $0xe1] sm:$0xff] }
 0x3b6   : > { %v4753_v34 = vmax.f32 %v4721_v22, 0.0  ;;  %v7537_v28 = vld [vmem:[%s11067_s3 + $0x3a0] sm:$0xff]  ;;  %v7550_v6 = vld [vmem:[%s11067_s3 + $0x408] sm:$0xff] }
 0x3b7   : > { %v5371_v49 = vld [vmem:[#allocation4 + $0x62] sm:$0xff] }
 0x3b8   : > { %5173 = vmatmul.mubr.f32.vlgmr.msra.gmra.mrb[96].mxu1 %v5059_v54  ;;  %4785 = vst [vmem:[#allocation4 + $0xf8] sm:$0xf] %v4753_v34  ;;  %v7521_v34 = vld [vmem:[%s11067_s3 + $0x320] sm:$0xff]  ;;  %v7523_v54 = vld [vmem:[%s11067_s3 + $0x330] sm:$0xff] }
 0x3b9   : > { %7967 = vmatpush1.bf16.msra.mxu1 %v7966_v43  ;;  %5178 = vmatprep.mubr.f32.mxu1 %v11124_v13  ;;  %v7522_v43 = vld [vmem:[%s11067_s3 + $0x328] sm:$0xff] }
 0x3ba   : > { %7969 = vmatprep.subr.bf16.mxu1 %v7968_v3  ;;  %v7524_v3 = vld [vmem:[%s11067_s3 + $0x338] sm:$0xff]  ;;  %v5379_v57 = vld [vmem:[#allocation4 + $0xe2] sm:$0xff] }
 0x3bb   : > { %v8000_v44 = vpack.c.bf16 %v7524_v3, %v7522_v43  ;;  %v7554_v3 = vld [vmem:[%s11067_s3 + $0x428] sm:$0xff] }
 0x3bc   : > { %5179 = vmatmul.mubr.f32.gmra.mrb[98].mxu1 %v5060_v46  ;;  %v7527_v46 = vld [vmem:[%s11067_s3 + $0x350] sm:$0xff] }
 0x3bd   : > { %5184 = vmatprep.mubr.f32.mxu1 %v11124_v13  ;;  %7971 = vmatpush1.bf16.msra.mxu1 %v7970_v36  ;;  %v7528_v36 = vld [vmem:[%s11067_s3 + $0x358] sm:$0xff] }
 0x3be   : > { %7973 = vmatprep.subr.bf16.mxu1 %v7972_v7  ;;  %v8002_v7 = vpack.c.bf16 %v7523_v54, %v7521_v34  ;;  %v8004_v45 = vpack.c.bf16 %v7528_v36, %v7526_v62  ;;  %v7553_v54 = vld [vmem:[%s11067_s3 + $0x420] sm:$0xff]  ;;  %v7558_v36 = vld [vmem:[%s11067_s3 + $0x448] sm:$0xff] }
 0x3bf   : > { %v5074_v22 = vld [vmem:[#allocation4 + $0xf1] sm:$0xff]  ;;  %v5671_v62 = vld [vmem:[#allocation4 + $0x3] sm:$0xff] }
 0x3c0   : > { %5185 = vmatmul.mubr.f32.gmra.mrb[100].mxu1 %v5061_v52  ;;  %v7531_v52 = vld [vmem:[%s11067_s3 + $0x370] sm:$0xff] }
 0x3c1   : > { %5190 = vmatprep.mubr.f32.mxu1 %v11124_v13  ;;  %7975 = vmatpush1.bf16.msra.mxu1 %v7974_v25  ;;  %v7532_v25 = vld [vmem:[%s11067_s3 + $0x378] sm:$0xff] }
 0x3c2   : > { %7977 = vmatprep.subr.bf16.mxu1 %v7976_v60  ;;  %v8006_v60 = vpack.c.bf16 %v7527_v46, %v7525_v11  ;;  %v8008_v48 = vpack.c.bf16 %v7532_v25, %v7530_v37  ;;  %v5380_v43 = vld [vmem:[#allocation4 + $0xf2] sm:$0xff]  ;;  %v7557_v46 = vld [vmem:[%s11067_s3 + $0x440] sm:$0xff]  ;;  %v7562_v25 = vld [vmem:[%s11067_s3 + $0x468] sm:$0xff] }
 0x3c3   : > { %v5672_v37 = vld [vmem:[#allocation4 + $0x13] sm:$0xff] }
 0x3c4   : > { %5191 = vmatmul.mubr.f32.gmra.mrb[102].mxu1 %v5062_v15  ;;  %v7535_v15 = vld [vmem:[%s11067_s3 + $0x390] sm:$0xff] }
 0x3c5   : > { %5196 = vmatprep.mubr.f32.mxu1 %v11124_v13  ;;  %7979 = vmatpush1.bf16.msra.mxu1 %v7978_v8  ;;  %v7536_v8 = vld [vmem:[%s11067_s3 + $0x398] sm:$0xff] }
 0x3c6   : > { %7981 = vmatprep.subr.bf16.mxu1 %v7980_v41  ;;  %v8010_v41 = vpack.c.bf16 %v7531_v52, %v7529_v39  ;;  %v8012_v27 = vpack.c.bf16 %v7536_v8, %v7534_v26  ;;  %v7561_v52 = vld [vmem:[%s11067_s3 + $0x460] sm:$0xff]  ;;  %v7566_v8 = vld [vmem:[%s11067_s3 + $0x488] sm:$0xff] }
 0x3c7   : > { %v5673_v26 = vld [vmem:[#allocation4 + $0x23] sm:$0xff] }
 0x3c8   : > { %5197 = vmatmul.mubr.f32.gmra.mrb[104].mxu1 %v5063_v12  ;;  %v7539_v12 = vld [vmem:[%s11067_s3 + $0x3b0] sm:$0xff] }
 0x3c9   : > { %5202 = vmatprep.mubr.f32.mxu1 %v11124_v13  ;;  %7983 = vmatpush1.bf16.msra.mxu1 %v7982_v19  ;;  %v7540_v19 = vld [vmem:[%s11067_s3 + $0x3b8] sm:$0xff] }
 0x3ca   : > { %7985 = vmatprep.subr.bf16.mxu1 %v7984_v4  ;;  %v8014_v4 = vpack.c.bf16 %v7535_v15, %v7533_v1  ;;  %v8016_v38 = vpack.c.bf16 %v7540_v19, %v7538_v2  ;;  %v7565_v15 = vld [vmem:[%s11067_s3 + $0x480] sm:$0xff]  ;;  %v5674_v2 = vld [vmem:[#allocation4 + $0x33] sm:$0xff]  ;;  %v7570_v19 = vld [vmem:[%s11067_s3 + $0x4a8] sm:$0xff] }
 0x3cc   : > { %5203 = vmatmul.mubr.f32.gmra.mrb[106].mxu1 %v5064_v32  ;;  %v7543_v32 = vld [vmem:[%s11067_s3 + $0x3d0] sm:$0xff] }
 0x3cd   : > { %5208 = vmatprep.mubr.f32.mxu1 %v11124_v13  ;;  %7987 = vmatpush1.bf16.msra.mxu1 %v7986_v30  ;;  %v7544_v30 = vld [vmem:[%s11067_s3 + $0x3d8] sm:$0xff] }
 0x3ce   : > { %7989 = vmatprep.subr.bf16.mxu1 %v7988_v29  ;;  %v8018_v29 = vpack.c.bf16 %v7539_v12, %v7537_v28  ;;  %v8020_v0 = vpack.c.bf16 %v7544_v30, %v7542_v14  ;;  %v7569_v12 = vld [vmem:[%s11067_s3 + $0x4a0] sm:$0xff]  ;;  %v7574_v30 = vld [vmem:[%s11067_s3 + $0x4c8] sm:$0xff] }
 0x3cf   : > { %v5675_v14 = vld [vmem:[#allocation4 + $0x43] sm:$0xff] }
 0x3d0   : > { %5209 = vmatmul.mubr.f32.gmra.mrb[108].mxu1 %v5065_v17  ;;  %v7547_v17 = vld [vmem:[%s11067_s3 + $0x3f0] sm:$0xff] }
 0x3d1   : > { %5214 = vmatprep.mubr.f32.mxu1 %v11124_v13  ;;  %7991 = vmatpush1.bf16.msra.mxu1 %v7990_v55  ;;  %v7548_v55 = vld [vmem:[%s11067_s3 + $0x3f8] sm:$0xff] }
 0x3d2   : > { %7993 = vmatprep.subr.bf16.mxu1 %v7992_v50  ;;  %v8022_v50 = vpack.c.bf16 %v7543_v32, %v7541_v5  ;;  %v8024_v47 = vpack.c.bf16 %v7548_v55, %v7546_v35  ;;  %v7573_v32 = vld [vmem:[%s11067_s3 + $0x4c0] sm:$0xff]  ;;  %v5676_v35 = vld [vmem:[#allocation4 + $0x53] sm:$0xff]  ;;  %v7578_v55 = vld [vmem:[%s11067_s3 + $0x4e8] sm:$0xff] }
 0x3d4   : > { %5215 = vmatmul.mubr.f32.gmra.mrb[110].mxu1 %v5066_v56 }
 0x3d5   : > { %5220 = vmatprep.mubr.f32.mxu1 %v11124_v13  ;;  %7995 = vmatpush1.bf16.msra.mxu1 %v7994_v40  ;;  %v7552_v40 = vld [vmem:[%s11067_s3 + $0x418] sm:$0xff] }
 0x3d6   : > { %7997 = vmatprep.subr.bf16.mxu1 %v7996_v61  ;;  %v8026_v61 = vpack.c.bf16 %v7547_v17, %v7545_v51  ;;  %v8028_v56 = vpack.c.bf16 %v7552_v40, %v7550_v6  ;;  %v7577_v17 = vld [vmem:[%s11067_s3 + $0x4e0] sm:$0xff] }
 0x3d7   : > { %v5677_v6 = vld [vmem:[#allocation4 + $0x63] sm:$0xff] }
 0x3d8   : > { %5221 = vmatmul.mubr.f32.gmra.mrb[112].mxu1 %v5067_v53  ;;  %v5372_v53 = vld [vmem:[#allocation4 + $0x72] sm:$0xff] }
 0x3d9   : > { %5226 = vmatprep.mubr.f32.mxu1 %v11124_v13 }
 0x3dc   : > { %5227 = vmatmul.mubr.f32.gmra.mrb[114].mxu1 %v5068_v31  ;;  %v5373_v31 = vld [vmem:[#allocation4 + $0x82] sm:$0xff] }
 0x3dd   : > { %5232 = vmatprep.mubr.f32.mxu1 %v11124_v13 }
 0x3e0   : > { %5233 = vmatmul.mubr.f32.gmra.mrb[116].mxu1 %v5069_v9  ;;  %v5374_v9 = vld [vmem:[#allocation4 + $0x92] sm:$0xff] }
 0x3e1   : > { %5238 = vmatprep.mubr.f32.mxu1 %v11124_v13 }
 0x3e4   : > { %5239 = vmatmul.mubr.f32.gmra.mrb[118].mxu1 %v5070_v42  ;;  %v5375_v42 = vld [vmem:[#allocation4 + $0xa2] sm:$0xff] }
 0x3e5   : > { %5244 = vmatprep.mubr.f32.mxu1 %v11124_v13 }
 0x3e8   : > { %5245 = vmatmul.mubr.f32.gmra.mrb[120].mxu1 %v5071_v33  ;;  %v5376_v33 = vld [vmem:[#allocation4 + $0xb2] sm:$0xff] }
 0x3e9   : > { %5250 = vmatprep.mubr.f32.mxu1 %v11124_v13 }
 0x3ec   : > { %5251 = vmatmul.mubr.f32.gmra.mrb[122].mxu1 %v5072_v63  ;;  %v5377_v63 = vld [vmem:[#allocation4 + $0xc2] sm:$0xff] }
 0x3ed   : > { %5256 = vmatprep.mubr.f32.mxu1 %v11124_v13 }
 0x3f0   : > { %5257 = vmatmul.mubr.f32.gmra.mrb[124].mxu1 %v5073_v23  ;;  %v5378_v23 = vld [vmem:[#allocation4 + $0xd2] sm:$0xff] }
 0x3f1   : > { %5262 = vmatprep.mubr.f32.mxu1 %v11124_v13 }
 0x3f4   : > { %5263 = vmatmul.mubr.f32.gmra.mrb[126].mxu1 %v5074_v22  ;;  %v7551_v22 = vld [vmem:[%s11067_s3 + $0x410] sm:$0xff] }
 0x3f5   : > { %5478 = vmatprep.mubr.f32.mxu1 %v11124_v13 }
 0x3f8   : > { %5479 = vmatmul.mubr.f32.vlgmr.msra.gmra.mrb[96].mxu1 %v5365_v24  ;;  %v7555_v24 = vld [vmem:[%s11067_s3 + $0x430] sm:$0xff] }
 0x3f9   : > { %7999 = vmatpush1.bf16.msra.mxu1 %v7998_v10  ;;  %5484 = vmatprep.mubr.f32.mxu1 %v11124_v13  ;;  %v7556_v10 = vld [vmem:[%s11067_s3 + $0x438] sm:$0xff] }
 0x3fa   : > { %8001 = vmatprep.subr.bf16.mxu1 %v8000_v44  ;;  %v8030_v44 = vpack.c.bf16 %v7551_v22, %v7549_v59  ;;  %v8032_v34 = vpack.c.bf16 %v7556_v10, %v7554_v3  ;;  %v5978_v59 = vld [vmem:[#allocation4 + $0x14] sm:$0xff]  ;;  %v5979_v22 = vld [vmem:[#allocation4 + $0x24] sm:$0xff] }
 0x3fb   : > { %v5981_v3 = vld [vmem:[#allocation4 + $0x44] sm:$0xff]  ;;  %v5982_v10 = vld [vmem:[#allocation4 + $0x54] sm:$0xff] }
 0x3fc   : > { %5485 = vmatmul.mubr.f32.gmra.mrb[98].mxu1 %v5366_v20  ;;  %v7559_v20 = vld [vmem:[%s11067_s3 + $0x450] sm:$0xff] }
 0x3fd   : > { %5490 = vmatprep.mubr.f32.mxu1 %v11124_v13  ;;  %8003 = vmatpush1.bf16.msra.mxu1 %v8002_v7  ;;  %v7560_v7 = vld [vmem:[%s11067_s3 + $0x458] sm:$0xff] }
 0x3fe   : > { %8005 = vmatprep.subr.bf16.mxu1 %v8004_v45  ;;  %v8034_v45 = vpack.c.bf16 %v7555_v24, %v7553_v54  ;;  %v8036_v11 = vpack.c.bf16 %v7560_v7, %v7558_v36  ;;  %v5985_v54 = vld [vmem:[#allocation4 + $0x84] sm:$0xff]  ;;  %v5986_v24 = vld [vmem:[#allocation4 + $0x94] sm:$0xff] }
 0x3ff   : > { %v5988_v36 = vld [vmem:[#allocation4 + $0xb4] sm:$0xff]  ;;  %v5989_v7 = vld [vmem:[#allocation4 + $0xc4] sm:$0xff] }
 0x400   : > { %5491 = vmatmul.mubr.f32.gmra.mrb[100].mxu1 %v5367_v16  ;;  %v7563_v16 = vld [vmem:[%s11067_s3 + $0x470] sm:$0xff] }
 0x401   : > { %5496 = vmatprep.mubr.f32.mxu1 %v11124_v13  ;;  %8007 = vmatpush1.bf16.msra.mxu1 %v8006_v60  ;;  %v7564_v60 = vld [vmem:[%s11067_s3 + $0x478] sm:$0xff] }
 0x402   : > { %8009 = vmatprep.subr.bf16.mxu1 %v8008_v48  ;;  %v8038_v48 = vpack.c.bf16 %v7559_v20, %v7557_v46  ;;  %v8040_v39 = vpack.c.bf16 %v7564_v60, %v7562_v25  ;;  %v5992_v46 = vld [vmem:[#allocation4 + $0xf4] sm:$0xff]  ;;  %v7582_v20 = vld [vmem:[%s11069_s5 + $0x80] sm:$0xff] }
 0x403   : > { %v7584_v60 = vld [vmem:[%s11069_s5 + $0x90] sm:$0xff] }
 0x404   : > { %5497 = vmatmul.mubr.f32.gmra.mrb[102].mxu1 %v5368_v18  ;;  %v7567_v18 = vld [vmem:[%s11067_s3 + $0x490] sm:$0xff] }
 0x405   : > { %5502 = vmatprep.mubr.f32.mxu1 %v11124_v13  ;;  %8011 = vmatpush1.bf16.msra.mxu1 %v8010_v41  ;;  %v7568_v41 = vld [vmem:[%s11067_s3 + $0x498] sm:$0xff] }
 0x406   : > { %8013 = vmatprep.subr.bf16.mxu1 %v8012_v27  ;;  %v8042_v27 = vpack.c.bf16 %v7563_v16, %v7561_v52  ;;  %v8044_v1 = vpack.c.bf16 %v7568_v41, %v7566_v8  ;;  %v7587_v52 = vld [vmem:[%s11069_s5 + $0xa8] sm:$0xff]  ;;  %v7589_v8 = vld [vmem:[%s11069_s5 + $0xb8] sm:$0xff] }
 0x408   : > { %5503 = vmatmul.mubr.f32.gmra.mrb[104].mxu1 %v5369_v21  ;;  %v7571_v21 = vld [vmem:[%s11067_s3 + $0x4b0] sm:$0xff] }
 0x409   : > { %5508 = vmatprep.mubr.f32.mxu1 %v11124_v13  ;;  %8015 = vmatpush1.bf16.msra.mxu1 %v8014_v4  ;;  %v7572_v4 = vld [vmem:[%s11067_s3 + $0x4b8] sm:$0xff] }
 0x40a   : > { %8017 = vmatprep.subr.bf16.mxu1 %v8016_v38  ;;  %v8046_v38 = vpack.c.bf16 %v7567_v18, %v7565_v15  ;;  %v8048_v28 = vpack.c.bf16 %v7572_v4, %v7570_v19  ;;  %v7592_v18 = vld [vmem:[%s11069_s5 + $0xd0] sm:$0xff]  ;;  %v7594_v4 = vld [vmem:[%s11069_s5 + $0xe0] sm:$0xff] }
 0x40c   : > { %5509 = vmatmul.mubr.f32.gmra.mrb[106].mxu1 %v5370_v58  ;;  %v7575_v58 = vld [vmem:[%s11067_s3 + $0x4d0] sm:$0xff] }
 0x40d   : > { %5514 = vmatprep.mubr.f32.mxu1 %v11124_v13  ;;  %8019 = vmatpush1.bf16.msra.mxu1 %v8018_v29  ;;  %v7576_v29 = vld [vmem:[%s11067_s3 + $0x4d8] sm:$0xff] }
 0x40e   : > { %8021 = vmatprep.subr.bf16.mxu1 %v8020_v0  ;;  %v8050_v0 = vpack.c.bf16 %v7571_v21, %v7569_v12  ;;  %v8052_v5 = vpack.c.bf16 %v7576_v29, %v7574_v30  ;;  %v7597_v21 = vld [vmem:[%s11069_s5 + $0xf8] sm:$0xff]  ;;  %v6465_v30 = vld [vmem:[%s11069_s5] sm:$0xff]  ;;  %v6466_v29 = vld [vmem:[%s11069_s5 + $0x8] sm:$0xff] }
 0x410   : > { %5515 = vmatmul.mubr.f32.gmra.mrb[108].mxu1 %v5371_v49  ;;  %v7579_v49 = vld [vmem:[%s11067_s3 + $0x4f0] sm:$0xff] }
 0x411   : > { %5520 = vmatprep.mubr.f32.mxu1 %v11124_v13  ;;  %8023 = vmatpush1.bf16.msra.mxu1 %v8022_v50  ;;  %v7580_v50 = vld [vmem:[%s11067_s3 + $0x4f8] sm:$0xff]  ;;  %v8058_v40 = vpack.c.bf16 %v7579_v49, %v7577_v17  ;;  %v10745_v17 = vld [vmem:[%s11068_s4] ss:$0 sm:$0xff] }
 0x412   : > { %8025 = vmatprep.subr.bf16.mxu1 %v8024_v47  ;;  %v8054_v47 = vpack.c.bf16 %v7575_v58, %v7573_v32  ;;  %v8056_v51 = vpack.c.bf16 %v7580_v50, %v7578_v55 }
 0x414   : > { %5521 = vmatmul.mubr.f32.gmra.mrb[110].mxu1 %v5372_v53  ;;  %v5680_v53 = vld [vmem:[#allocation4 + $0x93] sm:$0xff] }
 0x415   : > { %5526 = vmatprep.mubr.f32.mxu1 %v11124_v13  ;;  %8027 = vmatpush1.bf16.msra.mxu1 %v8026_v61  ;;  %v5678_v61 = vld [vmem:[#allocation4 + $0x73] sm:$0xff] }
 0x416   : > { %8029 = vmatprep.subr.bf16.mxu1 %v8028_v56  ;;  %v5679_v56 = vld [vmem:[#allocation4 + $0x83] sm:$0xff] }
 0x418   : > { %5527 = vmatmul.mubr.f32.gmra.mrb[112].mxu1 %v5373_v31  ;;  %v5681_v31 = vld [vmem:[#allocation4 + $0xa3] sm:$0xff] }
 0x419   : > { %5532 = vmatprep.mubr.f32.mxu1 %v11124_v13 }
 0x41c   : > { %5533 = vmatmul.mubr.f32.gmra.mrb[114].mxu1 %v5374_v9  ;;  %v5682_v9 = vld [vmem:[#allocation4 + $0xb3] sm:$0xff] }
 0x41d   : > { %5538 = vmatprep.mubr.f32.mxu1 %v11124_v13 }
 0x420   : > { %5539 = vmatmul.mubr.f32.gmra.mrb[116].mxu1 %v5375_v42  ;;  %v5683_v42 = vld [vmem:[#allocation4 + $0xc3] sm:$0xff] }
 0x421   : > { %5544 = vmatprep.mubr.f32.mxu1 %v11124_v13 }
 0x424   : > { %5545 = vmatmul.mubr.f32.gmra.mrb[118].mxu1 %v5376_v33  ;;  %v5684_v33 = vld [vmem:[#allocation4 + $0xd3] sm:$0xff] }
 0x425   : > { %5550 = vmatprep.mubr.f32.mxu1 %v11124_v13 }
 0x428   : > { %5551 = vmatmul.mubr.f32.gmra.mrb[120].mxu1 %v5377_v63  ;;  %v5685_v63 = vld [vmem:[#allocation4 + $0xe3] sm:$0xff] }
 0x429   : > { %5556 = vmatprep.mubr.f32.mxu1 %v11124_v13 }
 0x42c   : > { %5557 = vmatmul.mubr.f32.gmra.mrb[122].mxu1 %v5378_v23  ;;  %v5686_v23 = vld [vmem:[#allocation4 + $0xf3] sm:$0xff] }
 0x42d   : > { %5562 = vmatprep.mubr.f32.mxu1 %v11124_v13 }
 0x430   : > { %5563 = vmatmul.mubr.f32.gmra.mrb[124].mxu1 %v5379_v57  ;;  %v5977_v57 = vld [vmem:[#allocation4 + $0x4] sm:$0xff] }
 0x431   : > { %5568 = vmatprep.mubr.f32.mxu1 %v11124_v13 }
 0x434   : > { %5569 = vmatmul.mubr.f32.gmra.mrb[126].mxu1 %v5380_v43  ;;  %v5980_v43 = vld [vmem:[#allocation4 + $0x34] sm:$0xff] }
 0x435   : > { %5784 = vmatprep.mubr.f32.mxu1 %v11124_v13 }
 0x438   : > { %5785 = vmatmul.mubr.f32.vlgmr.msra.gmra.mrb[96].mxu1 %v5671_v62  ;;  %v5987_v62 = vld [vmem:[#allocation4 + $0xa4] sm:$0xff] }
 0x439   : > { %8031 = vmatpush1.bf16.msra.mxu1 %v8030_v44  ;;  %5790 = vmatprep.mubr.f32.mxu1 %v11124_v13  ;;  %v5983_v44 = vld [vmem:[#allocation4 + $0x64] sm:$0xff] }
 0x43a   : > { %8033 = vmatprep.subr.bf16.mxu1 %v8032_v34  ;;  %v5984_v34 = vld [vmem:[#allocation4 + $0x74] sm:$0xff] }
 0x43c   : > { %5791 = vmatmul.mubr.f32.gmra.mrb[98].mxu1 %v5672_v37  ;;  %v7583_v37 = vld [vmem:[%s11069_s5 + $0x88] sm:$0xff] }
 0x43d   : > { %5796 = vmatprep.mubr.f32.mxu1 %v11124_v13  ;;  %8035 = vmatpush1.bf16.msra.mxu1 %v8034_v45  ;;  %v5990_v45 = vld [vmem:[#allocation4 + $0xd4] sm:$0xff]  ;;  %v8060_v25 = vpack.c.bf16 %v7583_v37, %v7582_v20 }
 0x43e   : > { %8037 = vmatprep.subr.bf16.mxu1 %v8036_v11  ;;  %v5991_v11 = vld [vmem:[#allocation4 + $0xe4] sm:$0xff] }
 0x440   : > { %5797 = vmatmul.mubr.f32.gmra.mrb[100].mxu1 %v5673_v26  ;;  %v7588_v26 = vld [vmem:[%s11069_s5 + $0xb0] sm:$0xff] }
 0x441   : > { %5802 = vmatprep.mubr.f32.mxu1 %v11124_v13  ;;  %8039 = vmatpush1.bf16.msra.mxu1 %v8038_v48  ;;  %v8072_v41 = vpack.c.bf16 %v7589_v8, %v7588_v26 }
 0x442   : > { %8041 = vmatprep.subr.bf16.mxu1 %v8040_v39  ;;  %v7586_v39 = vld [vmem:[%s11069_s5 + $0xa0] sm:$0xff] }
 0x443   : > { %v8068_v16 = vpack.c.bf16 %v7587_v52, %v7586_v39 }
 0x444   : > { %5803 = vmatmul.mubr.f32.gmra.mrb[102].mxu1 %v5674_v2  ;;  %v7593_v2 = vld [vmem:[%s11069_s5 + $0xd8] sm:$0xff] }
 0x445   : > { %5808 = vmatprep.mubr.f32.mxu1 %v11124_v13  ;;  %8043 = vmatpush1.bf16.msra.mxu1 %v8042_v27  ;;  %v7590_v27 = vld [vmem:[%s11069_s5 + $0xc0] sm:$0xff]  ;;  %v8080_v19 = vpack.c.bf16 %v7593_v2, %v7592_v18 }
 0x446   : > { %8045 = vmatprep.subr.bf16.mxu1 %v8044_v1  ;;  %v7591_v1 = vld [vmem:[%s11069_s5 + $0xc8] sm:$0xff] }
 0x447   : > { %v8076_v15 = vpack.c.bf16 %v7591_v1, %v7590_v27 }
 0x448   : > { %5809 = vmatmul.mubr.f32.gmra.mrb[104].mxu1 %v5675_v14 }
 0x449   : > { %5814 = vmatprep.mubr.f32.mxu1 %v11124_v13  ;;  %8047 = vmatpush1.bf16.msra.mxu1 %v8046_v38  ;;  %v7595_v38 = vld [vmem:[%s11069_s5 + $0xe8] sm:$0xff] }
 0x44a   : > { %8049 = vmatprep.subr.bf16.mxu1 %v8048_v28  ;;  %v7596_v28 = vld [vmem:[%s11069_s5 + $0xf0] sm:$0xff]  ;;  %v8084_v12 = vpack.c.bf16 %v7595_v38, %v7594_v4 }
 0x44b   : > { %v8088_v14 = vpack.c.bf16 %v7597_v21, %v7596_v28 }
 0x44c   : > { %5815 = vmatmul.mubr.f32.gmra.mrb[106].mxu1 %v5676_v35 }
 0x44d   : > { %5820 = vmatprep.mubr.f32.mxu1 %v11124_v13  ;;  %8051 = vmatpush1.bf16.msra.mxu1 %v8050_v0  ;;  %v10739_v0 = vpack.c.bf16 %v6466_v29, %v6465_v30 }
 0x44e   : > { %8053 = vmatprep.subr.bf16.mxu1 %v8052_v5 }
 0x450   : > { %5821 = vmatmul.mubr.f32.gmra.mrb[108].mxu1 %v5677_v6 }
 0x451   : > { %5826 = vmatprep.mubr.f32.mxu1 %v11124_v13  ;;  %8055 = vmatpush1.bf16.msra.mxu1 %v8054_v47 }
 0x452   : > { %8057 = vmatprep.subr.bf16.mxu1 %v8056_v51 }
 0x454   : > { %5827 = vmatmul.mubr.f32.gmra.mrb[110].mxu1 %v5678_v61 }
 0x455   : > { %5832 = vmatprep.mubr.f32.mxu1 %v11124_v13  ;;  %8059 = vmatpush1.bf16.msra.mxu1 %v8058_v40 }
 0x456   : > { %8061 = vmatprep.subr.bf16.mxu1 %v8060_v25 }
 0x458   : > { %5833 = vmatmul.mubr.f32.gmra.mrb[112].mxu1 %v5679_v56 }
 0x459   : > { %5838 = vmatprep.mubr.f32.mxu1 %v11124_v13 }
 0x45c   : > { %5839 = vmatmul.mubr.f32.gmra.mrb[114].mxu1 %v5680_v53 }
 0x45d   : > { %5844 = vmatprep.mubr.f32.mxu1 %v11124_v13 }
 0x460   : > { %5845 = vmatmul.mubr.f32.gmra.mrb[116].mxu1 %v5681_v31 }
 0x461   : > { %5850 = vmatprep.mubr.f32.mxu1 %v11124_v13 }
 0x464   : > { %5851 = vmatmul.mubr.f32.gmra.mrb[118].mxu1 %v5682_v9 }
 0x465   : > { %5856 = vmatprep.mubr.f32.mxu1 %v11124_v13 }
 0x468   : > { %5857 = vmatmul.mubr.f32.gmra.mrb[120].mxu1 %v5683_v42 }
 0x469   : > { %5862 = vmatprep.mubr.f32.mxu1 %v11124_v13 }
 0x46c   : > { %5863 = vmatmul.mubr.f32.gmra.mrb[122].mxu1 %v5684_v33 }
 0x46d   : > { %5868 = vmatprep.mubr.f32.mxu1 %v11124_v13 }
 0x470   : > { %5869 = vmatmul.mubr.f32.gmra.mrb[124].mxu1 %v5685_v63 }
 0x471   : > { %5874 = vmatprep.mubr.f32.mxu1 %v11124_v13 }
 0x474   : > { %5875 = vmatmul.mubr.f32.gmra.mrb[126].mxu1 %v5686_v23 }
 0x475   : > { %6090 = vmatprep.mubr.f32.mxu1 %v11124_v13 }
 0x478   : > { %6091 = vmatmul.mubr.f32.vlgmr.msra.gmra.mrb[96].mxu1 %v5977_v57 }
 0x479   : > { %6096 = vmatprep.mubr.f32.mxu1 %v11124_v13  ;;  %8063 = vmatpush3.bf16.msra.mxu1 %v8060_v25 }
 0x47c   : > { %6097 = vmatmul.mubr.f32.gmra.mrb[98].mxu1 %v5978_v59 }
 0x47d   : > { %6102 = vmatprep.mubr.f32.mxu1 %v11124_v13 }
 0x480   : > { %6103 = vmatmul.mubr.f32.gmra.mrb[100].mxu1 %v5979_v22 }
 0x481   : > { %6108 = vmatprep.mubr.f32.mxu1 %v11124_v13 }
 0x484   : > { %6109 = vmatmul.mubr.f32.gmra.mrb[102].mxu1 %v5980_v43 }
 0x485   : > { %6114 = vmatprep.mubr.f32.mxu1 %v11124_v13 }
 0x488   : > { %6115 = vmatmul.mubr.f32.gmra.mrb[104].mxu1 %v5981_v3 }
 0x489   : > { %6120 = vmatprep.mubr.f32.mxu1 %v11124_v13 }
 0x48c   : > { %6121 = vmatmul.mubr.f32.gmra.mrb[106].mxu1 %v5982_v10 }
 0x48d   : > { %6126 = vmatprep.mubr.f32.mxu1 %v11124_v13 }
 0x490   : > { %6127 = vmatmul.mubr.f32.gmra.mrb[108].mxu1 %v5983_v44 }
 0x491   : > { %6132 = vmatprep.mubr.f32.mxu1 %v11124_v13 }
 0x494   : > { %6133 = vmatmul.mubr.f32.gmra.mrb[110].mxu1 %v5984_v34 }
 0x495   : > { %6138 = vmatprep.mubr.f32.mxu1 %v11124_v13 }
 0x498   : > { %6139 = vmatmul.mubr.f32.gmra.mrb[112].mxu1 %v5985_v54 }
 0x499   : > { %6144 = vmatprep.mubr.f32.mxu1 %v11124_v13 }
 0x49c   : > { %6145 = vmatmul.mubr.f32.gmra.mrb[114].mxu1 %v5986_v24 }
 0x49d   : > { %6150 = vmatprep.mubr.f32.mxu1 %v11124_v13 }
 0x4a0   : > { %6151 = vmatmul.mubr.f32.gmra.mrb[116].mxu1 %v5987_v62 }
 0x4a1   : > { %6156 = vmatprep.mubr.f32.mxu1 %v11124_v13 }
 0x4a4   : > { %6157 = vmatmul.mubr.f32.gmra.mrb[118].mxu1 %v5988_v36 }
 0x4a5   : > { %6162 = vmatprep.mubr.f32.mxu1 %v11124_v13 }
 0x4a8   : > { %6163 = vmatmul.mubr.f32.gmra.mrb[120].mxu1 %v5989_v7 }
 0x4a9   : > { %6168 = vmatprep.mubr.f32.mxu1 %v11124_v13 }
 0x4ac   : > { %6169 = vmatmul.mubr.f32.gmra.mrb[122].mxu1 %v5990_v45 }
 0x4ad   : > { %6174 = vmatprep.mubr.f32.mxu1 %v11124_v13 }
 0x4b0   : > { %6175 = vmatmul.mubr.f32.gmra.mrb[124].mxu1 %v5991_v11 }
 0x4b1   : > { %6180 = vmatprep.mubr.f32.mxu1 %v11124_v13  ;;  %v7585_v13 = vld [vmem:[%s11069_s5 + $0x98] sm:$0xff] }
 0x4b2   : > { %v8064_v48 = vpack.c.bf16 %v7585_v13, %v7584_v60 }
 0x4b4   : > { %6181 = vmatmul.mubr.f32.gmra.mrb[126].mxu1 %v5992_v46  ;;  %8065 = vmatprep.subr.bf16.mxu1 %v8064_v48 }
 0x4b5   : > { %8067 = vmatpush3.bf16.msra.mxu1 %v8064_v48 }
 0x4b6   : > { %8069 = vmatprep.subr.bf16.mxu1 %v8068_v16 }
 0x4b9   : > { %8071 = vmatpush3.bf16.msra.mxu1 %v8068_v16 }
 0x4ba   : > { %8073 = vmatprep.subr.bf16.mxu1 %v8072_v41 }
 0x4bd   : > { %8075 = vmatpush3.bf16.msra.mxu1 %v8072_v41 }
 0x4be   : > { %8077 = vmatprep.subr.bf16.mxu1 %v8076_v15 }
 0x4c1   : > { %8079 = vmatpush3.bf16.msra.mxu1 %v8076_v15 }
 0x4c2   : > { %8081 = vmatprep.subr.bf16.mxu1 %v8080_v19 }
 0x4c5   : > { %8083 = vmatpush3.bf16.msra.mxu1 %v8080_v19 }
 0x4c6   : > { %8085 = vmatprep.subr.bf16.mxu1 %v8084_v12 }
 0x4c9   : > { %8087 = vmatpush3.bf16.msra.mxu1 %v8084_v12 }
 0x4ca   : > { %8089 = vmatprep.subr.bf16.mxu1 %v8088_v14 }
 0x4cd   : > { %8091 = vmatpush3.bf16.msra.mxu1 %v8088_v14 }
 0x4ce   : > { %8093 = vmatprep.subr.bf16.mxu1 %v10739_v0 }
 0x54b   : > { %v6092_v5 = vpop.f32.mrb[96].mxu1 }
 0x54c   : > { %v6094_v32 = vpop.f32.mrb[97].mxu1 }
 0x54d   : > { %v6283_v58 = vmax.f32 %v6092_v5, %v6094_v32 }
 0x54f   : > { %6299 = vst [vmem:[#allocation6] sm:$0xff] %v6283_v58  ;;  %v6098_v35 = vpop.f32.mrb[98].mxu1 }
 0x550   : > { %v6100_v55 = vpop.f32.mrb[99].mxu1 }
 0x551   : > { %v6284_v50 = vmax.f32 %v6098_v35, %v6100_v55 }
 0x553   : > { %6300 = vst [vmem:[#allocation6 + $0x8] sm:$0xff] %v6284_v50  ;;  %v6104_v47 = vpop.f32.mrb[100].mxu1 }
 0x554   : > { %v6106_v51 = vpop.f32.mrb[101].mxu1 }
 0x555   : > { %v6285_v49 = vmax.f32 %v6104_v47, %v6106_v51 }
 0x556   : > { %v6315_v6 = vld [vmem:[#allocation6] ss:$2 sm:$0xf]  ;;  %v6347_v40 = vld [vmem:[#allocation6 + $0x1] ss:$2 sm:$0xf] }
 0x557   : > { %v6378_v61 = vmax.f32 %v6315_v6, %v6347_v40  ;;  %6301 = vst [vmem:[#allocation6 + $0x10] sm:$0xff] %v6285_v49  ;;  %v6110_v56 = vpop.f32.mrb[102].mxu1 }
 0x558   : > { %v6112_v53 = vpop.f32.mrb[103].mxu1 }
 0x559   : > { %v6401_v31 = vadd.f32 %v10745_v17, %v6378_v61  ;;  %v6286_v9 = vmax.f32 %v6110_v56, %v6112_v53 }
 0x55a   : > { %v6317_v42 = vld [vmem:[#allocation6 + $0x8] ss:$2 sm:$0xf]  ;;  %v6349_v33 = vld [vmem:[#allocation6 + $0x9] ss:$2 sm:$0xf] }
 0x55b   : > { %v6417_v63 = vmax.f32 %v6401_v31, 0.0  ;;  %v6379_v23 = vmax.f32 %v6317_v42, %v6349_v33  ;;  %6302 = vst [vmem:[#allocation6 + $0x18] sm:$0xff] %v6286_v9  ;;  %v6116_v57 = vpop.f32.mrb[104].mxu1 }
 0x55c   : > { %v6118_v59 = vpop.f32.mrb[105].mxu1 }
 0x55d   : > { %6433 = vst [vmem:[#allocation7] sm:$0xf] %v6417_v63  ;;  %v6402_v22 = vadd.f32 %v10745_v17, %v6379_v23  ;;  %v6287_v43 = vmax.f32 %v6116_v57, %v6118_v59 }
 0x55e   : > { %v6319_v3 = vld [vmem:[#allocation6 + $0x10] ss:$2 sm:$0xf]  ;;  %v6351_v10 = vld [vmem:[#allocation6 + $0x11] ss:$2 sm:$0xf] }
 0x55f   : > { %v6418_v44 = vmax.f32 %v6402_v22, 0.0  ;;  %v6380_v34 = vmax.f32 %v6319_v3, %v6351_v10  ;;  %6303 = vst [vmem:[#allocation6 + $0x20] sm:$0xff] %v6287_v43  ;;  %v6122_v54 = vpop.f32.mrb[106].mxu1 }
 0x560   : > { %v6124_v24 = vpop.f32.mrb[107].mxu1 }
 0x561   : > { %6434 = vst [vmem:[#allocation7 + $0x4] sm:$0xf] %v6418_v44  ;;  %v6403_v62 = vadd.f32 %v10745_v17, %v6380_v34  ;;  %v6288_v36 = vmax.f32 %v6122_v54, %v6124_v24 }
 0x562   : > { %v6321_v7 = vld [vmem:[#allocation6 + $0x18] ss:$2 sm:$0xf]  ;;  %v6353_v45 = vld [vmem:[#allocation6 + $0x19] ss:$2 sm:$0xf] }
 0x563   : > { %v6419_v11 = vmax.f32 %v6403_v62, 0.0  ;;  %v6381_v46 = vmax.f32 %v6321_v7, %v6353_v45  ;;  %6304 = vst [vmem:[#allocation6 + $0x28] sm:$0xff] %v6288_v36  ;;  %v6128_v20 = vpop.f32.mrb[108].mxu1 }
 0x564   : > { %v6130_v37 = vpop.f32.mrb[109].mxu1  ;;  %v6763_v35 = vld [vmem:[#allocation7 + $0x2] sm:$0x1] }
 0x565   : > { %6435 = vst [vmem:[#allocation7 + $0x8] sm:$0xf] %v6419_v11  ;;  %v6404_v25 = vadd.f32 %v10745_v17, %v6381_v46  ;;  %v6289_v60 = vmax.f32 %v6128_v20, %v6130_v37 }
 0x566   : > { %v6323_v13 = vld [vmem:[#allocation6 + $0x20] ss:$2 sm:$0xf]  ;;  %v6355_v48 = vld [vmem:[#allocation6 + $0x21] ss:$2 sm:$0xf] }
 0x567   : > { %v6420_v39 = vmax.f32 %v6404_v25, 0.0  ;;  %v6382_v52 = vmax.f32 %v6323_v13, %v6355_v48  ;;  %6305 = vst [vmem:[#allocation6 + $0x30] sm:$0xff] %v6289_v60  ;;  %v6134_v16 = vpop.f32.mrb[110].mxu1 }
 0x568   : > { %v6136_v26 = vpop.f32.mrb[111].mxu1  ;;  %v6764_v27 = vld [vmem:[#allocation7 + $0x6] sm:$0x1]  ;;  %v6482_v23 = vld [vmem:[#allocation7 + $0x5] sm:$0x1] }
 0x569   : > { %6436 = vst [vmem:[#allocation7 + $0xc] sm:$0xf] %v6420_v39  ;;  %v6405_v8 = vadd.f32 %v10745_v17, %v6382_v52  ;;  %v6290_v41 = vmax.f32 %v6134_v16, %v6136_v26  ;;  %v6812_v21 = vrot.slane %v6764_v27, 7  ;;  %v6530_v62 = vrot.slane %v6482_v23, 7  ;;  %v6481_v16 = vld [vmem:[#allocation7 + $0x1] sm:$0x1] }
 0x56a   : > { %v6325_v1 = vld [vmem:[#allocation6 + $0x28] ss:$2 sm:$0xf]  ;;  %v6357_v15 = vld [vmem:[#allocation6 + $0x29] ss:$2 sm:$0xf] }
 0x56b   : > { %v6421_v18 = vmax.f32 %v6405_v8, 0.0  ;;  %v6383_v2 = vmax.f32 %v6325_v1, %v6357_v15  ;;  %6306 = vst [vmem:[#allocation6 + $0x38] sm:$0xff] %v6290_v41  ;;  %v6140_v19 = vpop.f32.mrb[112].mxu1  ;;  %v6813_v49 = vsel %vm6531_vm4, %v6812_v21, %v6763_v35  ;;  %v6532_v27 = vsel %vm6531_vm4, %v6530_v62, %v6481_v16 }
 0x56c   : > { %v6142_v4 = vpop.f32.mrb[113].mxu1  ;;  %v6765_v12 = vld [vmem:[#allocation7 + $0xa] sm:$0x1]  ;;  %v6483_v57 = vld [vmem:[#allocation7 + $0x9] sm:$0x1] }
 0x56d   : > { %6437 = vst [vmem:[#allocation7 + $0x10] sm:$0xf] %v6421_v18  ;;  %v6406_v38 = vadd.f32 %v10745_v17, %v6383_v2  ;;  %v6291_v28 = vmax.f32 %v6140_v19, %v6142_v4  ;;  %v6814_v55 = vrot.slane %v6765_v12, 6  ;;  %v6533_v36 = vrot.slane %v6483_v57, 6 }
 0x56e   : > { %v6327_v14 = vld [vmem:[#allocation6 + $0x30] ss:$2 sm:$0xf]  ;;  %v6359_v30 = vld [vmem:[#allocation6 + $0x31] ss:$2 sm:$0xf] }
 0x56f   : > { %v6422_v29 = vmax.f32 %v6406_v38, 0.0  ;;  %v6384_v5 = vmax.f32 %v6327_v14, %v6359_v30  ;;  %6307 = vst [vmem:[#allocation6 + $0x40] sm:$0xff] %v6291_v28  ;;  %v6146_v32 = vpop.f32.mrb[114].mxu1  ;;  %v6815_v61 = vsel %vm6534_vm5, %v6814_v55, %v6813_v49  ;;  %v6535_v21 = vsel %vm6534_vm5, %v6533_v36, %v6532_v27  ;;  %v6920_v49 = vld [vmem:[#allocation7 + $0x7] sm:$0x1] }
 0x570   : > { %v6148_v58 = vpop.f32.mrb[115].mxu1  ;;  %v6766_v51 = vld [vmem:[#allocation7 + $0xe] sm:$0x1]  ;;  %v6484_v24 = vld [vmem:[#allocation7 + $0xd] sm:$0x1] }
 0x571   : > { %6438 = vst [vmem:[#allocation7 + $0x14] sm:$0xf] %v6422_v29  ;;  %v6407_v50 = vadd.f32 %v10745_v17, %v6384_v5  ;;  %v6292_v47 = vmax.f32 %v6146_v32, %v6148_v58  ;;  %v6816_v42 = vrot.slane %v6766_v51, 5  ;;  %v6536_v26 = vrot.slane %v6484_v24, 5  ;;  %v10765_v58 = vld [vmem:[#allocation7 + $0x4] sm:$0x1] }
 0x572   : > { %v6329_v6 = vld [vmem:[#allocation6 + $0x38] ss:$2 sm:$0xf]  ;;  %v6361_v40 = vld [vmem:[#allocation6 + $0x39] ss:$2 sm:$0xf] }
 0x573   : > { %v6423_v56 = vmax.f32 %v6407_v50, 0.0  ;;  %v6385_v53 = vmax.f32 %v6329_v6, %v6361_v40  ;;  %6308 = vst [vmem:[#allocation6 + $0x48] sm:$0xff] %v6292_v47  ;;  %v6152_v31 = vpop.f32.mrb[116].mxu1  ;;  %v6817_v3 = vsel %vm6537_vm6, %v6816_v42, %v6815_v61  ;;  %v6538_v32 = vsel %vm6537_vm6, %v6536_v26, %v6535_v21  ;;  %v10768_v47 = vld [vmem:[#allocation7 + $0x8] sm:$0x1] }
 0x574   : > { %v6154_v9 = vpop.f32.mrb[117].mxu1  ;;  %v6767_v59 = vld [vmem:[#allocation7 + $0x12] sm:$0x1]  ;;  %v6485_v46 = vld [vmem:[#allocation7 + $0x11] sm:$0x1] }
 0x575   : > { %6439 = vst [vmem:[#allocation7 + $0x18] sm:$0xf] %v6423_v56  ;;  %v6408_v33 = vadd.f32 %v10745_v17, %v6385_v53  ;;  %v6293_v63 = vmax.f32 %v6152_v31, %v6154_v9  ;;  %v6818_v7 = vrot.slane %v6767_v59, 4  ;;  %v6539_v1 = vrot.slane %v6485_v46, 4  ;;  %v6921_v31 = vld [vmem:[#allocation7 + $0xb] sm:$0x1] }
 0x576   : > { %v6331_v22 = vld [vmem:[#allocation6 + $0x40] ss:$2 sm:$0xf]  ;;  %v6363_v43 = vld [vmem:[#allocation6 + $0x41] ss:$2 sm:$0xf] }
 0x577   : > { %v6424_v10 = vmax.f32 %v6408_v33, 0.0  ;;  %v6386_v44 = vmax.f32 %v6331_v22, %v6363_v43  ;;  %6309 = vst [vmem:[#allocation6 + $0x50] sm:$0xff] %v6293_v63  ;;  %v6158_v34 = vpop.f32.mrb[118].mxu1  ;;  %v6819_v13 = vsel %vm6540_vm7, %v6818_v7, %v6817_v3  ;;  %v6541_v50 = vsel %vm6540_vm7, %v6539_v1, %v6538_v32  ;;  %v10778_v36 = vld [vmem:[#allocation7 + $0xc] sm:$0x1] }
 0x578   : > { %v6160_v54 = vpop.f32.mrb[119].mxu1  ;;  %v6486_v20 = vld [vmem:[#allocation7 + $0x15] sm:$0x1]  ;;  %v6768_v37 = vld [vmem:[#allocation7 + $0x16] sm:$0x1]  ;;  %v6658_v3 = vrot.slane %v10765_v58, 7 }
 0x579   : > { %6440 = vst [vmem:[#allocation7 + $0x1c] sm:$0xf] %v6424_v10  ;;  %v6409_v45 = vadd.f32 %v10745_v17, %v6386_v44  ;;  %v6294_v11 = vmax.f32 %v6158_v34, %v6160_v54  ;;  %v6820_v15 = vrot.slane %v6768_v37, 3  ;;  %v6542_v19 = vrot.slane %v6486_v20, 3  ;;  %v6919_v34 = vld [vmem:[#allocation7 + $0x3] sm:$0x1] }
 0x57a   : > { %v6333_v25 = vld [vmem:[#allocation6 + $0x48] ss:$2 sm:$0xf]  ;;  %v6365_v60 = vld [vmem:[#allocation6 + $0x49] ss:$2 sm:$0xf] }
 0x57b   : > { %v6425_v48 = vmax.f32 %v6409_v45, 0.0  ;;  %v6387_v39 = vmax.f32 %v6333_v25, %v6365_v60  ;;  %6310 = vst [vmem:[#allocation6 + $0x58] sm:$0xff] %v6294_v11  ;;  %v6164_v52 = vpop.f32.mrb[120].mxu1  ;;  %v6821_v14 = vsel %vm6543_vm8, %v6820_v15, %v6819_v13  ;;  %v6544_v61 = vsel %vm6543_vm8, %v6542_v19, %v6541_v50  ;;  %v6922_v54 = vld [vmem:[#allocation7 + $0xf] sm:$0x1] }
 0x57c   : > { %v6166_v8 = vpop.f32.mrb[121].mxu1  ;;  %v6487_v41 = vld [vmem:[#allocation7 + $0x19] sm:$0x1]  ;;  %v6769_v38 = vld [vmem:[#allocation7 + $0x1a] sm:$0x1]  ;;  %v6660_v10 = vrot.slane %v10768_v47, 6 }
 0x57d   : > { %6441 = vst [vmem:[#allocation7 + $0x20] sm:$0xf] %v6425_v48  ;;  %v6410_v18 = vadd.f32 %v10745_v17, %v6387_v39  ;;  %v6295_v2 = vmax.f32 %v6164_v52, %v6166_v8  ;;  %v6545_v4 = vrot.slane %v6487_v41, 2  ;;  %v6822_v51 = vrot.slane %v6769_v38, 2  ;;  %v6923_v7 = vld [vmem:[#allocation7 + $0x13] sm:$0x1] }
 0x57e   : > { %v6335_v28 = vld [vmem:[#allocation6 + $0x50] ss:$2 sm:$0xf]  ;;  %v6367_v12 = vld [vmem:[#allocation6 + $0x51] ss:$2 sm:$0xf] }
 0x57f   : > { %v6426_v30 = vmax.f32 %v6410_v18, 0.0  ;;  %v6388_v29 = vmax.f32 %v6335_v28, %v6367_v12  ;;  %6311 = vst [vmem:[#allocation6 + $0x60] sm:$0xff] %v6295_v2  ;;  %v6170_v5 = vpop.f32.mrb[122].mxu1  ;;  %v6547_v33 = vsel %vm6546_vm9, %v6545_v4, %v6544_v61  ;;  %v6823_v63 = vsel %vm6546_vm9, %v6822_v51, %v6821_v14  ;;  %v10783_v48 = vld [vmem:[#allocation7 + $0x10] sm:$0x1] }
 0x580   : > { %v6172_v35 = vpop.f32.mrb[123].mxu1  ;;  %v6488_v55 = vld [vmem:[#allocation7 + $0x1d] sm:$0x1]  ;;  %v6770_v53 = vld [vmem:[#allocation7 + $0x1e] sm:$0x1]  ;;  %v6968_v45 = vrot.slane %v6920_v49, 7 }
 0x581   : > { %6442 = vst [vmem:[#allocation7 + $0x24] sm:$0xf] %v6426_v30  ;;  %v6411_v6 = vadd.f32 %v10745_v17, %v6388_v29  ;;  %v6296_v40 = vmax.f32 %v6170_v5, %v6172_v35  ;;  %v6548_v56 = vrot.slane %v6488_v55, 1  ;;  %v6824_v44 = vrot.slane %v6770_v53, 1  ;;  %v10786_v26 = vld [vmem:[#allocation7 + $0x14] sm:$0x1] }
 0x582   : > { %v6337_v9 = vld [vmem:[#allocation6 + $0x58] ss:$2 sm:$0xf]  ;;  %v6369_v42 = vld [vmem:[#allocation6 + $0x59] ss:$2 sm:$0xf]  ;;  %v6969_v39 = vsel %vm6531_vm4, %v6968_v45, %v6919_v34 }
 0x583   : > { %v6427_v23 = vmax.f32 %v6411_v6, 0.0  ;;  %v6389_v57 = vmax.f32 %v6337_v9, %v6369_v42  ;;  %6312 = vst [vmem:[#allocation6 + $0x68] sm:$0xff] %v6296_v40  ;;  %v6176_v59 = vpop.f32.mrb[124].mxu1  ;;  %v6550_v22 = vsel %vm6549_vm10, %v6548_v56, %v6547_v33  ;;  %v6970_v11 = vrot.slane %v6921_v31, 6  ;;  %v10790_v18 = vld [vmem:[#allocation7 + $0x18] sm:$0x1] }
 0x584   : > { %v6178_v43 = vpop.f32.mrb[125].mxu1  ;;  %7742 = vmatprep.mubr.f32.mxu1 %v6550_v22  ;;  %v10781_v37 = vsel %vm6549_vm10, %v6824_v44, %v6823_v63  ;;  %v6972_v52 = vrot.slane %v6922_v54, 5  ;;  %v6974_v27 = vrot.slane %v6923_v7, 4  ;;  %v6662_v2 = vrot.slane %v10778_v36, 5  ;;  %v10794_v14 = vld [vmem:[#allocation7 + $0x1c] sm:$0x1] }
 0x585   : > { %6443 = vst [vmem:[#allocation7 + $0x28] sm:$0xf] %v6427_v23  ;;  %v6412_v24 = vadd.f32 %v10745_v17, %v6389_v57  ;;  %v6297_v62 = vmax.f32 %v6176_v59, %v6178_v43  ;;  %v6971_v41 = vsel %vm6534_vm5, %v6970_v11, %v6969_v39  ;;  %v6664_v30 = vrot.slane %v10783_v48, 4  ;;  %v6457_v5 = vld [vmem:[#allocation7 + $0x20] sm:$0x1] }
 0x586   : > { %v6339_v46 = vld [vmem:[#allocation6 + $0x60] ss:$2 sm:$0xf]  ;;  %v6371_v20 = vld [vmem:[#allocation6 + $0x61] ss:$2 sm:$0xf]  ;;  %v6973_v28 = vsel %vm6537_vm6, %v6972_v52, %v6971_v41 }
 0x587   : > { %v6428_v25 = vmax.f32 %v6412_v24, 0.0  ;;  %v6390_v60 = vmax.f32 %v6339_v46, %v6371_v20  ;;  %6313 = vst [vmem:[#allocation6 + $0x70] sm:$0xff] %v6297_v62  ;;  %v6182_v13 = vpop.f32.mrb[126].mxu1  ;;  %v6666_v29 = vrot.slane %v10786_v26, 3  ;;  %v10799_v55 = vsel %vm6540_vm7, %v6974_v27, %v6973_v28  ;;  %v6771_v59 = vld [vmem:[#allocation7 + $0x22] sm:$0x1] }
 0x588   : > { %v6184_v16 = vpop.f32.mrb[127].mxu1  ;;  %v6458_v8 = vld [vmem:[#allocation7 + $0x24] sm:$0x1]  ;;  %v6772_v35 = vld [vmem:[#allocation7 + $0x26] sm:$0x1]  ;;  %v6668_v49 = vrot.slane %v10790_v18, 2 }
 0x589   : > { %6444 = vst [vmem:[#allocation7 + $0x2c] sm:$0xf] %v6428_v25  ;;  %v6413_v1 = vadd.f32 %v10745_v17, %v6390_v60  ;;  %v6298_v15 = vmax.f32 %v6182_v13, %v6184_v16  ;;  %v6672_v19 = vrot.slane %v6458_v8, 7  ;;  %v6490_v51 = vld [vmem:[#allocation7 + $0x25] sm:$0x1]  ;;  %v6826_v33 = vrot.slane %v6772_v35, 7 }
 0x58a   : > { %v6341_v4 = vld [vmem:[#allocation6 + $0x68] ss:$2 sm:$0xf]  ;;  %v6373_v38 = vld [vmem:[#allocation6 + $0x69] ss:$2 sm:$0xf] }
 0x58b   : > { %v6429_v12 = vmax.f32 %v6413_v1, 0.0  ;;  %v6391_v21 = vmax.f32 %v6341_v4, %v6373_v38  ;;  %6314 = vst [vmem:[#allocation6 + $0x78] sm:$0xff] %v6298_v15  ;;  %v6673_v53 = vsel %vm6531_vm4, %v6672_v19, %v6457_v5  ;;  %v6551_v63 = vrot.slane %v6490_v51, 7  ;;  %v6449_v44 = vld [vmem:[#allocation7] sm:$0x1] }
 0x58c   : > { %v6459_v32 = vld [vmem:[#allocation7 + $0x28] sm:$0x1]  ;;  %v6773_v40 = vld [vmem:[#allocation7 + $0x2a] sm:$0x1]  ;;  %v6670_v23 = vrot.slane %v10794_v14, 1  ;;  %v6827_v25 = vsel %vm6531_vm4, %v6826_v33, %v6771_v59  ;;  %v6659_v52 = vsel %vm6531_vm4, %v6658_v3, %v6449_v44 }
 0x58d   : > { %6445 = vst [vmem:[#allocation7 + $0x30] sm:$0xf] %v6429_v12  ;;  %v6414_v50 = vadd.f32 %v10745_v17, %v6391_v21  ;;  %v6674_v6 = vrot.slane %v6459_v32, 6  ;;  %v10807_v43 = vld [vmem:[#allocation7 + $0x29] sm:$0x1]  ;;  %v6828_v24 = vrot.slane %v6773_v40, 6 }
 0x58e   : > { %v6343_v61 = vld [vmem:[#allocation6 + $0x70] ss:$2 sm:$0xf]  ;;  %v6375_v56 = vld [vmem:[#allocation6 + $0x71] ss:$2 sm:$0xf] }
 0x58f   : > { %v6430_v31 = vmax.f32 %v6414_v50, 0.0  ;;  %v6392_v9 = vmax.f32 %v6343_v61, %v6375_v56  ;;  %v6675_v42 = vsel %vm6534_vm5, %v6674_v6, %v6673_v53  ;;  %v6924_v62 = vld [vmem:[#allocation7 + $0x17] sm:$0x1]  ;;  %v6925_v60 = vld [vmem:[#allocation7 + $0x1b] sm:$0x1]  ;;  %v6829_v41 = vsel %vm6534_vm5, %v6828_v24, %v6827_v25 }
 0x590   : > { %v6460_v57 = vld [vmem:[#allocation7 + $0x2c] sm:$0x1]  ;;  %v6774_v54 = vld [vmem:[#allocation7 + $0x2e] sm:$0x1]  ;;  %v6926_v13 = vld [vmem:[#allocation7 + $0x1f] sm:$0x1]  ;;  %v6661_v56 = vsel %vm6534_vm5, %v6660_v10, %v6659_v52 }
 0x591   : > { %6446 = vst [vmem:[#allocation7 + $0x34] sm:$0xf] %v6430_v31  ;;  %v6415_v22 = vadd.f32 %v10745_v17, %v6392_v9  ;;  %v6676_v34 = vrot.slane %v6460_v57, 5  ;;  %v6492_v39 = vld [vmem:[#allocation7 + $0x2d] sm:$0x1]  ;;  %v6553_v15 = vrot.slane %v10807_v43, 6 }
 0x592   : > { %v6345_v7 = vld [vmem:[#allocation6 + $0x78] ss:$2 sm:$0xf]  ;;  %v6377_v45 = vld [vmem:[#allocation6 + $0x79] ss:$2 sm:$0xf] }
 0x593   : > { %v6431_v11 = vmax.f32 %v6415_v22, 0.0  ;;  %v6393_v46 = vmax.f32 %v6345_v7, %v6377_v45  ;;  %v6677_v20 = vsel %vm6537_vm6, %v6676_v34, %v6675_v42  ;;  %v6489_v1 = vld [vmem:[#allocation7 + $0x21] sm:$0x1]  ;;  %v6830_v4 = vrot.slane %v6774_v54, 5  ;;  %v6928_v38 = vld [vmem:[#allocation7 + $0x27] sm:$0x1] }
 0x594   : > { %v6461_v16 = vld [vmem:[#allocation7 + $0x30] sm:$0x1]  ;;  %v6775_v8 = vld [vmem:[#allocation7 + $0x32] sm:$0x1]  ;;  %v6929_v28 = vld [vmem:[#allocation7 + $0x2b] sm:$0x1]  ;;  %v6552_v61 = vsel %vm6531_vm4, %v6551_v63, %v6489_v1 }
 0x595   : > { %6447 = vst [vmem:[#allocation7 + $0x38] sm:$0xf] %v6431_v11  ;;  %v6416_v27 = vadd.f32 %v10745_v17, %v6393_v46  ;;  %v6678_v19 = vrot.slane %v6461_v16, 4  ;;  %v6493_v12 = vld [vmem:[#allocation7 + $0x31] sm:$0x1]  ;;  %v6832_v21 = vrot.slane %v6775_v8, 4  ;;  %v6831_v51 = vsel %vm6537_vm6, %v6830_v4, %v6829_v41 }
 0x596   : > { %v6976_v5 = vrot.slane %v6924_v62, 3  ;;  %v6978_v58 = vrot.slane %v6925_v60, 2  ;;  %v6980_v32 = vrot.slane %v6926_v13, 1  ;;  %v6555_v35 = vrot.slane %v6492_v39, 5  ;;  %v6930_v6 = vld [vmem:[#allocation7 + $0x2f] sm:$0x1] }
 0x597   : > { %v6432_v3 = vmax.f32 %v6416_v27, 0.0  ;;  %v6679_v50 = vsel %vm6540_vm7, %v6678_v19, %v6677_v20  ;;  %v6931_v17 = vld [vmem:[#allocation7 + $0x33] sm:$0x1]  ;;  %v6833_v9 = vsel %vm6540_vm7, %v6832_v21, %v6831_v51  ;;  %v6557_v33 = vrot.slane %v6493_v12, 4  ;;  %v6927_v24 = vld [vmem:[#allocation7 + $0x23] sm:$0x1] }
 0x598   : > { %v6494_v40 = vld [vmem:[#allocation7 + $0x35] sm:$0x1]  ;;  %v6462_v53 = vld [vmem:[#allocation7 + $0x34] sm:$0x1]  ;;  %v6776_v31 = vld [vmem:[#allocation7 + $0x36] sm:$0x1]  ;;  %v6977_v42 = vsel %vm6543_vm8, %v6976_v5, %v10799_v55  ;;  %v6554_v45 = vsel %vm6534_vm5, %v6553_v15, %v6552_v61  ;;  %v6663_v11 = vsel %vm6537_vm6, %v6662_v2, %v6661_v56 }
 0x599   : > { %6448 = vst [vmem:[#allocation7 + $0x3c] sm:$0xf] %v6432_v3  ;;  %v6680_v57 = vrot.slane %v6462_v53, 3  ;;  %v6834_v59 = vrot.slane %v6776_v31, 3  ;;  %v6979_v22 = vsel %vm6546_vm9, %v6978_v58, %v6977_v42  ;;  %v6982_v63 = vrot.slane %v6928_v38, 7  ;;  %v6467_v2 = vld [vmem:[%s11069_s5 + $0x10] sm:$0xff] }
 0x59a   : > { %v10828_v43 = vsel %vm6549_vm10, %v6980_v32, %v6979_v22  ;;  %v6984_v47 = vrot.slane %v6929_v28, 6  ;;  %v6986_v44 = vrot.slane %v6930_v6, 5  ;;  %v6559_v10 = vrot.slane %v6494_v40, 3  ;;  %v6932_v62 = vld [vmem:[#allocation7 + $0x37] sm:$0x1]  ;;  %v6468_v15 = vld [vmem:[%s11069_s5 + $0x18] sm:$0xff] }
 0x59b   : > { %v6681_v34 = vsel %vm6543_vm8, %v6680_v57, %v6679_v50  ;;  %v6835_v54 = vsel %vm6543_vm8, %v6834_v59, %v6833_v9  ;;  %v6988_v55 = vrot.slane %v6931_v17, 4  ;;  %v6983_v25 = vsel %vm6531_vm4, %v6982_v63, %v6927_v24  ;;  %v6469_v53 = vld [vmem:[%s11069_s5 + $0x20] sm:$0xff]  ;;  %v6470_v31 = vld [vmem:[%s11069_s5 + $0x28] sm:$0xff]  ;;  %v6471_v42 = vld [vmem:[%s11069_s5 + $0x30] sm:$0xff] }
 0x59c   : > { %v6495_v7 = vld [vmem:[#allocation7 + $0x39] sm:$0x1]  ;;  %v6463_v46 = vld [vmem:[#allocation7 + $0x38] sm:$0x1]  ;;  %v6777_v20 = vld [vmem:[#allocation7 + $0x3a] sm:$0x1]  ;;  %v6556_v60 = vsel %vm6537_vm6, %v6555_v35, %v6554_v45  ;;  %v6985_v16 = vsel %vm6534_vm5, %v6984_v47, %v6983_v25  ;;  %v6665_v21 = vsel %vm6540_vm7, %v6664_v30, %v6663_v11  ;;  %v8096_v61 = vpack.c.bf16 %v6468_v15, %v6467_v2 }
 0x59d   : > { %v6682_v13 = vrot.slane %v6463_v46, 2  ;;  %v6836_v39 = vrot.slane %v6777_v20, 2  ;;  %v6933_v52 = vld [vmem:[#allocation7 + $0x3b] sm:$0x1]  ;;  %v6561_v8 = vrot.slane %v6495_v7, 2  ;;  %v6987_v41 = vsel %vm6537_vm6, %v6986_v44, %v6985_v16  ;;  %v6475_v59 = vld [vmem:[%s11069_s5 + $0x50] sm:$0xff] }
 0x59e   : > { %v6990_v27 = vrot.slane %v6932_v62, 3  ;;  %v6992_v1 = vrot.slane %v6933_v52, 2  ;;  %v6558_v36 = vsel %vm6540_vm7, %v6557_v33, %v6556_v60  ;;  %v6989_v38 = vsel %vm6540_vm7, %v6988_v55, %v6987_v41  ;;  %v6472_v33 = vld [vmem:[%s11069_s5 + $0x38] sm:$0xff]  ;;  %v6477_v47 = vld [vmem:[%s11069_s5 + $0x60] sm:$0xff]  ;;  %v6478_v44 = vld [vmem:[%s11069_s5 + $0x68] sm:$0xff] }
 0x59f   : > { %v6683_v19 = vsel %vm6546_vm9, %v6682_v13, %v6681_v34  ;;  %v6837_v4 = vsel %vm6546_vm9, %v6836_v39, %v6835_v54  ;;  %v6560_v12 = vsel %vm6543_vm8, %v6559_v10, %v6558_v36  ;;  %v6667_v40 = vsel %vm6543_vm8, %v6666_v29, %v6665_v21  ;;  %v6476_v22 = vld [vmem:[%s11069_s5 + $0x58] sm:$0xff]  ;;  %v6479_v34 = vld [vmem:[%s11069_s5 + $0x70] sm:$0xff]  ;;  %v7598_v62 = vld [vmem:[%s11069_s5 + $0x100] sm:$0xff] }
 0x5a0   : > { %v6496_v28 = vld [vmem:[#allocation7 + $0x3d] sm:$0x1]  ;;  %v6464_v5 = vld [vmem:[#allocation7 + $0x3c] sm:$0x1]  ;;  %v6778_v58 = vld [vmem:[#allocation7 + $0x3e] sm:$0x1]  ;;  %v6991_v32 = vsel %vm6543_vm8, %v6990_v27, %v6989_v38  ;;  %v6562_v17 = vsel %vm6546_vm9, %v6561_v8, %v6560_v12  ;;  %v6669_v56 = vsel %vm6546_vm9, %v6668_v49, %v6667_v40  ;;  %v8100_v9 = vpack.c.bf16 %v6470_v31, %v6469_v53 }
 0x5a1   : > { %v6563_v3 = vrot.slane %v6496_v28, 1  ;;  %v6684_v35 = vrot.slane %v6464_v5, 1  ;;  %v6838_v50 = vrot.slane %v6778_v58, 1  ;;  %v6934_v51 = vld [vmem:[#allocation7 + $0x3f] sm:$0x1]  ;;  %v6993_v6 = vsel %vm6546_vm9, %v6992_v1, %v6991_v32  ;;  %v7599_v55 = vld [vmem:[%s11069_s5 + $0x108] sm:$0xff] }
 0x5a2   : > { %v6994_v48 = vrot.slane %v6934_v51, 1  ;;  %v6671_v18 = vsel %vm6549_vm10, %v6670_v23, %v6669_v56  ;;  %v8104_v14 = vpack.c.bf16 %v6472_v33, %v6471_v42  ;;  %v6473_v23 = vld [vmem:[%s11069_s5 + $0x40] sm:$0xff]  ;;  %v8112_v63 = vpack.c.bf16 %v6476_v22, %v6475_v59  ;;  %v6480_v54 = vld [vmem:[%s11069_s5 + $0x78] sm:$0xff]  ;;  %v7600_v45 = vld [vmem:[%s11069_s5 + $0x110] sm:$0xff] }
 0x5a3   : > { %v6564_v30 = vsel %vm6549_vm10, %v6563_v3, %v6562_v17  ;;  %v6685_v26 = vsel %vm6549_vm10, %v6684_v35, %v6683_v19  ;;  %v10872_v29 = vsel %vm6549_vm10, %v6838_v50, %v6837_v4  ;;  %v8116_v10 = vpack.c.bf16 %v6478_v44, %v6477_v47  ;;  %v7601_v11 = vld [vmem:[%s11069_s5 + $0x118] sm:$0xff]  ;;  %v7602_v20 = vld [vmem:[%s11069_s5 + $0x120] sm:$0xff]  ;;  %v7603_v25 = vld [vmem:[%s11069_s5 + $0x128] sm:$0xff] }
 0x5a4   : > { %7743 = vmatmul.mubr.f32.vlgmr.msra.gmra.mrb[128].mxu1 %v6564_v30  ;;  %v10878_v49 = vsel %vm6549_vm10, %v6994_v48, %v6993_v6  ;;  %v8120_v24 = vpack.c.bf16 %v6480_v54, %v6479_v34  ;;  %v8124_v7 = vpack.c.bf16 %v7599_v55, %v7598_v62  ;;  %v8128_v46 = vpack.c.bf16 %v7601_v11, %v7600_v45  ;;  %v7604_v13 = vld [vmem:[%s11069_s5 + $0x130] sm:$0xff]  ;;  %v7605_v39 = vld [vmem:[%s11069_s5 + $0x138] sm:$0xff]  ;;  %v7606_v16 = vld [vmem:[%s11069_s5 + $0x140] sm:$0xff] }
 0x5a5   : > { %8095 = vmatpush3.bf16.msra.mxu1 %v10739_v0  ;;  %7777 = vmatprep.mubr.f32.mxu1 %v6671_v18  ;;  %v6474_v0 = vld [vmem:[%s11069_s5 + $0x48] sm:$0xff]  ;;  %v8132_v60 = vpack.c.bf16 %v7603_v25, %v7602_v20  ;;  %v8136_v52 = vpack.c.bf16 %v7605_v39, %v7604_v13  ;;  %v7608_v41 = vld [vmem:[%s11069_s5 + $0x150] sm:$0xff]  ;;  %v7609_v27 = vld [vmem:[%s11069_s5 + $0x158] sm:$0xff] }
 0x5a6   : > { %8097 = vmatprep.subr.bf16.mxu1 %v8096_v61  ;;  %v8108_v57 = vpack.c.bf16 %v6474_v0, %v6473_v23  ;;  %v8144_v1 = vpack.c.bf16 %v7609_v27, %v7608_v41  ;;  %v7610_v36 = vld [vmem:[%s11069_s5 + $0x160] sm:$0xff]  ;;  %v7611_v2 = vld [vmem:[%s11069_s5 + $0x168] sm:$0xff]  ;;  %v7612_v19 = vld [vmem:[%s11069_s5 + $0x170] sm:$0xff] }
 0x5a7   : > { %v8148_v15 = vpack.c.bf16 %v7611_v2, %v7610_v36  ;;  %v7613_v4 = vld [vmem:[%s11069_s5 + $0x178] sm:$0xff]  ;;  %v7614_v28 = vld [vmem:[%s11069_s5 + $0x180] sm:$0xff]  ;;  %v7615_v12 = vld [vmem:[%s11069_s5 + $0x188] sm:$0xff] }
 0x5a8   : > { %v8152_v38 = vpack.c.bf16 %v7613_v4, %v7612_v19  ;;  %v8156_v21 = vpack.c.bf16 %v7615_v12, %v7614_v28  ;;  %v7616_v5 = vld [vmem:[%s11069_s5 + $0x190] sm:$0xff]  ;;  %v7617_v58 = vld [vmem:[%s11069_s5 + $0x198] sm:$0xff]  ;;  %v7618_v3 = vld [vmem:[%s11069_s5 + $0x1a0] sm:$0xff] }
 0x5a9   : > { %8099 = vmatpush3.bf16.msra.mxu1 %v8096_v61  ;;  %v8160_v32 = vpack.c.bf16 %v7617_v58, %v7616_v5  ;;  %v7619_v35 = vld [vmem:[%s11069_s5 + $0x1a8] sm:$0xff]  ;;  %v7620_v51 = vld [vmem:[%s11069_s5 + $0x1b0] sm:$0xff]  ;;  %v7621_v6 = vld [vmem:[%s11069_s5 + $0x1b8] sm:$0xff] }
 0x5aa   : > { %8101 = vmatprep.subr.bf16.mxu1 %v8100_v9  ;;  %v8164_v50 = vpack.c.bf16 %v7619_v35, %v7618_v3  ;;  %v8168_v17 = vpack.c.bf16 %v7621_v6, %v7620_v51  ;;  %v7622_v40 = vld [vmem:[%s11069_s5 + $0x1c0] sm:$0xff]  ;;  %v7624_v48 = vld [vmem:[%s11069_s5 + $0x1d0] sm:$0xff]  ;;  %v7625_v30 = vld [vmem:[%s11069_s5 + $0x1d8] sm:$0xff] }
 0x5ab   : > { %v8176_v56 = vpack.c.bf16 %v7625_v30, %v7624_v48  ;;  %v7626_v53 = vld [vmem:[%s11069_s5 + $0x1e0] sm:$0xff]  ;;  %v7627_v31 = vld [vmem:[%s11069_s5 + $0x1e8] sm:$0xff]  ;;  %v7629_v18 = vld [vmem:[%s11069_s5 + $0x1f8] sm:$0xff] }
 0x5ac   : > { %v7630_v42 = vld [vmem:[%s11070_s6] ss:$0 sm:$0xff] }
 0x5ad   : > { %8103 = vmatpush3.bf16.msra.mxu1 %v8100_v9 }
 0x5ae   : > { %8105 = vmatprep.subr.bf16.mxu1 %v8104_v14 }
 0x5b1   : > { %8107 = vmatpush3.bf16.msra.mxu1 %v8104_v14 }
 0x5b2   : > { %8109 = vmatprep.subr.bf16.mxu1 %v8108_v57 }
 0x5b5   : > { %8111 = vmatpush3.bf16.msra.mxu1 %v8108_v57 }
 0x5b6   : > { %8113 = vmatprep.subr.bf16.mxu1 %v8112_v63 }
 0x5b9   : > { %8115 = vmatpush3.bf16.msra.mxu1 %v8112_v63 }
 0x5ba   : > { %8117 = vmatprep.subr.bf16.mxu1 %v8116_v10 }
 0x5bd   : > { %8119 = vmatpush3.bf16.msra.mxu1 %v8116_v10 }
 0x5be   : > { %8121 = vmatprep.subr.bf16.mxu1 %v8120_v24 }
 0x5c1   : > { %8123 = vmatpush3.bf16.msra.mxu1 %v8120_v24 }
 0x5c2   : > { %8125 = vmatprep.subr.bf16.mxu1 %v8124_v7 }
 0x5c4   : > { %7778 = vmatmul.mubr.f32.vlgmr.msra.gmra.mrb[128].mxu1 %v6685_v26  ;;  %v8180_v26 = vpack.c.bf16 %v7627_v31, %v7626_v53 }
 0x5c5   : > { %8127 = vmatpush3.bf16.msra.mxu1 %v8124_v7  ;;  %7812 = vmatprep.mubr.f32.mxu1 %v10781_v37  ;;  %v7607_v37 = vld [vmem:[%s11069_s5 + $0x148] sm:$0xff] }
 0x5c6   : > { %8129 = vmatprep.subr.bf16.mxu1 %v8128_v46  ;;  %v8140_v8 = vpack.c.bf16 %v7607_v37, %v7606_v16 }
 0x5c9   : > { %8131 = vmatpush3.bf16.msra.mxu1 %v8128_v46 }
 0x5ca   : > { %8133 = vmatprep.subr.bf16.mxu1 %v8132_v60 }
 0x5cd   : > { %8135 = vmatpush3.bf16.msra.mxu1 %v8132_v60 }
 0x5ce   : > { %8137 = vmatprep.subr.bf16.mxu1 %v8136_v52 }
 0x5d1   : > { %8139 = vmatpush3.bf16.msra.mxu1 %v8136_v52 }
 0x5d2   : > { %8141 = vmatprep.subr.bf16.mxu1 %v8140_v8 }
 0x5d5   : > { %8143 = vmatpush3.bf16.msra.mxu1 %v8140_v8 }
 0x5d6   : > { %8145 = vmatprep.subr.bf16.mxu1 %v8144_v1 }
 0x5d9   : > { %8147 = vmatpush3.bf16.msra.mxu1 %v8144_v1 }
 0x5da   : > { %8149 = vmatprep.subr.bf16.mxu1 %v8148_v15 }
 0x5dd   : > { %8151 = vmatpush3.bf16.msra.mxu1 %v8148_v15 }
 0x5de   : > { %8153 = vmatprep.subr.bf16.mxu1 %v8152_v38 }
 0x5e1   : > { %8155 = vmatpush3.bf16.msra.mxu1 %v8152_v38 }
 0x5e2   : > { %8157 = vmatprep.subr.bf16.mxu1 %v8156_v21 }
 0x5e4   : > { %7813 = vmatmul.mubr.f32.vlgmr.msra.gmra.mrb[128].mxu1 %v10872_v29  ;;  %v7628_v29 = vld [vmem:[%s11069_s5 + $0x1f0] sm:$0xff] }
 0x5e5   : > { %8159 = vmatpush3.bf16.msra.mxu1 %v8156_v21  ;;  %7847 = vmatprep.mubr.f32.mxu1 %v10828_v43  ;;  %v7623_v43 = vld [vmem:[%s11069_s5 + $0x1c8] sm:$0xff]  ;;  %v8184_v9 = vpack.c.bf16 %v7629_v18, %v7628_v29 }
 0x5e6   : > { %8161 = vmatprep.subr.bf16.mxu1 %v8160_v32  ;;  %v8172_v61 = vpack.c.bf16 %v7623_v43, %v7622_v40 }
 0x5e9   : > { %8163 = vmatpush3.bf16.msra.mxu1 %v8160_v32 }
 0x5ea   : > { %8165 = vmatprep.subr.bf16.mxu1 %v8164_v50 }
 0x5ed   : > { %8167 = vmatpush3.bf16.msra.mxu1 %v8164_v50 }
 0x5ee   : > { %8169 = vmatprep.subr.bf16.mxu1 %v8168_v17 }
 0x5f1   : > { %8171 = vmatpush3.bf16.msra.mxu1 %v8168_v17 }
 0x5f2   : > { %8173 = vmatprep.subr.bf16.mxu1 %v8172_v61 }
 0x5f5   : > { %8175 = vmatpush3.bf16.msra.mxu1 %v8172_v61 }
 0x5f6   : > { %8177 = vmatprep.subr.bf16.mxu1 %v8176_v56 }
 0x5f9   : > { %8179 = vmatpush3.bf16.msra.mxu1 %v8176_v56 }
 0x5fa   : > { %8181 = vmatprep.subr.bf16.mxu1 %v8180_v26 }
 0x5fd   : > { %8183 = vmatpush3.bf16.msra.mxu1 %v8180_v26 }
 0x5fe   : > { %8185 = vmatprep.subr.bf16.mxu1 %v8184_v9 }
 0x601   : > { %8187 = vmatpush3.bf16.msra.mxu1 %v8184_v9 }
 0x604   : > { %7848 = vmatmul.mubr.f32.vlgmr.msra.gmra.mrb[128].mxu1 %v10878_v49 }
 0x6d7   : > { %v7849_v33 = vpop.f32.mrb[128].mxu1 }
 0x6d8   : > { %v7083_v14 = vadd.f32 %v7849_v33, %v7630_v42  ;;  %v7064_v23 = vpop.f32.mrb[129].mxu1 }
 0x6d9   : > { %v7082_v49 = vadd.f32 %v7630_v42, %v7064_v23 }
 0x6da   : > { %7085 = vst [vmem:[%s274_s23 + $0x8] sm:$0xff] %v7083_v14 }
 0x6db   : > { %7084 = vst [vmem:[%s274_s23] sm:$0xff] %v7082_v49 }
 0x6dc   : > { %8767 = shalt.err (!%p8764_p3)
}
 0x6dd   : > { %s8768_s15 = scalar_lea.hbm %s11021_s29, 256  ;;  %s8772_s17 = scalar_lea.hbm %s11071_s7, 1024 }
 0x6de   : > { %p8769_p4 = scmp.ne.s32.totalorder %s11021_s29, %s8768_s15  ;;  %p8773_p9 = scmp.lt.u32.totalorder %s11021_s29, %s11071_s7 }
 0x6df   : > { %p8774_p10 = scmp.lt.u32.totalorder %s8772_s17, %s8768_s15  ;;  %p8776_p12 = scmp.lt.u32.totalorder %s8768_s15, %s11021_s29 }
 0x6e0   : > { %p8770_p7 = pnand %p8769_p4, %p8901_p5 }
 0x6e1   : > { %p8775_p11 = por %p8774_p10, %p8773_p9 }
 0x6e2   : > { %p8771_p8 = pneg %p8770_p7 }
 0x6e3   : > { %p8777_p13 = por %p8776_p12, %p8775_p11 }
 0x6e5   : > { %p8778_p0 = pnand %p8777_p13, %p8771_p8 }
 0x6e7   : > { %8781 = shalt.err (!%p8778_p0)
}
 0x6e8   : > { %s8821_s21 = smov 128   ;;  %s8822_s22 = smov 8  }
 0x6e9   : > { %8710 = dma.vmem_to_hbm [thread:$0]  (%p8901_p5), %s11016_s19, 256, %s11021_s29, %s11023_s8, %s8821_s21, %s8821_s21, %s8822_s22  }
 0x6ea PF: > { %p8716_p1 = scmp.ge.s32.totalorder %s8816_s27, 2  ;;  %s7115_s9 = sand.u32 1, %s8804_s24  }
 0x6eb   : > { %s7116_s28 = scalar_lea.sflag [#allocation9], %s7115_s9 }
 0x6ec   : > { %p8713_p2 = pnand %p8716_p1, %p8905_p6 }
 0x6ee   : > { %8799 = dma.done.wait (!%p8713_p2), %s7116_s28, 256  }
 0x6ef   : > { %8801 = vsyncadd (!%p8713_p2), %s7116_s28, 4294967040  ;;  %p17_p3 = scmp.ge.s32.totalorder %s8888_s30, 6   ;;  %s11171_s24 = smov %s8808_s25 }
 0x6f0   : > { %s11172_s25 = smov %s8812_s26  ;;  %s11173_s26 = smov %s8899_s10 }
 0x6f1   : > { %s11174_s27 = smov %s8888_s30  ;;  %19 = sbr.rel (!%p17_p3) target bundleno = 3 (0x3), region = 188 }
 0x6f8   :  { %7121 = vsyncpa [#allocation9], 1 }
 0x6f9   :  { %7123 = vsyncpa [#allocation9 + $0x1], 1 }

</bundles_post_ra>
